<compile_context>
chip_gen: v6e
topology: v6e:2x2x1
jax: 0.10.0
libtpu: 0.0.40
codegen_flags: <defaults>
</compile_context>

<pallas_src>
import jax
import jax.numpy as jnp
from jax.experimental import pallas as pl
from jax.experimental.pallas import tpu as pltpu

NCONV = 64                      # conv output channels
HIDDEN = 512                    # fc1 width
H, W = 4, 15                    # spatial dims implied by fc1 = Linear(64 * (4 + 15), 512)
POOL_PAD = 64                   # pad each 960-wide pooled block to 1024 (8 * 128 lanes)
POOL_W = W * NCONV + POOL_PAD   # 1024
FC1_IN = POOL_W + H * NCONV     # 1280 (1216 real rows + 64 zero-pad rows)


def _deepconv_kernel(x_ref, wall_ref, ball_ref, w1_ref, b1_ref, w2_ref, b2_ref, out_ref):
    # Fused conv1..conv4 + conv_straight: one MXU matmul against the block-structured
    # weight; per-conv biases are already broadcast into ball (added before the max,
    # exactly as PyTorch adds each conv's bias before concat/pool).
    y = jnp.dot(x_ref[...], wall_ref[...], preferred_element_type=jnp.float32) + ball_ref[...]

    # MaxPool2d((4,1)) over the H-concatenated conv outputs == elementwise max of the four
    # 1024-wide, lane-aligned column blocks (f32 on the VPU).
    pooled = jnp.maximum(jnp.maximum(y[:, 0:POOL_W], y[:, POOL_W:2 * POOL_W]),
                         jnp.maximum(y[:, 2 * POOL_W:3 * POOL_W], y[:, 3 * POOL_W:4 * POOL_W]))

    # Concatenate pooled + straight features (column order already matches the permuted fc1
    # weight rows) and run fc1/fc2 as two full-size matmuls with f32 accumulation.
    feats = jnp.concatenate([pooled, y[:, 4 * POOL_W:]], axis=1)          # (BT, 1280) f32
    h1 = jnp.dot(feats.astype(w1_ref.dtype), w1_ref[...],
                 preferred_element_type=jnp.float32) + b1_ref[...]
    h1 = jnp.maximum(h1, 0.0)                                             # ReLU in f32
    out_ref[...] = (jnp.dot(h1.astype(w2_ref.dtype), w2_ref[...],
                            preferred_element_type=jnp.float32) + b2_ref[...]
                    ).astype(out_ref.dtype)


def _build_fused_conv_weight(params, C):
    """Block-structured (C*H*W, 4*1024 + 256) weight and (1, same) bias row so that all
    five convolutions become a single matmul against the NCHW-flattened state."""
    eye_w = jnp.eye(W, dtype=jnp.float32)
    eye_h = jnp.eye(H, dtype=jnp.float32)
    w_cols, b_cols = [], []
    # conv1..conv4: kernel (k,1), stride (4,1) on H=4 -> exactly one output row each.
    for k in range(1, 5):
        wk = params[f'conv{k}_w'][:, :, :, 0]                     # (64, C, k)
        wk = jnp.pad(wk, ((0, 0), (0, 0), (0, H - k)))            # (64, C, 4), zero-padded kh
        blk = jnp.einsum('ocd,wv->cdwvo', wk, eye_w)              # (C, 4, W, W, 64)
        blk = blk.reshape(C * H * W, W * NCONV)                   # rows c*60+dh*15+w, cols w*64+oc
        w_cols.append(jnp.pad(blk, ((0, 0), (0, POOL_PAD))))      # (360, 1024)
        b_cols.append(jnp.pad(jnp.tile(params[f'conv{k}_b'], W), (0, POOL_PAD)))
    # conv_straight: kernel (1,15), stride 1 -> one output column, 4 output rows.
    ws = params['convs_w'][:, :, 0, :]                            # (64, C, 15)
    blk = jnp.einsum('ocw,hg->chwgo', ws, eye_h)                  # (C, 4, W, H, 64)
    w_cols.append(blk.reshape(C * H * W, H * NCONV))              # (360, 256), cols h*64+oc
    b_cols.append(jnp.tile(params['convs_b'], H))
    return jnp.concatenate(w_cols, axis=1), jnp.concatenate(b_cols)[None, :]


def _build_fc_weights(params, action_num):
    # fc1 rows permuted from PyTorch flatten order (oc*15+w | 960+oc*4+h) to the kernel's
    # feature order (w*64+oc | 1024 + h*64+oc), with 64 zero rows for the pool padding.
    w1t = params['fc1_w'].T                                                  # (1216, 512)
    w1a = w1t[:NCONV * W].reshape(NCONV, W, HIDDEN).transpose(1, 0, 2).reshape(W * NCONV, HIDDEN)
    w1a = jnp.pad(w1a, ((0, POOL_PAD), (0, 0)))                              # (1024, 512)
    w1b = w1t[NCONV * W:].reshape(NCONV, H, HIDDEN).transpose(1, 0, 2).reshape(H * NCONV, HIDDEN)
    w1 = jnp.concatenate([w1a, w1b], axis=0)                                 # (1280, 512)
    b1 = params['fc1_b'].reshape(1, HIDDEN)
    # fc2 padded to a lane-dense, 128-multiple output width (sliced off in the wrapper).
    a_pad = ((action_num + 127) // 128) * 128
    w2 = jnp.pad(params['fc2_w'].T, ((0, 0), (0, a_pad - action_num)))       # (512, a_pad)
    b2 = jnp.pad(params['fc2_b'], (0, a_pad - action_num)).reshape(1, a_pad)
    return w1, b1, w2, b2, a_pad


def deepconvnet_forward(state, params, action_num, *, batch_block=128,
                        compute_dtype=jnp.bfloat16):
    """state: (B, C, 4, 15) float32, NCHW (PyTorch convention)."""
    B, C, Hs, Ws = state.shape
    assert (Hs, Ws) == (H, W)
    k_in = C * H * W

    # Flatten the NCHW state once; every conv was folded into the big matmul weight.
    x = state.reshape(B, k_in)

    # Keep the batch tile sublane-aligned (multiple of 8) and pad B so the grid divides.
    bp = ((B + 7) // 8) * 8
    bt = min(batch_block, bp)
    bp = ((bp + bt - 1) // bt) * bt
    if bp != B:
        x = jnp.pad(x, ((0, bp - B), (0, 0)))
    x = x.astype(compute_dtype)

    w_all, b_all = _build_fused_conv_weight(params, C)
    w1, b1, w2, b2, a_pad = _build_fc_weights(params, action_num)
    w_all = w_all.astype(compute_dtype)
    w1 = w1.astype(compute_dtype)
    w2 = w2.astype(compute_dtype)
    n_all = w_all.shape[1]                                        # 4*1024 + 256 = 4352

    out = pl.pallas_call(
        _deepconv_kernel,
        out_shape=jax.ShapeDtypeStruct((bp, a_pad), jnp.float32),
        grid=(bp // bt,),
        in_specs=[
            pl.BlockSpec((bt, k_in), lambda i: (i, 0)),           # activations: tiled over batch
            pl.BlockSpec((k_in, n_all), lambda i: (0, 0)),        # weights/biases: resident
            pl.BlockSpec((1, n_all), lambda i: (0, 0)),
            pl.BlockSpec((FC1_IN, HIDDEN), lambda i: (0, 0)),
            pl.BlockSpec((1, HIDDEN), lambda i: (0, 0)),
            pl.BlockSpec((HIDDEN, a_pad), lambda i: (0, 0)),
            pl.BlockSpec((1, a_pad), lambda i: (0, 0)),
        ],
        out_specs=pl.BlockSpec((bt, a_pad), lambda i: (i, 0)),
        compiler_params=pltpu.CompilerParams(
            dimension_semantics=("parallel",),
            vmem_limit_bytes=32 * 1024 * 1024,
        ),
    )(x, w_all, b_all, w1, b1, w2, b2)
    return out[:B, :action_num]


def init_params(key, in_channels, action_num):
    ks = jax.random.split(key, 14)
    s = 0.05
    p = {}
    for idx, k in enumerate(range(1, 5)):
        p[f'conv{k}_w'] = s * jax.random.normal(ks[2 * idx], (NCONV, in_channels, k, 1), jnp.float32)
        p[f'conv{k}_b'] = s * jax.random.normal(ks[2 * idx + 1], (NCONV,), jnp.float32)
    p['convs_w'] = s * jax.random.normal(ks[8], (NCONV, in_channels, 1, W), jnp.float32)
    p['convs_b'] = s * jax.random.normal(ks[9], (NCONV,), jnp.float32)
    p['fc1_w'] = s * jax.random.normal(ks[10], (HIDDEN, NCONV * (H + W)), jnp.float32)
    p['fc1_b'] = s * jax.random.normal(ks[11], (HIDDEN,), jnp.float32)
    p['fc2_w'] = s * jax.random.normal(ks[12], (action_num, HIDDEN), jnp.float32)
    p['fc2_b'] = s * jax.random.normal(ks[13], (action_num,), jnp.float32)
    return p


def _reference_forward(state, p):
    """Pure-JAX replica of the PyTorch forward (NCHW), for correctness checking."""
    dn = ('NCHW', 'OIHW', 'NCHW')

    def conv(x, w, b, stride):
        y = jax.lax.conv_general_dilated(x, w, window_strides=stride,
                                         padding='VALID', dimension_numbers=dn)
        return y + b[None, :, None, None]

    B = state.shape[0]
    outs = [conv(state, p[f'conv{k}_w'], p[f'conv{k}_b'], (4, 1)) for k in range(1, 5)]
    x = jnp.concatenate(outs, axis=-2)                                    # (B,64,4,15)
    x = jax.lax.reduce_window(x, -jnp.inf, jax.lax.max,
                              (1, 1, 4, 1), (1, 1, 4, 1), 'VALID')        # (B,64,1,15)
    x = x.reshape(B, -1)
    xs = conv(state, p['convs_w'], p['convs_b'], (1, 1)).reshape(B, -1)
    x = jnp.concatenate([x, xs], axis=-1)
    h = jnp.maximum(x @ p['fc1_w'].T + p['fc1_b'], 0.0)
    # NOTE: nn.Dropout(0.2) is defined in __init__ but never used in forward().
    return h @ p['fc2_w'].T + p['fc2_b']


if __name__ == "__main__":
    key = jax.random.PRNGKey(0)
    k_state, k_params = jax.random.split(key)

    B, C, action_num = 8, 6, 32                 # state_shape = (6, 4, 15)
    state = jax.random.normal(k_state, (B, C, H, W), jnp.float32)
    params = init_params(k_params, C, action_num)

    out = jax.block_until_ready(deepconvnet_forward(state, params, action_num))
    assert out.shape == (B, action_num)

    ref = _reference_forward(state, params)
    if not jnp.allclose(out, ref, rtol=2e-2, atol=2e-2):
        raise AssertionError(
            f"kernel/reference mismatch, max abs err = {float(jnp.max(jnp.abs(out - ref)))}")

    print("KERNEL_OK")
</pallas_src>

<mosaic_0001>
module attributes {stable_mosaic.version = 11 : i64} {
  func.func @_deepconv_kernel(%arg0: i32, %arg1: memref<8x360xbf16, #tpu.memory_space<vmem>>, %arg2: memref<360x4352xbf16, #tpu.memory_space<vmem>>, %arg3: memref<1x4352xf32, #tpu.memory_space<vmem>>, %arg4: memref<1280x512xbf16, #tpu.memory_space<vmem>>, %arg5: memref<1x512xf32, #tpu.memory_space<vmem>>, %arg6: memref<512x128xbf16, #tpu.memory_space<vmem>>, %arg7: memref<1x128xf32, #tpu.memory_space<vmem>>, %arg8: memref<8x128xf32, #tpu.memory_space<vmem>>) attributes {dimension_semantics = [#tpu.dimension_semantics<parallel>], iteration_bounds = array<i64: 1>, scalar_prefetch = 0 : i64, scratch_operands = 0 : i64, tpu.core_type = #tpu.core_type<tc>, window_params = [{transform_indices = @transform_0, window_bounds = array<i64: 8, 360>}, {pipeline_mode = #tpu.pipeline_mode<synchronous>, transform_indices = @transform_1, window_bounds = array<i64: 360, 4352>}, {pipeline_mode = #tpu.pipeline_mode<synchronous>, transform_indices = @transform_2, window_bounds = array<i64: 1, 4352>}, {pipeline_mode = #tpu.pipeline_mode<synchronous>, transform_indices = @transform_3, window_bounds = array<i64: 1280, 512>}, {pipeline_mode = #tpu.pipeline_mode<synchronous>, transform_indices = @transform_4, window_bounds = array<i64: 1, 512>}, {pipeline_mode = #tpu.pipeline_mode<synchronous>, transform_indices = @transform_5, window_bounds = array<i64: 512, 128>}, {pipeline_mode = #tpu.pipeline_mode<synchronous>, transform_indices = @transform_6, window_bounds = array<i64: 1, 128>}, {transform_indices = @transform_7, window_bounds = array<i64: 8, 128>}]} {
    %c0 = arith.constant 0 : index
    %c0_0 = arith.constant 0 : index
    %0 = vector.load %arg1[%c0, %c0_0] : memref<8x360xbf16, #tpu.memory_space<vmem>>, vector<8x360xbf16>
    %c0_1 = arith.constant 0 : index
    %c0_2 = arith.constant 0 : index
    %1 = vector.load %arg2[%c0_1, %c0_2] : memref<360x4352xbf16, #tpu.memory_space<vmem>>, vector<360x4352xbf16>
    %cst = arith.constant dense<0.000000e+00> : vector<8x4352xf32>
    %2 = tpu.matmul %0, %1, %cst {dimension_numbers = #tpu.dot_dimension_numbers<[1], [0], [0], [1], [0, 0, 1, 1], [], []>} : vector<8x360xbf16>, vector<360x4352xbf16>, vector<8x4352xf32> -> vector<8x4352xf32>
    %c0_3 = arith.constant 0 : index
    %c0_4 = arith.constant 0 : index
    %3 = vector.load %arg3[%c0_3, %c0_4] : memref<1x4352xf32, #tpu.memory_space<vmem>>, vector<1x4352xf32>
    %4 = vector.broadcast %3 : vector<1x4352xf32> to vector<8x4352xf32>
    %5 = arith.addf %2, %4 : vector<8x4352xf32>
    %6 = vector.extract_strided_slice %5 {offsets = [0, 0], sizes = [8, 1024], strides = [1, 1]} : vector<8x4352xf32> to vector<8x1024xf32>
    %7 = vector.extract_strided_slice %5 {offsets = [0, 1024], sizes = [8, 1024], strides = [1, 1]} : vector<8x4352xf32> to vector<8x1024xf32>
    %8 = arith.maximumf %6, %7 : vector<8x1024xf32>
    %9 = vector.extract_strided_slice %5 {offsets = [0, 2048], sizes = [8, 1024], strides = [1, 1]} : vector<8x4352xf32> to vector<8x1024xf32>
    %10 = vector.extract_strided_slice %5 {offsets = [0, 3072], sizes = [8, 1024], strides = [1, 1]} : vector<8x4352xf32> to vector<8x1024xf32>
    %11 = arith.maximumf %9, %10 : vector<8x1024xf32>
    %12 = arith.maximumf %8, %11 : vector<8x1024xf32>
    %13 = vector.extract_strided_slice %5 {offsets = [0, 4096], sizes = [8, 256], strides = [1, 1]} : vector<8x4352xf32> to vector<8x256xf32>
    %14 = tpu.concatenate %12, %13 in 1 : vector<8x1024xf32>, vector<8x256xf32> -> vector<8x1280xf32>
    %15 = arith.truncf %14 : vector<8x1280xf32> to vector<8x1280xbf16>
    %c0_5 = arith.constant 0 : index
    %c0_6 = arith.constant 0 : index
    %16 = vector.load %arg4[%c0_5, %c0_6] : memref<1280x512xbf16, #tpu.memory_space<vmem>>, vector<1280x512xbf16>
    %cst_7 = arith.constant dense<0.000000e+00> : vector<8x512xf32>
    %17 = tpu.matmul %15, %16, %cst_7 {dimension_numbers = #tpu.dot_dimension_numbers<[1], [0], [0], [1], [0, 0, 1, 1], [], []>} : vector<8x1280xbf16>, vector<1280x512xbf16>, vector<8x512xf32> -> vector<8x512xf32>
    %c0_8 = arith.constant 0 : index
    %c0_9 = arith.constant 0 : index
    %18 = vector.load %arg5[%c0_8, %c0_9] : memref<1x512xf32, #tpu.memory_space<vmem>>, vector<1x512xf32>
    %19 = vector.broadcast %18 : vector<1x512xf32> to vector<8x512xf32>
    %20 = arith.addf %17, %19 : vector<8x512xf32>
    %cst_10 = arith.constant 0.000000e+00 : f32
    %21 = vector.broadcast %cst_10 : f32 to vector<8x512xf32>
    %22 = arith.maximumf %20, %21 : vector<8x512xf32>
    %23 = arith.truncf %22 : vector<8x512xf32> to vector<8x512xbf16>
    %c0_11 = arith.constant 0 : index
    %c0_12 = arith.constant 0 : index
    %24 = vector.load %arg6[%c0_11, %c0_12] : memref<512x128xbf16, #tpu.memory_space<vmem>>, vector<512x128xbf16>
    %cst_13 = arith.constant dense<0.000000e+00> : vector<8x128xf32>
    %25 = tpu.matmul %23, %24, %cst_13 {dimension_numbers = #tpu.dot_dimension_numbers<[1], [0], [0], [1], [0, 0, 1, 1], [], []>} : vector<8x512xbf16>, vector<512x128xbf16>, vector<8x128xf32> -> vector<8x128xf32>
    %c0_14 = arith.constant 0 : index
    %c0_15 = arith.constant 0 : index
    %26 = vector.load %arg7[%c0_14, %c0_15] : memref<1x128xf32, #tpu.memory_space<vmem>>, vector<1x128xf32>
    %27 = vector.broadcast %26 : vector<1x128xf32> to vector<8x128xf32>
    %28 = arith.addf %25, %27 : vector<8x128xf32>
    %c0_16 = arith.constant 0 : index
    %c0_17 = arith.constant 0 : index
    %29 = vector.load %arg8[%c0_16, %c0_17] : memref<8x128xf32, #tpu.memory_space<vmem>>, vector<8x128xf32>
    tpu.vector_store %arg8[%c0_16, %c0_17], %28 {strides = array<i32>} : memref<8x128xf32, #tpu.memory_space<vmem>>, vector<8x128xf32>,
    return
  }
  func.func @transform_0(%arg0: i32) -> (i32, i32) {
    %c0_i32 = arith.constant 0 : i32
    %c0_i32_0 = arith.constant 0 : i32
    return %arg0, %c0_i32 : i32, i32
  }
  func.func @transform_1(%arg0: i32) -> (i32, i32) {
    %c0_i32 = arith.constant 0 : i32
    %c0_i32_0 = arith.constant 0 : i32
    %c0_i32_1 = arith.constant 0 : i32
    return %c0_i32, %c0_i32_0 : i32, i32
  }
  func.func @transform_2(%arg0: i32) -> (i32, i32) {
    %c0_i32 = arith.constant 0 : i32
    %c0_i32_0 = arith.constant 0 : i32
    %c0_i32_1 = arith.constant 0 : i32
    return %c0_i32, %c0_i32_0 : i32, i32
  }
  func.func @transform_3(%arg0: i32) -> (i32, i32) {
    %c0_i32 = arith.constant 0 : i32
    %c0_i32_0 = arith.constant 0 : i32
    %c0_i32_1 = arith.constant 0 : i32
    return %c0_i32, %c0_i32_0 : i32, i32
  }
  func.func @transform_4(%arg0: i32) -> (i32, i32) {
    %c0_i32 = arith.constant 0 : i32
    %c0_i32_0 = arith.constant 0 : i32
    %c0_i32_1 = arith.constant 0 : i32
    return %c0_i32, %c0_i32_0 : i32, i32
  }
  func.func @transform_5(%arg0: i32) -> (i32, i32) {
    %c0_i32 = arith.constant 0 : i32
    %c0_i32_0 = arith.constant 0 : i32
    %c0_i32_1 = arith.constant 0 : i32
    return %c0_i32, %c0_i32_0 : i32, i32
  }
  func.func @transform_6(%arg0: i32) -> (i32, i32) {
    %c0_i32 = arith.constant 0 : i32
    %c0_i32_0 = arith.constant 0 : i32
    %c0_i32_1 = arith.constant 0 : i32
    return %c0_i32, %c0_i32_0 : i32, i32
  }
  func.func @transform_7(%arg0: i32) -> (i32, i32) {
    %c0_i32 = arith.constant 0 : i32
    %c0_i32_0 = arith.constant 0 : i32
    return %arg0, %c0_i32 : i32, i32
  }
}

</mosaic_0001>

<bundles_post_ra>
// kernel: tpu_custom_call.1
= control target key start
LH: loop header
LB: loop body
LE: loop exit
PB: predicated region body
PF: predicated region fallthrough
CT: control target
= control target key end

     0   :  { %12 = vsyncpa [#allocation3], 0  ;;  %s12755_s0 = inlined_call_operand.hbm [shape: bf16[8,360], index: 0, kind: input, shape index: {}]   ;;  %s12756_s1 = inlined_call_operand.hbm [shape: bf16[360,4352], index: 1, kind: input, shape index: {}]   ;;  %s12757_s2 = inlined_call_operand.hbm [shape: f32[1,4352], index: 2, kind: input, shape index: {}]   ;;  %s12758_s3 = inlined_call_operand.hbm [shape: bf16[1280,512], index: 3, kind: input, shape index: {}]   ;;  %s12759_s4 = inlined_call_operand.hbm [shape: f32[1,512], index: 4, kind: input, shape index: {}]   ;;  %s12760_s5 = inlined_call_operand.hbm [shape: bf16[512,128], index: 5, kind: input, shape index: {}]   ;;  %s12761_s6 = inlined_call_operand.hbm [shape: f32[1,128], index: 6, kind: input, shape index: {}]   ;;  %s12762_s7 = inlined_call_operand.hbm [shape: f32[8,128], index: 7, kind: output, shape index: {}]  }
   0x1   :  { %13 = vsyncpa [#allocation6], 0 }
   0x2   :  { %14 = vsyncpa [#allocation9], 0 }
   0x3   :  { %15 = vsyncpa [#allocation12], 0 }
   0x4   :  { %16 = vsyncpa [#allocation4], 0  ;;  %s12233_s24 = smov [#allocation5]  }
   0x5   :  { %s32_s25 = sshll.u32 %s12233_s24, 4  ;;  %s33_s25 = int_to_ptr.vmem [resolvable:$true] %s32_s25 }
   0x6   :  { %s12071_s26 = scalar_lea.vmem %s33_s25, 97920  ;;  %p12076_p1 = scmp.lt.s32.totalorder %s33_s25, %s33_s25 }
   0x7   :  { %p12072_p0 = scmp.ne.s32.totalorder %s33_s25, %s12071_s26  ;;  %p12077_p2 = scmp.lt.s32.totalorder %s12071_s26, %s12071_s26 }
   0x9   :  { %p12078_p3 = por %p12077_p2, %p12076_p1 }
   0xb   :  { %p12079_p4 = pnand %p12078_p3, %p12072_p0 }
   0xd   :  { %12082 = shalt.err (!%p12079_p4)
}
   0xe   :  { %s12234_s27 = smov 2176   ;;  %s12235_s28 = smov 136  }
   0xf   :  { %38 = dma.hbm_to_vmem [thread:$0]  %s12756_s1, 97920, %s33_s25, [#allocation6], %s12234_s27, %s12234_s27, %s12235_s28  }
  0x10   :  { %s12236_s8 = smov [#allocation8]  }
  0x11   :  { %s54_s9 = sshll.u32 %s12236_s8, 4  ;;  %s55_s9 = int_to_ptr.vmem [resolvable:$true] %s54_s9 }
  0x12   :  { %s12091_s10 = scalar_lea.vmem %s55_s9, 40960  ;;  %p12096_p6 = scmp.lt.s32.totalorder %s55_s9, %s55_s9 }
  0x13   :  { %p12092_p5 = scmp.ne.s32.totalorder %s55_s9, %s12091_s10  ;;  %p12097_p7 = scmp.lt.s32.totalorder %s12091_s10, %s12091_s10 }
  0x15   :  { %p12098_p8 = por %p12097_p7, %p12096_p6 }
  0x17   :  { %p12099_p9 = pnand %p12098_p8, %p12092_p5 }
  0x19   :  { %12102 = shalt.err (!%p12099_p9)
}
  0x1a   :  { %s12237_s11 = smov 256   ;;  %s12238_s12 = smov 16  }
  0x1b   :  { %60 = dma.hbm_to_vmem [thread:$0]  %s12758_s3, 40960, %s55_s9, [#allocation9], %s12237_s11, %s12237_s11, %s12238_s12  }
  0x1c   :  { %s12239_s15 = smov [#allocation11]  }
  0x1d   :  { %s76_s16 = sshll.u32 %s12239_s15, 4  ;;  %s77_s16 = int_to_ptr.vmem [resolvable:$true] %s76_s16 }
  0x1e   :  { %s12111_s1 = scalar_lea.vmem %s77_s16, 4096  ;;  %p12116_p11 = scmp.lt.s32.totalorder %s77_s16, %s77_s16 }
  0x1f   :  { %p12112_p10 = scmp.ne.s32.totalorder %s77_s16, %s12111_s1  ;;  %p12117_p12 = scmp.lt.s32.totalorder %s12111_s1, %s12111_s1 }
  0x21   :  { %p12118_p13 = por %p12117_p12, %p12116_p11 }
  0x23   :  { %p12119_p0 = pnand %p12118_p13, %p12112_p10 }
  0x25   :  { %12122 = shalt.err (!%p12119_p0)
}
  0x26   :  { %s12240_s17 = smov 64   ;;  %s12241_s18 = smov 4  }
  0x27   :  { %82 = dma.hbm_to_vmem [thread:$0]  %s12760_s5, 4096, %s77_s16, [#allocation12], %s12240_s17, %s12240_s17, %s12241_s18  }
  0x28   :  { %s12242_s21 = smov [#allocation2]   ;;  %s12243_s3 = smov [#allocation7]  }
  0x29   :  { %s23_s22 = sshll.u32 %s12242_s21, 4  ;;  %s45_s23 = sshll.u32 %s12243_s3, 4  ;;  %s24_s22 = int_to_ptr.vmem [resolvable:$true] %s23_s22  ;;  %s46_s23 = int_to_ptr.vmem [resolvable:$true] %s45_s23 }
  0x2a   :  { %s12131_s24 = scalar_lea.vmem %s24_s22, 192  ;;  %p12136_p2 = scmp.lt.s32.totalorder %s24_s22, %s24_s22 }
  0x2b   :  { %p12132_p1 = scmp.ne.s32.totalorder %s24_s22, %s12131_s24  ;;  %p12137_p3 = scmp.lt.s32.totalorder %s12131_s24, %s12131_s24 }
  0x2d   :  { %p12138_p4 = por %p12137_p3, %p12136_p2 }
  0x2f   :  { %p12139_p5 = pnand %p12138_p4, %p12132_p1 }
  0x31   :  { %12142 = shalt.err (!%p12139_p5)
}
  0x32   :  { %26 = dma.hbm_to_vmem [thread:$0]  %s12755_s0, 192, %s24_s22, [#allocation3]  }
  0x33   :  { %s12151_s27 = scalar_lea.vmem %s46_s23, 544  ;;  %p12156_p7 = scmp.lt.s32.totalorder %s46_s23, %s46_s23 }
  0x34   :  { %p12152_p6 = scmp.ne.s32.totalorder %s46_s23, %s12151_s27  ;;  %p12157_p8 = scmp.lt.s32.totalorder %s12151_s27, %s12151_s27 }
  0x36   :  { %p12158_p9 = por %p12157_p8, %p12156_p7 }
  0x38   :  { %p12159_p10 = pnand %p12158_p9, %p12152_p6 }
  0x3a   :  { %12162 = shalt.err (!%p12159_p10)
}
  0x3b   :  { %48 = dma.hbm_to_vmem [thread:$0]  %s12757_s2, 544, %s46_s23, [#allocation6]  }
  0x3c   :  { %s12244_s29 = smov [#allocation10]   ;;  %s12245_s8 = smov [#allocation13]  }
  0x3d   :  { %s67_s30 = sshll.u32 %s12244_s29, 4  ;;  %s89_s9 = sshll.u32 %s12245_s8, 4  ;;  %s68_s30 = int_to_ptr.vmem [resolvable:$true] %s67_s30  ;;  %s90_s9 = int_to_ptr.vmem [resolvable:$true] %s89_s9 }
  0x3e   :  { %s12171_s10 = scalar_lea.vmem %s68_s30, 64  ;;  %p12176_p12 = scmp.lt.s32.totalorder %s68_s30, %s68_s30 }
  0x3f   :  { %p12172_p11 = scmp.ne.s32.totalorder %s68_s30, %s12171_s10  ;;  %p12177_p13 = scmp.lt.s32.totalorder %s12171_s10, %s12171_s10 }
  0x41   :  { %p12178_p0 = por %p12177_p13, %p12176_p12 }
  0x43   :  { %p12179_p1 = pnand %p12178_p0, %p12172_p11 }
  0x45   :  { %12182 = shalt.err (!%p12179_p1)
}
  0x46   :  { %70 = dma.hbm_to_vmem [thread:$0]  %s12759_s4, 64, %s68_s30, [#allocation9]  }
  0x47   :  { %s12191_s12 = scalar_lea.vmem %s90_s9, 16  ;;  %s12195_s2 = scalar_lea.vmem %s90_s9, 32 }
  0x48   :  { %p12192_p2 = scmp.ne.s32.totalorder %s90_s9, %s12191_s12  ;;  %p12196_p3 = scmp.lt.s32.totalorder %s90_s9, %s90_s9 }
  0x49   :  { %p12197_p4 = scmp.lt.s32.totalorder %s12195_s2, %s12191_s12 }
  0x4b   :  { %p12198_p5 = por %p12197_p4, %p12196_p3 }
  0x4d   :  { %p12199_p6 = pnand %p12198_p5, %p12192_p2 }
  0x4f   :  { %12202 = shalt.err (!%p12199_p6)
}
  0x50   :  { %92 = dma.hbm_to_vmem [thread:$0]  %s12761_s6, 16, %s90_s9, [#allocation12]  }
  0x51   :  { %12223 = dma.done.wait [#allocation3], 192  }
  0x52   :  { %12224 = vsyncadd [#allocation3], 4294967104 }
  0x53   :  { %12225 = dma.done.wait [#allocation6], 98464  }
  0x54   :  { %12226 = vsyncadd [#allocation6], 4294868832 }
  0x55   :  { %12227 = dma.done.wait [#allocation9], 41024  }
  0x56   :  { %12228 = vsyncadd [#allocation9], 4294926272 }
  0x57   :  { %12229 = dma.done.wait [#allocation12], 4112  }
  0x58   :  { %12230 = vsyncadd [#allocation12], 4294963184  ;;  %v12246_v0 = vmov 0   ;;  %v10385_v1 = vld [vmem:[#allocation5 + $0x774] ss:$136 sps:$4 sm:$0xff]   ;;  %v865_v2 = vld [vmem:[#allocation5 + $0x1760] sm:$0xff] }
  0x59   :  { %5077 = vmatprep.mubr.bf16.mxu1 %v12246_v0  ;;  %vm4901_vm0 = vcmask 1043456   ;;  %v10388_v3 = vld [vmem:[#allocation5 + $0x770] ss:$136 sps:$4 sm:$0xff]   ;;  %5004 = vmatprep.subr.bf16.mxu0 %v10385_v1  ;;  %v9906_v4 = vcombine.high %v865_v2, %v865_v2  ;;  %v9905_v5 = vcombine.low %v865_v2, %v865_v2  ;;  %v10390_v6 = vld [vmem:[#allocation5 + $0x664] ss:$136 sps:$4 sm:$0xff]   ;;  %vm4897_vm1 = vcmask 850944  }
  0x5a   :  { %5005 = vmatpush1.bf16.msra.mxu0 %v10388_v3  ;;  %v10392_v7 = vld [vmem:[#allocation5 + $0x1654] ss:$136 sps:$4 sm:$0xff]   ;;  %v10394_v8 = vld [vmem:[#allocation5 + $0x660] ss:$136 sps:$4 sm:$0xff]   ;;  %v10395_v10 = vld [vmem:[#allocation5 + $0x1650] ss:$136 sps:$4 sm:$0xff]  }
  0x5b   :  { %9939 = vmatprep.subr.msk.bf16.mxu1 %vm4901_vm0, %v9906_v4  ;;  %v4903_v9 = vsel %vm4901_vm0, %v9905_v5, 0  ;;  %5006 = vmatprep.subr.bf16.mxu0 %v10390_v6  ;;  %v10396_v11 = vld [vmem:[#allocation5 + $0x554] ss:$136 sps:$4 sm:$0xff]   ;;  %v10398_v12 = vld [vmem:[#allocation5 + $0x1544] ss:$136 sps:$4 sm:$0xff]   ;;  %s12247_s4 = smov [#allocation14]  }
  0x5c   :  { %5048 = vmatpush1.bf16.msra.mxu1 %v4903_v9  ;;  %v10400_v13 = vld [vmem:[#allocation5 + $0x550] ss:$136 sps:$4 sm:$0xff]   ;;  %v10402_v14 = vld [vmem:[#allocation5 + $0x444] ss:$136 sps:$4 sm:$0xff]   ;;  %v10401_v15 = vld [vmem:[#allocation5 + $0x1540] ss:$136 sps:$4 sm:$0xff]  }
  0x5d   :  { %5049 = vmatprep.subr.bf16.mxu1 %v10392_v7  ;;  %v10404_v16 = vld [vmem:[#allocation5 + $0x1434] ss:$136 sps:$4 sm:$0xff]   ;;  %v10406_v17 = vld [vmem:[#allocation5 + $0x440] ss:$136 sps:$4 sm:$0xff]   ;;  %v10407_v19 = vld [vmem:[#allocation5 + $0x1430] ss:$136 sps:$4 sm:$0xff]  }
  0x5e   :  { %5007 = vmatpush1.bf16.msra.mxu0 %v10394_v8  ;;  %v10408_v18 = vld [vmem:[#allocation5 + $0x334] ss:$136 sps:$4 sm:$0xff]   ;;  %v10410_v20 = vld [vmem:[#allocation5 + $0x1324] ss:$136 sps:$4 sm:$0xff]   ;;  %v10412_v21 = vld [vmem:[#allocation5 + $0x330] ss:$136 sps:$4 sm:$0xff]  }
  0x5f   :  { %5008 = vmatprep.subr.bf16.mxu0 %v10396_v11  ;;  %v10414_v22 = vld [vmem:[#allocation5 + $0x224] ss:$136 sps:$4 sm:$0xff]   ;;  %v10413_v23 = vld [vmem:[#allocation5 + $0x1320] ss:$136 sps:$4 sm:$0xff]   ;;  %v10416_v24 = vld [vmem:[#allocation5 + $0x1214] ss:$136 sps:$4 sm:$0xff]  }
  0x60   :  { %5050 = vmatpush1.bf16.msra.mxu1 %v10395_v10  ;;  %v10418_v25 = vld [vmem:[#allocation5 + $0x220] ss:$136 sps:$4 sm:$0xff]   ;;  %v10420_v26 = vld [vmem:[#allocation5 + $0x114] ss:$136 sps:$4 sm:$0xff]   ;;  %v10419_v27 = vld [vmem:[#allocation5 + $0x1210] ss:$136 sps:$4 sm:$0xff]  }
  0x61   :  { %5051 = vmatprep.subr.bf16.mxu1 %v10398_v12  ;;  %v10422_v28 = vld [vmem:[#allocation5 + $0x1104] ss:$136 sps:$4 sm:$0xff]   ;;  %v10424_v29 = vld [vmem:[#allocation5 + $0x110] ss:$136 sps:$4 sm:$0xff]   ;;  %v10425_v31 = vld [vmem:[#allocation5 + $0x1100] ss:$136 sps:$4 sm:$0xff]  }
  0x62   :  { %5009 = vmatpush1.bf16.msra.mxu0 %v10400_v13  ;;  %v10426_v30 = vld [vmem:[#allocation5 + $0x4] ss:$136 sps:$4 sm:$0xff]   ;;  %v10432_v33 = vld [vmem:[#allocation5] ss:$136 sps:$4 sm:$0xff]   ;;  %v12312_v34 = vld [vmem:[#allocation2 + $0x8] ss:$0 sps:$4 sm:$0xff]  }
  0x63   :  { %5010 = vmatprep.subr.bf16.mxu0 %v10402_v14  ;;  %v10431_v32 = vld [vmem:[#allocation5 + $0x77c] ss:$136 sps:$4 sm:$0xff]   ;;  %v10429_v36 = vld [vmem:[#allocation5 + $0x778] ss:$136 sps:$4 sm:$0xff]   ;;  %v10437_v37 = vld [vmem:[#allocation5 + $0x66c] ss:$136 sps:$4 sm:$0xff]  }
  0x64   :  { %5052 = vmatpush1.bf16.msra.mxu1 %v10401_v15  ;;  %v10433_v35 = vld [vmem:[#allocation5 + $0xff4] ss:$136 sps:$4 sm:$0xff]   ;;  %v10438_v38 = vld [vmem:[#allocation5 + $0xff0] ss:$136 sps:$4 sm:$0xff]   ;;  %v10439_v39 = vld [vmem:[#allocation5 + $0xee4] ss:$136 sps:$4 sm:$0xff]  }
  0x65   :  { %5053 = vmatprep.subr.bf16.mxu1 %v10404_v16  ;;  %v10435_v40 = vld [vmem:[#allocation5 + $0x668] ss:$136 sps:$4 sm:$0xff]   ;;  %v10443_v41 = vld [vmem:[#allocation5 + $0x55c] ss:$136 sps:$4 sm:$0xff]   ;;  %v10441_v44 = vld [vmem:[#allocation5 + $0x558] ss:$136 sps:$4 sm:$0xff]  }
  0x66   :  { %5011 = vmatpush1.bf16.msra.mxu0 %v10406_v17  ;;  %v10444_v42 = vld [vmem:[#allocation5 + $0xee0] ss:$136 sps:$4 sm:$0xff]   ;;  %v10445_v43 = vld [vmem:[#allocation5 + $0xdd4] ss:$136 sps:$4 sm:$0xff]   ;;  %v10450_v46 = vld [vmem:[#allocation5 + $0xdd0] ss:$136 sps:$4 sm:$0xff]  }
  0x67   :  { %5012 = vmatprep.subr.bf16.mxu0 %v10408_v18  ;;  %v10449_v45 = vld [vmem:[#allocation5 + $0x44c] ss:$136 sps:$4 sm:$0xff]   ;;  %v10447_v48 = vld [vmem:[#allocation5 + $0x448] ss:$136 sps:$4 sm:$0xff]   ;;  %v10455_v49 = vld [vmem:[#allocation5 + $0x33c] ss:$136 sps:$4 sm:$0xff]  }
  0x68   :  { %5054 = vmatpush1.bf16.msra.mxu1 %v10407_v19  ;;  %v10451_v47 = vld [vmem:[#allocation5 + $0xcc4] ss:$136 sps:$4 sm:$0xff]   ;;  %v115_v50 = vld [vmem:[#allocation2] sm:$0xff]  ;;  %v10456_v51 = vld [vmem:[#allocation5 + $0xcc0] ss:$136 sps:$4 sm:$0xff]   ;;  %s9142_s6 = sshll.u32 %s12247_s4, 4  ;;  %s9143_s6 = int_to_ptr.vmem [resolvable:$true] %s9142_s6 }
  0x69   :  { %5055 = vmatprep.subr.bf16.mxu1 %v10410_v20  ;;  %v12316_v52 = vcombine.high %v115_v50, %v115_v50  ;;  %v10457_v53 = vld [vmem:[#allocation5 + $0xbb4] ss:$136 sps:$4 sm:$0xff]   ;;  %v10453_v54 = vld [vmem:[#allocation5 + $0x338] ss:$136 sps:$4 sm:$0xff]   ;;  %v10463_v57 = vld [vmem:[#allocation5 + $0xaa4] ss:$136 sps:$4 sm:$0xff]   ;;  %v12320_v10 = vcombine.low %v115_v50, %v115_v50  ;;  %p12208_p8 = scmp.lt.s32.totalorder %s9143_s6, %s9143_s6 }
  0x6a   :  { %5013 = vmatpush1.bf16.msra.mxu0 %v10412_v21  ;;  %v10461_v55 = vld [vmem:[#allocation5 + $0x22c] ss:$136 sps:$4 sm:$0xff]   ;;  %v10462_v56 = vld [vmem:[#allocation5 + $0xbb0] ss:$136 sps:$4 sm:$0xff]   ;;  %v10467_v59 = vld [vmem:[#allocation5 + $0x11c] ss:$136 sps:$4 sm:$0xff]  }
  0x6b   :  { %5014 = vmatprep.subr.bf16.mxu0 %v10414_v22  ;;  %5036 = vmatprep.mubr.bf16.mxu0 %v12316_v52  ;;  %v10459_v58 = vld [vmem:[#allocation5 + $0x228] ss:$136 sps:$4 sm:$0xff]   ;;  %v10469_v61 = vld [vmem:[#allocation5 + $0x994] ss:$136 sps:$4 sm:$0xff]   ;;  %v10465_v62 = vld [vmem:[#allocation5 + $0x118] ss:$136 sps:$4 sm:$0xff]  }
  0x6c   :  { %5056 = vmatpush1.bf16.msra.mxu1 %v10413_v23  ;;  %v10468_v60 = vld [vmem:[#allocation5 + $0xaa0] ss:$136 sps:$4 sm:$0xff]   ;;  %v10473_v63 = vld [vmem:[#allocation5 + $0xc] ss:$136 sps:$4 sm:$0xff]   ;;  %v10474_v1 = vld [vmem:[#allocation5 + $0x990] ss:$136 sps:$4 sm:$0xff]  }
  0x6d   :  { %5057 = vmatprep.subr.bf16.mxu1 %v10416_v24  ;;  %v10475_v2 = vld [vmem:[#allocation5 + $0x884] ss:$136 sps:$4 sm:$0xff]   ;;  %v10471_v3 = vld [vmem:[#allocation5 + $0x8] ss:$136 sps:$4 sm:$0xff]   ;;  %v10477_v9 = vld [vmem:[#allocation5 + $0xff8] ss:$136 sps:$4 sm:$0xff]  }
  0x6e   :  { %5015 = vmatpush1.bf16.msra.mxu0 %v10418_v25  ;;  %v866_v4 = vld [vmem:[#allocation5 + $0x1768] sm:$0xff]  ;;  %v10479_v5 = vld [vmem:[#allocation5 + $0xffc] ss:$136 sps:$4 sm:$0xff]   ;;  %v10491_v16 = vld [vmem:[#allocation5 + $0x1658] ss:$136 sps:$4 sm:$0xff]   ;;  %s12203_s15 = scalar_lea.vmem %s9143_s6, 128 }
  0x6f   :  { %5016 = vmatprep.subr.bf16.mxu0 %v10420_v26  ;;  %v10480_v6 = vld [vmem:[#allocation5 + $0x880] ss:$136 sps:$4 sm:$0xff]   ;;  %v9908_v7 = vcombine.high %v866_v4, %v866_v4  ;;  %v9907_v8 = vcombine.low %v866_v4, %v866_v4  ;;  %v10485_v11 = vld [vmem:[#allocation5 + $0xeec] ss:$136 sps:$4 sm:$0xff]   ;;  %v10493_v13 = vld [vmem:[#allocation5 + $0x165c] ss:$136 sps:$4 sm:$0xff]   ;;  %p12204_p7 = scmp.ne.s32.totalorder %s9143_s6, %s12203_s15  ;;  %p12209_p9 = scmp.lt.s32.totalorder %s12203_s15, %s12203_s15 }
  0x70   :  { %5058 = vmatpush1.bf16.msra.mxu1 %v10419_v27  ;;  %v10483_v14 = vld [vmem:[#allocation5 + $0xee8] ss:$136 sps:$4 sm:$0xff]   ;;  %v10490_v15 = vld [vmem:[#allocation5 + $0xddc] ss:$136 sps:$4 sm:$0xff]   ;;  %v10499_v17 = vld [vmem:[#allocation5 + $0x154c] ss:$136 sps:$4 sm:$0xff]  }
  0x71   :  { %5059 = vmatprep.subr.bf16.mxu1 %v10422_v28  ;;  %v4909_v12 = vsel %vm4901_vm0, %v9907_v8, 0  ;;  %v10488_v18 = vld [vmem:[#allocation5 + $0xdd8] ss:$136 sps:$4 sm:$0xff]   ;;  %v10496_v19 = vld [vmem:[#allocation5 + $0xccc] ss:$136 sps:$4 sm:$0xff]   ;;  %p12210_p10 = por %p12209_p9, %p12208_p8 }
  0x72   :  { %5017 = vmatpush1.bf16.msra.mxu0 %v10424_v29  ;;  %v10497_v20 = vld [vmem:[#allocation5 + $0x1548] ss:$136 sps:$4 sm:$0xff]   ;;  %v10505_v21 = vld [vmem:[#allocation5 + $0x143c] ss:$136 sps:$4 sm:$0xff]   ;;  %v10503_v24 = vld [vmem:[#allocation5 + $0x1438] ss:$136 sps:$4 sm:$0xff]  }
  0x73   :  { %5018 = vmatprep.subr.bf16.mxu0 %v10426_v30  ;;  %v10494_v22 = vld [vmem:[#allocation5 + $0xcc8] ss:$136 sps:$4 sm:$0xff]   ;;  %v10502_v23 = vld [vmem:[#allocation5 + $0xbbc] ss:$136 sps:$4 sm:$0xff]   ;;  %v10511_v25 = vld [vmem:[#allocation5 + $0x132c] ss:$136 sps:$4 sm:$0xff]   ;;  %p12211_p11 = pnand %p12210_p10, %p12204_p7 }
  0x74   :  { %5060 = vmatpush1.bf16.msra.mxu1 %v10425_v31  ;;  %v10500_v26 = vld [vmem:[#allocation5 + $0xbb8] ss:$136 sps:$4 sm:$0xff]   ;;  %v10508_v27 = vld [vmem:[#allocation5 + $0xaac] ss:$136 sps:$4 sm:$0xff]   ;;  %v10509_v28 = vld [vmem:[#allocation5 + $0x1328] ss:$136 sps:$4 sm:$0xff]  }
  0x75   :  { %5086 = vmatprep.subr.bf16.mxu1 %v10431_v32  ;;  %v10517_v29 = vld [vmem:[#allocation5 + $0x121c] ss:$136 sps:$4 sm:$0xff]   ;;  %v10506_v30 = vld [vmem:[#allocation5 + $0xaa8] ss:$136 sps:$4 sm:$0xff]   ;;  %v10515_v32 = vld [vmem:[#allocation5 + $0x1218] ss:$136 sps:$4 sm:$0xff]  }
  0x76   :  { %5019 = vmatpush1.bf16.msra.mxu0 %v10432_v33  ;;  %v10514_v31 = vld [vmem:[#allocation5 + $0x99c] ss:$136 sps:$4 sm:$0xff]   ;;  %v10523_v33 = vld [vmem:[#allocation5 + $0x110c] ss:$136 sps:$4 sm:$0xff]  }
  0x77   :  { %9940 = vmatmul.mubr.msk.bf16.vlgmr.msra.gmra.mxu1 %vm4897_vm1, %v12312_v34  ;;  %5020 = vmatprep.subr.bf16.mxu0 %v10433_v35  ;;  %v10512_v35 = vld [vmem:[#allocation5 + $0x998] ss:$136 sps:$4 sm:$0xff]   ;;  %v10540_v50 = vld [vmem:[#allocation5 + $0x1554] ss:$136 sps:$4 sm:$0xff]  }
  0x78   :  { %5087 = vmatpush1.bf16.msra.mxu1 %v10429_v36  ;;  %5118 = vmatprep.mubr.bf16.mxu1 %v12316_v52  ;;  %v10520_v36 = vld [vmem:[#allocation5 + $0x88c] ss:$136 sps:$4 sm:$0xff]  }
  0x79   :  { %5088 = vmatprep.subr.bf16.mxu1 %v10437_v37  ;;  %v10521_v37 = vld [vmem:[#allocation5 + $0x1108] ss:$136 sps:$4 sm:$0xff]   ;;  %v10564_v4 = vld [vmem:[#allocation5 + $0x1114] ss:$136 sps:$4 sm:$0xff]  }
  0x7a   :  { %5021 = vmatpush2.bf16.msra.mxu0 %v10438_v38  ;;  %v867_v38 = vld [vmem:[#allocation5 + $0x1770] sm:$0xff] }
  0x7b   :  { %5022 = vmatprep.subr.bf16.mxu0 %v10439_v39  ;;  %v10526_v39 = vld [vmem:[#allocation5 + $0x784] ss:$136 sps:$4 sm:$0xff]  }
  0x7c   :  { %5089 = vmatpush1.bf16.msra.mxu1 %v10435_v40  ;;  %v10518_v40 = vld [vmem:[#allocation5 + $0x888] ss:$136 sps:$4 sm:$0xff]   ;;  %v10570_v8 = vld [vmem:[#allocation5 + $0x78c] ss:$136 sps:$4 sm:$0xff]  }
  0x7d   :  { %5090 = vmatprep.subr.bf16.mxu1 %v10443_v41  ;;  %v9910_v41 = vcombine.high %v867_v38, %v867_v38 }
  0x7e   :  { %5023 = vmatpush2.bf16.msra.mxu0 %v10444_v42  ;;  %v9909_v42 = vcombine.low %v867_v38, %v867_v38  ;;  %v10607_v38 = vld [vmem:[#allocation5 + $0x9a0] ss:$136 sps:$4 sm:$0xff]  }
  0x7f   :  { %5024 = vmatprep.subr.bf16.mxu0 %v10445_v43  ;;  %v10524_v43 = vld [vmem:[#allocation5 + $0x780] ss:$136 sps:$4 sm:$0xff]  }
  0x80   :  { %5091 = vmatpush1.bf16.msra.mxu1 %v10441_v44  ;;  %v10531_v44 = vld [vmem:[#allocation5 + $0x674] ss:$136 sps:$4 sm:$0xff]  }
  0x81   :  { %5092 = vmatprep.subr.bf16.mxu1 %v10449_v45  ;;  %v4915_v45 = vsel %vm4901_vm0, %v9909_v42, 0  ;;  %v10618_v42 = vld [vmem:[#allocation5 + $0x100c] ss:$136 sps:$4 sm:$0xff]  }
  0x82   :  { %5025 = vmatpush2.bf16.msra.mxu0 %v10450_v46  ;;  %v10534_v46 = vld [vmem:[#allocation5 + $0x1664] ss:$136 sps:$4 sm:$0xff]  }
  0x83   :  { %5026 = vmatprep.subr.bf16.mxu0 %v10451_v47  ;;  %v10529_v47 = vld [vmem:[#allocation5 + $0x670] ss:$136 sps:$4 sm:$0xff]  }
  0x84   :  { %5093 = vmatpush1.bf16.msra.mxu1 %v10447_v48  ;;  %v10537_v48 = vld [vmem:[#allocation5 + $0x564] ss:$136 sps:$4 sm:$0xff]  }
  0x85   :  { %5094 = vmatprep.subr.bf16.mxu1 %v10455_v49  ;;  %v10532_v49 = vld [vmem:[#allocation5 + $0x1660] ss:$136 sps:$4 sm:$0xff]  }
  0x86   :  { %5027 = vmatpush2.bf16.msra.mxu0 %v10456_v51  ;;  %v10535_v51 = vld [vmem:[#allocation5 + $0x560] ss:$136 sps:$4 sm:$0xff]  }
  0x87   :  { %5028 = vmatprep.subr.bf16.mxu0 %v10457_v53  ;;  %v10543_v53 = vld [vmem:[#allocation5 + $0x454] ss:$136 sps:$4 sm:$0xff]  }
  0x88   :  { %5095 = vmatpush1.bf16.msra.mxu1 %v10453_v54  ;;  %v10538_v54 = vld [vmem:[#allocation5 + $0x1550] ss:$136 sps:$4 sm:$0xff]  }
  0x89   :  { %5096 = vmatprep.subr.bf16.mxu1 %v10461_v55  ;;  %v10546_v55 = vld [vmem:[#allocation5 + $0x1444] ss:$136 sps:$4 sm:$0xff]  }
  0x8a   :  { %5029 = vmatpush2.bf16.msra.mxu0 %v10462_v56  ;;  %v10541_v56 = vld [vmem:[#allocation5 + $0x450] ss:$136 sps:$4 sm:$0xff]  }
  0x8b   :  { %5030 = vmatprep.subr.bf16.mxu0 %v10463_v57  ;;  %v10549_v57 = vld [vmem:[#allocation5 + $0x344] ss:$136 sps:$4 sm:$0xff]  }
  0x8c   :  { %5097 = vmatpush1.bf16.msra.mxu1 %v10459_v58  ;;  %v10544_v58 = vld [vmem:[#allocation5 + $0x1440] ss:$136 sps:$4 sm:$0xff]  }
  0x8d   :  { %5098 = vmatprep.subr.bf16.mxu1 %v10467_v59  ;;  %v10552_v59 = vld [vmem:[#allocation5 + $0x1334] ss:$136 sps:$4 sm:$0xff]  }
  0x8e   :  { %5031 = vmatpush2.bf16.msra.mxu0 %v10468_v60  ;;  %v10547_v60 = vld [vmem:[#allocation5 + $0x340] ss:$136 sps:$4 sm:$0xff]  }
  0x8f   :  { %5032 = vmatprep.subr.bf16.mxu0 %v10469_v61  ;;  %v10555_v61 = vld [vmem:[#allocation5 + $0x234] ss:$136 sps:$4 sm:$0xff]  }
  0x90   :  { %5099 = vmatpush1.bf16.msra.mxu1 %v10465_v62  ;;  %v10550_v62 = vld [vmem:[#allocation5 + $0x1330] ss:$136 sps:$4 sm:$0xff]  }
  0x91   :  { %5100 = vmatprep.subr.bf16.mxu1 %v10473_v63  ;;  %v10558_v63 = vld [vmem:[#allocation5 + $0x1224] ss:$136 sps:$4 sm:$0xff]  }
  0x92   :  { %5033 = vmatpush2.bf16.msra.mxu0 %v10474_v1  ;;  %v10553_v1 = vld [vmem:[#allocation5 + $0x230] ss:$136 sps:$4 sm:$0xff]  }
  0x93   :  { %5034 = vmatprep.subr.bf16.mxu0 %v10475_v2  ;;  %v10561_v2 = vld [vmem:[#allocation5 + $0x124] ss:$136 sps:$4 sm:$0xff]  }
  0x94   :  { %5101 = vmatpush1.bf16.msra.mxu1 %v10471_v3  ;;  %v10556_v3 = vld [vmem:[#allocation5 + $0x1220] ss:$136 sps:$4 sm:$0xff]  }
  0x95   :  { %5102 = vmatprep.subr.bf16.mxu1 %v10479_v5  ;;  %v10559_v5 = vld [vmem:[#allocation5 + $0x120] ss:$136 sps:$4 sm:$0xff]  }
  0x96   :  { %5035 = vmatpush2.bf16.msra.mxu0 %v10480_v6  ;;  %v10567_v6 = vld [vmem:[#allocation5 + $0x14] ss:$136 sps:$4 sm:$0xff]  }
  0x97   :  { %9941 = vmatprep.subr.msk.bf16.mxu0 %vm4901_vm0, %v9908_v7  ;;  %v10562_v7 = vld [vmem:[#allocation5 + $0x1110] ss:$136 sps:$4 sm:$0xff]  }
  0x98   :  { %5103 = vmatpush2.bf16.msra.mxu1 %v10477_v9  ;;  %v10565_v9 = vld [vmem:[#allocation5 + $0x10] ss:$136 sps:$4 sm:$0xff]  }
  0x99   :  { %5037 = vmatmul.mubr.bf16.vlgmr.msra.gmra.mxu0 %v12320_v10  ;;  %5104 = vmatprep.subr.bf16.mxu1 %v10485_v11  ;;  %v10573_v11 = vld [vmem:[#allocation5 + $0x1004] ss:$136 sps:$4 sm:$0xff]  }
  0x9a   :  { %5130 = vmatpush1.bf16.msra.mxu0 %v4909_v12  ;;  %5159 = vmatprep.mubr.bf16.mxu0 %v12246_v0  ;;  %v10568_v12 = vld [vmem:[#allocation5 + $0x788] ss:$136 sps:$4 sm:$0xff]  }
  0x9b   :  { %5131 = vmatprep.subr.bf16.mxu0 %v10493_v13  ;;  %v10576_v13 = vld [vmem:[#allocation5 + $0x67c] ss:$136 sps:$4 sm:$0xff]  }
  0x9c   :  { %5105 = vmatpush2.bf16.msra.mxu1 %v10483_v14  ;;  %v10571_v14 = vld [vmem:[#allocation5 + $0x1000] ss:$136 sps:$4 sm:$0xff]  }
  0x9d   :  { %5106 = vmatprep.subr.bf16.mxu1 %v10490_v15  ;;  %v10579_v15 = vld [vmem:[#allocation5 + $0xef4] ss:$136 sps:$4 sm:$0xff]  }
  0x9e   :  { %5132 = vmatpush1.bf16.msra.mxu0 %v10491_v16  ;;  %v10574_v16 = vld [vmem:[#allocation5 + $0x678] ss:$136 sps:$4 sm:$0xff]  }
  0x9f   :  { %5133 = vmatprep.subr.bf16.mxu0 %v10499_v17  ;;  %v10582_v17 = vld [vmem:[#allocation5 + $0x56c] ss:$136 sps:$4 sm:$0xff]  }
  0xa0   :  { %5107 = vmatpush2.bf16.msra.mxu1 %v10488_v18  ;;  %v10577_v18 = vld [vmem:[#allocation5 + $0xef0] ss:$136 sps:$4 sm:$0xff]  }
  0xa1   :  { %5108 = vmatprep.subr.bf16.mxu1 %v10496_v19  ;;  %v10585_v19 = vld [vmem:[#allocation5 + $0xde4] ss:$136 sps:$4 sm:$0xff]  }
  0xa2   :  { %5134 = vmatpush1.bf16.msra.mxu0 %v10497_v20  ;;  %v10580_v20 = vld [vmem:[#allocation5 + $0x568] ss:$136 sps:$4 sm:$0xff]  }
  0xa3   :  { %5135 = vmatprep.subr.bf16.mxu0 %v10505_v21  ;;  %v10588_v21 = vld [vmem:[#allocation5 + $0x45c] ss:$136 sps:$4 sm:$0xff]  }
  0xa4   :  { %5109 = vmatpush2.bf16.msra.mxu1 %v10494_v22  ;;  %v10583_v22 = vld [vmem:[#allocation5 + $0xde0] ss:$136 sps:$4 sm:$0xff]  }
  0xa5   :  { %5110 = vmatprep.subr.bf16.mxu1 %v10502_v23  ;;  %v10586_v23 = vld [vmem:[#allocation5 + $0x458] ss:$136 sps:$4 sm:$0xff]  }
  0xa6   :  { %5136 = vmatpush1.bf16.msra.mxu0 %v10503_v24  ;;  %v10594_v24 = vld [vmem:[#allocation5 + $0x34c] ss:$136 sps:$4 sm:$0xff]  }
  0xa7   :  { %5137 = vmatprep.subr.bf16.mxu0 %v10511_v25  ;;  %v10589_v25 = vld [vmem:[#allocation5 + $0xcd0] ss:$136 sps:$4 sm:$0xff]  }
  0xa8   :  { %5111 = vmatpush2.bf16.msra.mxu1 %v10500_v26  ;;  %v10597_v26 = vld [vmem:[#allocation5 + $0xbc4] ss:$136 sps:$4 sm:$0xff]  }
  0xa9   :  { %5112 = vmatprep.subr.bf16.mxu1 %v10508_v27  ;;  %v10592_v27 = vld [vmem:[#allocation5 + $0x348] ss:$136 sps:$4 sm:$0xff]  }
  0xaa   :  { %5138 = vmatpush1.bf16.msra.mxu0 %v10509_v28  ;;  %v10600_v28 = vld [vmem:[#allocation5 + $0x23c] ss:$136 sps:$4 sm:$0xff]  }
  0xab   :  { %5139 = vmatprep.subr.bf16.mxu0 %v10517_v29  ;;  %v10595_v29 = vld [vmem:[#allocation5 + $0xbc0] ss:$136 sps:$4 sm:$0xff]  }
  0xac   :  { %5113 = vmatpush2.bf16.msra.mxu1 %v10506_v30  ;;  %v10603_v30 = vld [vmem:[#allocation5 + $0xab4] ss:$136 sps:$4 sm:$0xff]  }
  0xad   :  { %5114 = vmatprep.subr.bf16.mxu1 %v10514_v31  ;;  %v10598_v31 = vld [vmem:[#allocation5 + $0x238] ss:$136 sps:$4 sm:$0xff]  }
  0xae   :  { %5140 = vmatpush1.bf16.msra.mxu0 %v10515_v32  ;;  %v10606_v32 = vld [vmem:[#allocation5 + $0x12c] ss:$136 sps:$4 sm:$0xff]  }
  0xaf   :  { %5141 = vmatprep.subr.bf16.mxu0 %v10523_v33  ;;  %v10601_v33 = vld [vmem:[#allocation5 + $0xab0] ss:$136 sps:$4 sm:$0xff]  }
  0xb0   :  { %5115 = vmatpush2.bf16.msra.mxu1 %v10512_v35  ;;  %v10609_v35 = vld [vmem:[#allocation5 + $0x9a4] ss:$136 sps:$4 sm:$0xff]  }
  0xb1   :  { %5116 = vmatprep.subr.bf16.mxu1 %v10520_v36  ;;  %v10604_v36 = vld [vmem:[#allocation5 + $0x128] ss:$136 sps:$4 sm:$0xff]  }
  0xb2   :  { %5142 = vmatpush1.bf16.msra.mxu0 %v10521_v37  ;;  %v10612_v37 = vld [vmem:[#allocation5 + $0x1c] ss:$136 sps:$4 sm:$0xff]  }
  0xb3   :  { %5168 = vmatprep.subr.bf16.mxu0 %v10526_v39  ;;  %v10610_v39 = vld [vmem:[#allocation5 + $0x18] ss:$136 sps:$4 sm:$0xff]  }
  0xb4   :  { %5117 = vmatpush2.bf16.msra.mxu1 %v10518_v40  ;;  %v10615_v40 = vld [vmem:[#allocation5 + $0x894] ss:$136 sps:$4 sm:$0xff]  }
  0xb5   :  { %9942 = vmatmul.mubr.msk.bf16.vlgmr.msra.gmra.mxu0 %vm4897_vm1, %v12312_v34  ;;  %9943 = vmatprep.subr.msk.bf16.mxu1 %vm4901_vm0, %v9910_v41  ;;  %v868_v41 = vld [vmem:[#allocation5 + $0x1778] sm:$0xff] }
  0xb6   :  { %5169 = vmatpush1.bf16.msra.mxu0 %v10524_v43  ;;  %5200 = vmatprep.mubr.bf16.mxu0 %v12316_v52  ;;  %v10613_v43 = vld [vmem:[#allocation5 + $0x890] ss:$136 sps:$4 sm:$0xff]  }
  0xb7   :  { %5119 = vmatmul.mubr.bf16.vlgmr.msra.gmra.mxu1 %v12320_v10  ;;  %5170 = vmatprep.subr.bf16.mxu0 %v10531_v44  ;;  %v9912_v44 = vcombine.high %v868_v41, %v868_v41 }
  0xb8   :  { %5212 = vmatpush1.bf16.msra.mxu1 %v4915_v45  ;;  %5241 = vmatprep.mubr.bf16.mxu1 %v12246_v0  ;;  %v9911_v45 = vcombine.low %v868_v41, %v868_v41  ;;  %v10700_v41 = vld [vmem:[#allocation5 + $0x1124] ss:$136 sps:$4 sm:$0xff]  }
  0xb9   :  { %5213 = vmatprep.subr.bf16.mxu1 %v10534_v46  ;;  %v10616_v46 = vld [vmem:[#allocation5 + $0x1008] ss:$136 sps:$4 sm:$0xff]  }
  0xba   :  { %5171 = vmatpush1.bf16.msra.mxu0 %v10529_v47  ;;  %v10621_v47 = vld [vmem:[#allocation5 + $0xefc] ss:$136 sps:$4 sm:$0xff]  }
  0xbb   :  { %5172 = vmatprep.subr.bf16.mxu0 %v10537_v48  ;;  %v4921_v48 = vsel %vm4901_vm0, %v9911_v45, 0  ;;  %v10706_v45 = vld [vmem:[#allocation5 + $0x79c] ss:$136 sps:$4 sm:$0xff]  }
  0xbc   :  { %5214 = vmatpush1.bf16.msra.mxu1 %v10532_v49  ;;  %v10629_v49 = vld [vmem:[#allocation5 + $0x166c] ss:$136 sps:$4 sm:$0xff]  }
  0xbd   :  { %5215 = vmatprep.subr.bf16.mxu1 %v10540_v50  ;;  %v10619_v50 = vld [vmem:[#allocation5 + $0xef8] ss:$136 sps:$4 sm:$0xff]  }
  0xbe   :  { %5173 = vmatpush1.bf16.msra.mxu0 %v10535_v51  ;;  %v10626_v51 = vld [vmem:[#allocation5 + $0xdec] ss:$136 sps:$4 sm:$0xff]  }
  0xbf   :  { %5174 = vmatprep.subr.bf16.mxu0 %v10543_v53  ;;  %v10627_v53 = vld [vmem:[#allocation5 + $0x1668] ss:$136 sps:$4 sm:$0xff]  }
  0xc0   :  { %5216 = vmatpush1.bf16.msra.mxu1 %v10538_v54  ;;  %v10635_v54 = vld [vmem:[#allocation5 + $0x155c] ss:$136 sps:$4 sm:$0xff]  }
  0xc1   :  { %5217 = vmatprep.subr.bf16.mxu1 %v10546_v55  ;;  %v10624_v55 = vld [vmem:[#allocation5 + $0xde8] ss:$136 sps:$4 sm:$0xff]  }
  0xc2   :  { %5175 = vmatpush1.bf16.msra.mxu0 %v10541_v56  ;;  %v10632_v56 = vld [vmem:[#allocation5 + $0xcdc] ss:$136 sps:$4 sm:$0xff]  }
  0xc3   :  { %5176 = vmatprep.subr.bf16.mxu0 %v10549_v57  ;;  %v10633_v57 = vld [vmem:[#allocation5 + $0x1558] ss:$136 sps:$4 sm:$0xff]  }
  0xc4   :  { %5218 = vmatpush1.bf16.msra.mxu1 %v10544_v58  ;;  %v10641_v58 = vld [vmem:[#allocation5 + $0x144c] ss:$136 sps:$4 sm:$0xff]  }
  0xc5   :  { %5219 = vmatprep.subr.bf16.mxu1 %v10552_v59  ;;  %v10630_v59 = vld [vmem:[#allocation5 + $0xcd8] ss:$136 sps:$4 sm:$0xff]  }
  0xc6   :  { %5177 = vmatpush1.bf16.msra.mxu0 %v10547_v60  ;;  %v10638_v60 = vld [vmem:[#allocation5 + $0xbcc] ss:$136 sps:$4 sm:$0xff]  }
  0xc7   :  { %5178 = vmatprep.subr.bf16.mxu0 %v10555_v61  ;;  %v10639_v61 = vld [vmem:[#allocation5 + $0x1448] ss:$136 sps:$4 sm:$0xff]  }
  0xc8   :  { %5220 = vmatpush1.bf16.msra.mxu1 %v10550_v62  ;;  %v10647_v62 = vld [vmem:[#allocation5 + $0x133c] ss:$136 sps:$4 sm:$0xff]  }
  0xc9   :  { %5221 = vmatprep.subr.bf16.mxu1 %v10558_v63  ;;  %v10636_v63 = vld [vmem:[#allocation5 + $0xbc8] ss:$136 sps:$4 sm:$0xff]  }
  0xca   :  { %5179 = vmatpush1.bf16.msra.mxu0 %v10553_v1  ;;  %v10644_v1 = vld [vmem:[#allocation5 + $0xabc] ss:$136 sps:$4 sm:$0xff]  }
  0xcb   :  { %5180 = vmatprep.subr.bf16.mxu0 %v10561_v2  ;;  %v10645_v2 = vld [vmem:[#allocation5 + $0x1338] ss:$136 sps:$4 sm:$0xff]  }
  0xcc   :  { %5222 = vmatpush1.bf16.msra.mxu1 %v10556_v3  ;;  %v10653_v3 = vld [vmem:[#allocation5 + $0x122c] ss:$136 sps:$4 sm:$0xff]  }
  0xcd   :  { %5223 = vmatprep.subr.bf16.mxu1 %v10564_v4  ;;  %v10642_v4 = vld [vmem:[#allocation5 + $0xab8] ss:$136 sps:$4 sm:$0xff]  }
  0xce   :  { %5181 = vmatpush1.bf16.msra.mxu0 %v10559_v5  ;;  %v10650_v5 = vld [vmem:[#allocation5 + $0x9ac] ss:$136 sps:$4 sm:$0xff]  }
  0xcf   :  { %5182 = vmatprep.subr.bf16.mxu0 %v10567_v6  ;;  %v10651_v6 = vld [vmem:[#allocation5 + $0x1228] ss:$136 sps:$4 sm:$0xff]  }
  0xd0   :  { %5224 = vmatpush1.bf16.msra.mxu1 %v10562_v7  ;;  %v10659_v7 = vld [vmem:[#allocation5 + $0x111c] ss:$136 sps:$4 sm:$0xff]  }
  0xd1   :  { %5250 = vmatprep.subr.bf16.mxu1 %v10570_v8  ;;  %v10648_v8 = vld [vmem:[#allocation5 + $0x9a8] ss:$136 sps:$4 sm:$0xff]  }
  0xd2   :  { %5183 = vmatpush1.bf16.msra.mxu0 %v10565_v9  ;;  %v10656_v9 = vld [vmem:[#allocation5 + $0x89c] ss:$136 sps:$4 sm:$0xff]  }
  0xd3   :  { %9944 = vmatmul.mubr.msk.bf16.vlgmr.msra.gmra.mxu1 %vm4897_vm1, %v12312_v34  ;;  %5184 = vmatprep.subr.bf16.mxu0 %v10573_v11  ;;  %v10591_v34 = vld [vmem:[#allocation5 + $0xcd4] ss:$136 sps:$4 sm:$0xff]   ;;  %v10657_v11 = vld [vmem:[#allocation5 + $0x1118] ss:$136 sps:$4 sm:$0xff]  }
  0xd4   :  { %5251 = vmatpush1.bf16.msra.mxu1 %v10568_v12  ;;  %5282 = vmatprep.mubr.bf16.mxu1 %v12316_v52  ;;  %v869_v12 = vld [vmem:[#allocation5 + $0x1780] sm:$0xff] }
  0xd5   :  { %5252 = vmatprep.subr.bf16.mxu1 %v10576_v13  ;;  %v10662_v13 = vld [vmem:[#allocation5 + $0x794] ss:$136 sps:$4 sm:$0xff]  }
  0xd6   :  { %5185 = vmatpush2.bf16.msra.mxu0 %v10571_v14  ;;  %v10654_v14 = vld [vmem:[#allocation5 + $0x898] ss:$136 sps:$4 sm:$0xff]  }
  0xd7   :  { %5186 = vmatprep.subr.bf16.mxu0 %v10579_v15  ;;  %v9914_v15 = vcombine.high %v869_v12, %v869_v12 }
  0xd8   :  { %5253 = vmatpush1.bf16.msra.mxu1 %v10574_v16  ;;  %v9913_v16 = vcombine.low %v869_v12, %v869_v12  ;;  %v10742_v12 = vld [vmem:[#allocation5 + $0x13c] ss:$136 sps:$4 sm:$0xff]  }
  0xd9   :  { %5254 = vmatprep.subr.bf16.mxu1 %v10582_v17  ;;  %v10660_v17 = vld [vmem:[#allocation5 + $0x790] ss:$136 sps:$4 sm:$0xff]  }
  0xda   :  { %5187 = vmatpush2.bf16.msra.mxu0 %v10577_v18  ;;  %v10667_v18 = vld [vmem:[#allocation5 + $0x684] ss:$136 sps:$4 sm:$0xff]  }
  0xdb   :  { %5188 = vmatprep.subr.bf16.mxu0 %v10585_v19  ;;  %v12340_v19 = vld [vmem:[#allocation2 + $0x8] ss:$0 sps:$4 sm:$0xff]  }
  0xdc   :  { %5255 = vmatpush1.bf16.msra.mxu1 %v10580_v20  ;;  %v4927_v20 = vsel %vm4901_vm0, %v9913_v16, 0  ;;  %v10743_v16 = vld [vmem:[#allocation5 + $0x9b0] ss:$136 sps:$4 sm:$0xff]  }
  0xdd   :  { %5256 = vmatprep.subr.bf16.mxu1 %v10588_v21  ;;  %v10670_v21 = vld [vmem:[#allocation5 + $0x1674] ss:$136 sps:$4 sm:$0xff]  }
  0xde   :  { %5189 = vmatpush2.bf16.msra.mxu0 %v10583_v22  ;;  %v10665_v22 = vld [vmem:[#allocation5 + $0x680] ss:$136 sps:$4 sm:$0xff]  }
  0xdf   :  { %5190 = vmatprep.subr.bf16.mxu0 %v10591_v34  ;;  %v10673_v34 = vld [vmem:[#allocation5 + $0x574] ss:$136 sps:$4 sm:$0xff]  }
  0xe0   :  { %5257 = vmatpush1.bf16.msra.mxu1 %v10586_v23  ;;  %v10668_v23 = vld [vmem:[#allocation5 + $0x1670] ss:$136 sps:$4 sm:$0xff]  }
  0xe1   :  { %5258 = vmatprep.subr.bf16.mxu1 %v10594_v24  ;;  %v10676_v24 = vld [vmem:[#allocation5 + $0x1564] ss:$136 sps:$4 sm:$0xff]  }
  0xe2   :  { %5191 = vmatpush2.bf16.msra.mxu0 %v10589_v25  ;;  %v10671_v25 = vld [vmem:[#allocation5 + $0x570] ss:$136 sps:$4 sm:$0xff]  }
  0xe3   :  { %5192 = vmatprep.subr.bf16.mxu0 %v10597_v26  ;;  %v10679_v26 = vld [vmem:[#allocation5 + $0x464] ss:$136 sps:$4 sm:$0xff]  }
  0xe4   :  { %5259 = vmatpush1.bf16.msra.mxu1 %v10592_v27  ;;  %v10674_v27 = vld [vmem:[#allocation5 + $0x1560] ss:$136 sps:$4 sm:$0xff]  }
  0xe5   :  { %5260 = vmatprep.subr.bf16.mxu1 %v10600_v28  ;;  %v10682_v28 = vld [vmem:[#allocation5 + $0x1454] ss:$136 sps:$4 sm:$0xff]  }
  0xe6   :  { %5193 = vmatpush2.bf16.msra.mxu0 %v10595_v29  ;;  %v10677_v29 = vld [vmem:[#allocation5 + $0x460] ss:$136 sps:$4 sm:$0xff]  }
  0xe7   :  { %5194 = vmatprep.subr.bf16.mxu0 %v10603_v30  ;;  %v10685_v30 = vld [vmem:[#allocation5 + $0x354] ss:$136 sps:$4 sm:$0xff]  }
  0xe8   :  { %5261 = vmatpush1.bf16.msra.mxu1 %v10598_v31  ;;  %v10680_v31 = vld [vmem:[#allocation5 + $0x1450] ss:$136 sps:$4 sm:$0xff]  }
  0xe9   :  { %5262 = vmatprep.subr.bf16.mxu1 %v10606_v32  ;;  %v10688_v32 = vld [vmem:[#allocation5 + $0x1344] ss:$136 sps:$4 sm:$0xff]  }
  0xea   :  { %5195 = vmatpush2.bf16.msra.mxu0 %v10601_v33  ;;  %v10683_v33 = vld [vmem:[#allocation5 + $0x350] ss:$136 sps:$4 sm:$0xff]  }
  0xeb   :  { %5196 = vmatprep.subr.bf16.mxu0 %v10609_v35  ;;  %v10691_v35 = vld [vmem:[#allocation5 + $0x244] ss:$136 sps:$4 sm:$0xff]  }
  0xec   :  { %5263 = vmatpush1.bf16.msra.mxu1 %v10604_v36  ;;  %v10686_v36 = vld [vmem:[#allocation5 + $0x1340] ss:$136 sps:$4 sm:$0xff]  }
  0xed   :  { %5264 = vmatprep.subr.bf16.mxu1 %v10612_v37  ;;  %v10694_v37 = vld [vmem:[#allocation5 + $0x1234] ss:$136 sps:$4 sm:$0xff]  }
  0xee   :  { %5197 = vmatpush2.bf16.msra.mxu0 %v10607_v38  ;;  %v10689_v38 = vld [vmem:[#allocation5 + $0x240] ss:$136 sps:$4 sm:$0xff]  }
  0xef   :  { %5198 = vmatprep.subr.bf16.mxu0 %v10615_v40  ;;  %v10692_v40 = vld [vmem:[#allocation5 + $0x1230] ss:$136 sps:$4 sm:$0xff]  }
  0xf0   :  { %5265 = vmatpush1.bf16.msra.mxu1 %v10610_v39  ;;  %v10697_v39 = vld [vmem:[#allocation5 + $0x134] ss:$136 sps:$4 sm:$0xff]  }
  0xf1   :  { %5266 = vmatprep.subr.bf16.mxu1 %v10618_v42  ;;  %v10695_v42 = vld [vmem:[#allocation5 + $0x130] ss:$136 sps:$4 sm:$0xff]  }
  0xf2   :  { %5199 = vmatpush2.bf16.msra.mxu0 %v10613_v43  ;;  %v10703_v43 = vld [vmem:[#allocation5 + $0x24] ss:$136 sps:$4 sm:$0xff]  }
  0xf3   :  { %9945 = vmatprep.subr.msk.bf16.mxu0 %vm4901_vm0, %v9912_v44  ;;  %v10698_v44 = vld [vmem:[#allocation5 + $0x1120] ss:$136 sps:$4 sm:$0xff]  }
  0xf4   :  { %5267 = vmatpush2.bf16.msra.mxu1 %v10616_v46  ;;  %v10701_v46 = vld [vmem:[#allocation5 + $0x20] ss:$136 sps:$4 sm:$0xff]  }
  0xf5   :  { %5201 = vmatmul.mubr.bf16.vlgmr.msra.gmra.mxu0 %v12320_v10  ;;  %5268 = vmatprep.subr.bf16.mxu1 %v10621_v47  ;;  %v10709_v47 = vld [vmem:[#allocation5 + $0x1014] ss:$136 sps:$4 sm:$0xff]  }
  0xf6   :  { %5294 = vmatpush1.bf16.msra.mxu0 %v4921_v48  ;;  %5323 = vmatprep.mubr.bf16.mxu0 %v12246_v0  ;;  %v10704_v48 = vld [vmem:[#allocation5 + $0x798] ss:$136 sps:$4 sm:$0xff]  }
  0xf7   :  { %5295 = vmatprep.subr.bf16.mxu0 %v10629_v49  ;;  %v10712_v49 = vld [vmem:[#allocation5 + $0x68c] ss:$136 sps:$4 sm:$0xff]  }
  0xf8   :  { %5269 = vmatpush2.bf16.msra.mxu1 %v10619_v50  ;;  %v10707_v50 = vld [vmem:[#allocation5 + $0x1010] ss:$136 sps:$4 sm:$0xff]  }
  0xf9   :  { %5270 = vmatprep.subr.bf16.mxu1 %v10626_v51  ;;  %v10715_v51 = vld [vmem:[#allocation5 + $0xf04] ss:$136 sps:$4 sm:$0xff]  }
  0xfa   :  { %5296 = vmatpush1.bf16.msra.mxu0 %v10627_v53  ;;  %v10710_v53 = vld [vmem:[#allocation5 + $0x688] ss:$136 sps:$4 sm:$0xff]  }
  0xfb   :  { %5297 = vmatprep.subr.bf16.mxu0 %v10635_v54  ;;  %v10718_v54 = vld [vmem:[#allocation5 + $0x57c] ss:$136 sps:$4 sm:$0xff]  }
  0xfc   :  { %5271 = vmatpush2.bf16.msra.mxu1 %v10624_v55  ;;  %v10713_v55 = vld [vmem:[#allocation5 + $0xf00] ss:$136 sps:$4 sm:$0xff]  }
  0xfd   :  { %5272 = vmatprep.subr.bf16.mxu1 %v10632_v56  ;;  %v10721_v56 = vld [vmem:[#allocation5 + $0xdf4] ss:$136 sps:$4 sm:$0xff]  }
  0xfe   :  { %5298 = vmatpush1.bf16.msra.mxu0 %v10633_v57  ;;  %v10716_v57 = vld [vmem:[#allocation5 + $0x578] ss:$136 sps:$4 sm:$0xff]  }
  0xff   :  { %5299 = vmatprep.subr.bf16.mxu0 %v10641_v58  ;;  %v10724_v58 = vld [vmem:[#allocation5 + $0x46c] ss:$136 sps:$4 sm:$0xff]  }
 0x100   :  { %5273 = vmatpush2.bf16.msra.mxu1 %v10630_v59  ;;  %v10719_v59 = vld [vmem:[#allocation5 + $0xdf0] ss:$136 sps:$4 sm:$0xff]  }
 0x101   :  { %5274 = vmatprep.subr.bf16.mxu1 %v10638_v60 }
 0x102   :  { %5300 = vmatpush1.bf16.msra.mxu0 %v10639_v61  ;;  %v10727_v61 = vld [vmem:[#allocation5 + $0xce4] ss:$136 sps:$4 sm:$0xff]  }
 0x103   :  { %5301 = vmatprep.subr.bf16.mxu0 %v10647_v62  ;;  %v10722_v62 = vld [vmem:[#allocation5 + $0x468] ss:$136 sps:$4 sm:$0xff]  }
 0x104   :  { %5275 = vmatpush2.bf16.msra.mxu1 %v10636_v63 }
 0x105   :  { %5276 = vmatprep.subr.bf16.mxu1 %v10644_v1  ;;  %v10730_v1 = vld [vmem:[#allocation5 + $0x35c] ss:$136 sps:$4 sm:$0xff]  }
 0x106   :  { %5302 = vmatpush1.bf16.msra.mxu0 %v10645_v2  ;;  %v10725_v2 = vld [vmem:[#allocation5 + $0xce0] ss:$136 sps:$4 sm:$0xff]  }
 0x107   :  { %5303 = vmatprep.subr.bf16.mxu0 %v10653_v3 }
 0x108   :  { %5277 = vmatpush2.bf16.msra.mxu1 %v10642_v4  ;;  %v10733_v4 = vld [vmem:[#allocation5 + $0xbd4] ss:$136 sps:$4 sm:$0xff]  }
 0x109   :  { %5278 = vmatprep.subr.bf16.mxu1 %v10650_v5  ;;  %v10728_v5 = vld [vmem:[#allocation5 + $0x358] ss:$136 sps:$4 sm:$0xff]  }
 0x10a   :  { %5304 = vmatpush1.bf16.msra.mxu0 %v10651_v6 }
 0x10b   :  { %5305 = vmatprep.subr.bf16.mxu0 %v10659_v7  ;;  %v10736_v7 = vld [vmem:[#allocation5 + $0x24c] ss:$136 sps:$4 sm:$0xff]  }
 0x10c   :  { %5279 = vmatpush2.bf16.msra.mxu1 %v10648_v8  ;;  %v10731_v8 = vld [vmem:[#allocation5 + $0xbd0] ss:$136 sps:$4 sm:$0xff]  }
 0x10d   :  { %5280 = vmatprep.subr.bf16.mxu1 %v10656_v9  ;;  %v10739_v9 = vld [vmem:[#allocation5 + $0xac4] ss:$136 sps:$4 sm:$0xff]  }
 0x10e   :  { %5306 = vmatpush1.bf16.msra.mxu0 %v10657_v11  ;;  %v10734_v11 = vld [vmem:[#allocation5 + $0x248] ss:$136 sps:$4 sm:$0xff]  }
 0x10f   :  { %5332 = vmatprep.subr.bf16.mxu0 %v10662_v13  ;;  %v10737_v13 = vld [vmem:[#allocation5 + $0xac0] ss:$136 sps:$4 sm:$0xff]  }
 0x110   :  { %5281 = vmatpush2.bf16.msra.mxu1 %v10654_v14  ;;  %v10745_v14 = vld [vmem:[#allocation5 + $0x9b4] ss:$136 sps:$4 sm:$0xff]  }
 0x111   :  { %9946 = vmatmul.mubr.msk.bf16.vlgmr.msra.gmra.mxu0 %vm4897_vm1, %v12340_v19  ;;  %9947 = vmatprep.subr.msk.bf16.mxu1 %vm4901_vm0, %v9914_v15  ;;  %v10740_v15 = vld [vmem:[#allocation5 + $0x138] ss:$136 sps:$4 sm:$0xff]  }
 0x112   :  { %5333 = vmatpush1.bf16.msra.mxu0 %v10660_v17  ;;  %5364 = vmatprep.mubr.bf16.mxu0 %v12316_v52  ;;  %v10748_v17 = vld [vmem:[#allocation5 + $0x2c] ss:$136 sps:$4 sm:$0xff]  }
 0x113   :  { %5283 = vmatmul.mubr.bf16.vlgmr.msra.gmra.mxu1 %v12320_v10  ;;  %5334 = vmatprep.subr.bf16.mxu0 %v10667_v18  ;;  %v10751_v18 = vld [vmem:[#allocation5 + $0x8a4] ss:$136 sps:$4 sm:$0xff]  }
 0x114   :  { %5376 = vmatpush1.bf16.msra.mxu1 %v4927_v20  ;;  %5405 = vmatprep.mubr.bf16.mxu1 %v12246_v0  ;;  %v10746_v20 = vld [vmem:[#allocation5 + $0x28] ss:$136 sps:$4 sm:$0xff]  }
 0x115   :  { %5377 = vmatprep.subr.bf16.mxu1 %v10670_v21  ;;  %v10749_v21 = vld [vmem:[#allocation5 + $0x8a0] ss:$136 sps:$4 sm:$0xff]  }
 0x116   :  { %5335 = vmatpush1.bf16.msra.mxu0 %v10665_v22  ;;  %v870_v22 = vld [vmem:[#allocation5 + $0x1788] sm:$0xff] }
 0x117   :  { %5336 = vmatprep.subr.bf16.mxu0 %v10673_v34  ;;  %v10754_v34 = vld [vmem:[#allocation5 + $0x101c] ss:$136 sps:$4 sm:$0xff]  }
 0x118   :  { %5378 = vmatpush1.bf16.msra.mxu1 %v10668_v23  ;;  %v892_v23 = vlaneseq }
 0x119   :  { %5379 = vmatprep.subr.bf16.mxu1 %v10676_v24  ;;  %v9916_v24 = vcombine.high %v870_v22, %v870_v22 }
 0x11a   :  { %5337 = vmatpush1.bf16.msra.mxu0 %v10671_v25  ;;  %v9915_v25 = vcombine.low %v870_v22, %v870_v22 }
 0x11b   :  { %5338 = vmatprep.subr.bf16.mxu0 %v10679_v26  ;;  %v10752_v26 = vld [vmem:[#allocation5 + $0x1018] ss:$136 sps:$4 sm:$0xff]  }
 0x11c   :  { %5380 = vmatpush1.bf16.msra.mxu1 %v10674_v27  ;;  %v10757_v27 = vld [vmem:[#allocation5 + $0xf0c] ss:$136 sps:$4 sm:$0xff]  }
 0x11d   :  { %5381 = vmatprep.subr.bf16.mxu1 %v10682_v28  ;;  %v10765_v28 = vld [vmem:[#allocation5 + $0x167c] ss:$136 sps:$4 sm:$0xff]  }
 0x11e   :  { %5339 = vmatpush1.bf16.msra.mxu0 %v10677_v29  ;;  %v10755_v29 = vld [vmem:[#allocation5 + $0xf08] ss:$136 sps:$4 sm:$0xff]  }
 0x11f   :  { %5340 = vmatprep.subr.bf16.mxu0 %v10685_v30  ;;  %v12356_v30 = vshrl.u32 %v892_v23, 7 }
 0x120   :  { %5382 = vmatpush1.bf16.msra.mxu1 %v10680_v31  ;;  %v4933_v31 = vsel %vm4901_vm0, %v9915_v25, 0 }
 0x121   :  { %5383 = vmatprep.subr.bf16.mxu1 %v10688_v32  ;;  %v10762_v32 = vld [vmem:[#allocation5 + $0xdfc] ss:$136 sps:$4 sm:$0xff]   ;;  %v12391_v22 = vsub.s32 3, %v12356_v30 }
 0x122   :  { %5341 = vmatpush1.bf16.msra.mxu0 %v10683_v33  ;;  %v10763_v33 = vld [vmem:[#allocation5 + $0x1678] ss:$136 sps:$4 sm:$0xff]  }
 0x123   :  { %5342 = vmatprep.subr.bf16.mxu0 %v10691_v35  ;;  %v12361_v35 = vld [vmem:[#allocation7] sm:$0xff] }
 0x124   :  { %5384 = vmatpush1.bf16.msra.mxu1 %v10686_v36  ;;  %v12364_v36 = vsub.s32 0, %v12356_v30 }
 0x125   :  { %5385 = vmatprep.subr.bf16.mxu1 %v10694_v37  ;;  %v10771_v37 = vld [vmem:[#allocation5 + $0x156c] ss:$136 sps:$4 sm:$0xff]  }
 0x126   :  { %5343 = vmatpush1.bf16.msra.mxu0 %v10689_v38  ;;  %v10760_v38 = vld [vmem:[#allocation5 + $0xdf8] ss:$136 sps:$4 sm:$0xff]  }
 0x127   :  { %5344 = vmatprep.subr.bf16.mxu0 %v10697_v39  ;;  %v12368_v39 = vsub.s32 1, %v12356_v30 }
 0x128   :  { %5386 = vmatpush1.bf16.msra.mxu1 %v10692_v40  ;;  %v10768_v40 = vld [vmem:[#allocation5 + $0xcec] ss:$136 sps:$4 sm:$0xff]  }
 0x129   :  { %5387 = vmatprep.subr.bf16.mxu1 %v10700_v41  ;;  %v10769_v41 = vld [vmem:[#allocation5 + $0x1568] ss:$136 sps:$4 sm:$0xff]  }
 0x12a   :  { %5345 = vmatpush1.bf16.msra.mxu0 %v10695_v42  ;;  %v895_v42 = vrot.slane %v12361_v35, %v12364_v36 }
 0x12b   :  { %5346 = vmatprep.subr.bf16.mxu0 %v10703_v43  ;;  %v10777_v43 = vld [vmem:[#allocation5 + $0x145c] ss:$136 sps:$4 sm:$0xff]  }
 0x12c   :  { %5388 = vmatpush1.bf16.msra.mxu1 %v10698_v44  ;;  %v10766_v44 = vld [vmem:[#allocation5 + $0xce8] ss:$136 sps:$4 sm:$0xff]  }
 0x12d   :  { %5414 = vmatprep.subr.bf16.mxu1 %v10706_v45  ;;  %v899_v45 = vrot.slane %v12361_v35, %v12368_v39 }
 0x12e   :  { %5347 = vmatpush1.bf16.msra.mxu0 %v10701_v46 }
 0x12f   :  { %9948 = vmatmul.mubr.msk.bf16.vlgmr.msra.gmra.mxu1 %vm4897_vm1, %v12340_v19  ;;  %5348 = vmatprep.subr.bf16.mxu0 %v10709_v47  ;;  %v10774_v47 = vld [vmem:[#allocation5 + $0xbdc] ss:$136 sps:$4 sm:$0xff]  }
 0x130   :  { %5415 = vmatpush1.bf16.msra.mxu1 %v10704_v48  ;;  %5446 = vmatprep.mubr.bf16.mxu1 %v12316_v52  ;;  %v10775_v48 = vld [vmem:[#allocation5 + $0x1458] ss:$136 sps:$4 sm:$0xff]  }
 0x131   :  { %5416 = vmatprep.subr.bf16.mxu1 %v10712_v49  ;;  %v10783_v49 = vld [vmem:[#allocation5 + $0x134c] ss:$136 sps:$4 sm:$0xff]  }
 0x132   :  { %5349 = vmatpush2.bf16.msra.mxu0 %v10707_v50 }
 0x133   :  { %5350 = vmatprep.subr.bf16.mxu0 %v10715_v51 }
 0x134   :  { %5417 = vmatpush1.bf16.msra.mxu1 %v10710_v53 }
 0x135   :  { %5418 = vmatprep.subr.bf16.mxu1 %v10718_v54 }
 0x136   :  { %5351 = vmatpush2.bf16.msra.mxu0 %v10713_v55  ;;  %v10772_v55 = vld [vmem:[#allocation5 + $0xbd8] ss:$136 sps:$4 sm:$0xff]  }
 0x137   :  { %v12352_v60 = vpop.f32.mrf.mxu1  ;;  %5352 = vmatprep.subr.bf16.mxu0 %v10721_v56  ;;  %v10780_v56 = vld [vmem:[#allocation5 + $0xacc] ss:$136 sps:$4 sm:$0xff]  }
 0x138   :  { %5419 = vmatpush1.bf16.msra.mxu1 %v10716_v57  ;;  %v10781_v57 = vld [vmem:[#allocation5 + $0x1348] ss:$136 sps:$4 sm:$0xff]  }
 0x139   :  { %v12354_v63 = vpop.f32.mrf.mxu1  ;;  %5420 = vmatprep.subr.bf16.mxu1 %v10724_v58 }
 0x13a   :  { %5353 = vmatpush2.bf16.msra.mxu0 %v10719_v59  ;;  %v10789_v59 = vld [vmem:[#allocation5 + $0x123c] ss:$136 sps:$4 sm:$0xff]  }
 0x13b   :  { %v5083_v3 = vpop.f32.mrf.mxu1  ;;  %5354 = vmatprep.subr.bf16.mxu0 %v10727_v61 }
 0x13c   :  { %5421 = vmatpush1.bf16.msra.mxu1 %v10722_v62  ;;  %v10787_v3 = vld [vmem:[#allocation5 + $0x1238] ss:$136 sps:$4 sm:$0xff]  }
 0x13d   :  { %v5084_v6 = vpop.f32.mrf.mxu1  ;;  %5422 = vmatprep.subr.bf16.mxu1 %v10730_v1  ;;  %v10778_v1 = vld [vmem:[#allocation5 + $0xac8] ss:$136 sps:$4 sm:$0xff]  }
 0x13e   :  { %5355 = vmatpush2.bf16.msra.mxu0 %v10725_v2  ;;  %v10786_v2 = vld [vmem:[#allocation5 + $0x9bc] ss:$136 sps:$4 sm:$0xff]   ;;  %v10793_v6 = vld [vmem:[#allocation5 + $0x1128] ss:$136 sps:$4 sm:$0xff]  }
 0x13f   :  { %5356 = vmatprep.subr.bf16.mxu0 %v10733_v4  ;;  %v10784_v4 = vld [vmem:[#allocation5 + $0x9b8] ss:$136 sps:$4 sm:$0xff]  }
 0x140   :  { %5423 = vmatpush1.bf16.msra.mxu1 %v10728_v5  ;;  %v10792_v5 = vld [vmem:[#allocation5 + $0x8ac] ss:$136 sps:$4 sm:$0xff]  }
 0x141   :  { %5424 = vmatprep.subr.bf16.mxu1 %v10736_v7  ;;  %v10798_v7 = vld [vmem:[#allocation5 + $0x7a4] ss:$136 sps:$4 sm:$0xff]  }
 0x142   :  { %5357 = vmatpush2.bf16.msra.mxu0 %v10731_v8  ;;  %v10790_v8 = vld [vmem:[#allocation5 + $0x8a8] ss:$136 sps:$4 sm:$0xff]  }
 0x143   :  { %5358 = vmatprep.subr.bf16.mxu0 %v10739_v9  ;;  %v10796_v9 = vld [vmem:[#allocation5 + $0x7a0] ss:$136 sps:$4 sm:$0xff]  }
 0x144   :  { %5425 = vmatpush1.bf16.msra.mxu1 %v10734_v11 }
 0x145   :  { %5426 = vmatprep.subr.bf16.mxu1 %v10742_v12 }
 0x146   :  { %5359 = vmatpush2.bf16.msra.mxu0 %v10737_v13  ;;  %v10803_v13 = vld [vmem:[#allocation5 + $0x694] ss:$136 sps:$4 sm:$0xff]  }
 0x147   :  { %5360 = vmatprep.subr.bf16.mxu0 %v10745_v14 }
 0x148   :  { %5427 = vmatpush1.bf16.msra.mxu1 %v10740_v15  ;;  %v10801_v15 = vld [vmem:[#allocation5 + $0x690] ss:$136 sps:$4 sm:$0xff]  }
 0x149   :  { %5428 = vmatprep.subr.bf16.mxu1 %v10748_v17  ;;  %v10809_v17 = vld [vmem:[#allocation5 + $0x584] ss:$136 sps:$4 sm:$0xff]  }
 0x14a   :  { %5361 = vmatpush2.bf16.msra.mxu0 %v10743_v16  ;;  %v10806_v16 = vld [vmem:[#allocation5 + $0x1684] ss:$136 sps:$4 sm:$0xff]  }
 0x14b   :  { %5362 = vmatprep.subr.bf16.mxu0 %v10751_v18  ;;  %v10804_v18 = vld [vmem:[#allocation5 + $0x1680] ss:$136 sps:$4 sm:$0xff]  }
 0x14c   :  { %5429 = vmatpush1.bf16.msra.mxu1 %v10746_v20  ;;  %v12387_v20 = vsub.s32 2, %v12356_v30 }
 0x14d   :  { %5430 = vmatprep.subr.bf16.mxu1 %v10754_v34  ;;  %v10815_v34 = vld [vmem:[#allocation5 + $0x474] ss:$136 sps:$4 sm:$0xff]  }
 0x14e   :  { %5363 = vmatpush2.bf16.msra.mxu0 %v10749_v21  ;;  %v10812_v21 = vld [vmem:[#allocation5 + $0x1574] ss:$136 sps:$4 sm:$0xff]   ;;  %v903_v23 = vrot.slane %v12361_v35, %v12387_v20 }
 0x14f   :  { %9949 = vmatprep.subr.msk.bf16.mxu0 %vm4901_vm0, %v9916_v24  ;;  %v10810_v24 = vld [vmem:[#allocation5 + $0x1570] ss:$136 sps:$4 sm:$0xff]  }
 0x150   :  { %5431 = vmatpush2.bf16.msra.mxu1 %v10752_v26  ;;  %v10813_v26 = vld [vmem:[#allocation5 + $0x470] ss:$136 sps:$4 sm:$0xff]  }
 0x151   :  { %5365 = vmatmul.mubr.bf16.vlgmr.msra.gmra.mxu0 %v12320_v10  ;;  %5432 = vmatprep.subr.bf16.mxu1 %v10757_v27  ;;  %v10818_v27 = vld [vmem:[#allocation5 + $0x1464] ss:$136 sps:$4 sm:$0xff]  }
 0x152   :  { %5458 = vmatpush1.bf16.msra.mxu0 %v4933_v31  ;;  %5487 = vmatprep.mubr.bf16.mxu0 %v12246_v0 }
 0x153   :  { %5459 = vmatprep.subr.bf16.mxu0 %v10765_v28  ;;  %v10821_v28 = vld [vmem:[#allocation5 + $0x364] ss:$136 sps:$4 sm:$0xff]  }
 0x154   :  { %5433 = vmatpush2.bf16.msra.mxu1 %v10755_v29  ;;  %v907_v29 = vrot.slane %v12361_v35, %v12391_v22 }
 0x155   :  { %5434 = vmatprep.subr.bf16.mxu1 %v10762_v32 }
 0x156   :  { %5460 = vmatpush1.bf16.msra.mxu0 %v10763_v33 }
 0x157   :  { %5461 = vmatprep.subr.bf16.mxu0 %v10771_v37  ;;  %v10816_v37 = vld [vmem:[#allocation5 + $0x1460] ss:$136 sps:$4 sm:$0xff]  }
 0x158   :  { %5435 = vmatpush2.bf16.msra.mxu1 %v10760_v38  ;;  %v10819_v38 = vld [vmem:[#allocation5 + $0x360] ss:$136 sps:$4 sm:$0xff]  }
 0x159   :  { %v5038_v46 = vpop.f32.mrf.mxu0  ;;  %5436 = vmatprep.subr.bf16.mxu1 %v10768_v40  ;;  %v10824_v40 = vld [vmem:[#allocation5 + $0x1354] ss:$136 sps:$4 sm:$0xff]  }
 0x15a   :  { %v5039_v50 = vadd.f32 %v5038_v46, %v895_v42  ;;  %5462 = vmatpush1.bf16.msra.mxu0 %v10769_v41 }
 0x15b   :  { %v5040_v51 = vpop.f32.mrf.mxu0  ;;  %5463 = vmatprep.subr.bf16.mxu0 %v10777_v43  ;;  %v10827_v43 = vld [vmem:[#allocation5 + $0x254] ss:$136 sps:$4 sm:$0xff]  }
 0x15c   :  { %v12375_v53 = vadd.f32 %v12352_v60, %v5039_v50  ;;  %5437 = vmatpush2.bf16.msra.mxu1 %v10766_v44  ;;  %v5041_v54 = vadd.f32 %v5040_v51, %v899_v45  ;;  %v10795_v60 = vld [vmem:[#allocation5 + $0x112c] ss:$136 sps:$4 sm:$0xff]   ;;  %v10825_v50 = vld [vmem:[#allocation5 + $0x250] ss:$136 sps:$4 sm:$0xff]  }
 0x15d   :  { %v5042_v58 = vpop.f32.mrf.mxu0  ;;  %5438 = vmatprep.subr.bf16.mxu1 %v10774_v47  ;;  %v10830_v51 = vld [vmem:[#allocation5 + $0x1244] ss:$136 sps:$4 sm:$0xff]  }
 0x15e   :  { %v12378_v61 = vadd.f32 %v12354_v63, %v5041_v54  ;;  %5464 = vmatpush1.bf16.msra.mxu0 %v10775_v48  ;;  %v871_v63 = vld [vmem:[#allocation5 + $0x1790] sm:$0xff] }
 0x15f   :  { %v5043_v62 = vpop.f32.mrf.mxu0  ;;  %5465 = vmatprep.subr.bf16.mxu0 %v10783_v49  ;;  %v9918_v11 = vcombine.high %v871_v63, %v871_v63  ;;  %v9917_v12 = vcombine.low %v871_v63, %v871_v63  ;;  %v10822_v49 = vld [vmem:[#allocation5 + $0x1350] ss:$136 sps:$4 sm:$0xff]   ;;  %v10836_v58 = vld [vmem:[#allocation5 + $0x1134] ss:$136 sps:$4 sm:$0xff]  }
 0x160   :  { %5439 = vmatpush2.bf16.msra.mxu1 %v10772_v55  ;;  %v10833_v55 = vld [vmem:[#allocation5 + $0x144] ss:$136 sps:$4 sm:$0xff]   ;;  %v10834_v62 = vld [vmem:[#allocation5 + $0x1130] ss:$136 sps:$4 sm:$0xff]  }
 0x161   :  { %5440 = vmatprep.subr.bf16.mxu1 %v10780_v56  ;;  %v4939_v14 = vsel %vm4901_vm0, %v9917_v12, 0  ;;  %v10828_v56 = vld [vmem:[#allocation5 + $0x1240] ss:$136 sps:$4 sm:$0xff]  }
 0x162   :  { %5466 = vmatpush1.bf16.msra.mxu0 %v10781_v57  ;;  %v10831_v57 = vld [vmem:[#allocation5 + $0x140] ss:$136 sps:$4 sm:$0xff]  }
 0x163   :  { %5467 = vmatprep.subr.bf16.mxu0 %v10789_v59  ;;  %v10839_v59 = vld [vmem:[#allocation5 + $0x34] ss:$136 sps:$4 sm:$0xff]   ;;  %v10846_v63 = vld [vmem:[#allocation5 + $0x698] ss:$136 sps:$4 sm:$0xff]   ;;  %v10852_v12 = vld [vmem:[#allocation5 + $0x588] ss:$136 sps:$4 sm:$0xff]  }
 0x164   :  { %5441 = vmatpush2.bf16.msra.mxu1 %v10778_v1  ;;  %v10837_v1 = vld [vmem:[#allocation5 + $0x30] ss:$136 sps:$4 sm:$0xff]  }
 0x165   :  { %5442 = vmatprep.subr.bf16.mxu1 %v10786_v2  ;;  %v10842_v2 = vld [vmem:[#allocation5 + $0x7ac] ss:$136 sps:$4 sm:$0xff]  }
 0x166   :  { %5468 = vmatpush1.bf16.msra.mxu0 %v10787_v3  ;;  %v10840_v3 = vld [vmem:[#allocation5 + $0x7a8] ss:$136 sps:$4 sm:$0xff]  }
 0x167   :  { %5469 = vmatprep.subr.bf16.mxu0 %v10795_v60  ;;  %v10845_v60 = vld [vmem:[#allocation5 + $0x1024] ss:$136 sps:$4 sm:$0xff]  }
 0x168   :  { %5443 = vmatpush2.bf16.msra.mxu1 %v10784_v4  ;;  %v10843_v4 = vld [vmem:[#allocation5 + $0x1020] ss:$136 sps:$4 sm:$0xff]  }
 0x169   :  { %5444 = vmatprep.subr.bf16.mxu1 %v10792_v5  ;;  %v10848_v5 = vld [vmem:[#allocation5 + $0x69c] ss:$136 sps:$4 sm:$0xff]  }
 0x16a   :  { %5470 = vmatpush1.bf16.msra.mxu0 %v10793_v6  ;;  %v10851_v6 = vld [vmem:[#allocation5 + $0xf14] ss:$136 sps:$4 sm:$0xff]  }
 0x16b   :  { %5496 = vmatprep.subr.bf16.mxu0 %v10798_v7  ;;  %v12401_v7 = vld [vmem:[#allocation2 + $0x8] ss:$0 sps:$4 sm:$0xff]  }
 0x16c   :  { %5445 = vmatpush2.bf16.msra.mxu1 %v10790_v8  ;;  %v10849_v8 = vld [vmem:[#allocation5 + $0xf10] ss:$136 sps:$4 sm:$0xff]  }
 0x16d   :  { %9950 = vmatmul.mubr.msk.bf16.vlgmr.msra.gmra.mxu0 %vm4897_vm1, %v12340_v19  ;;  %9951 = vmatprep.subr.msk.bf16.mxu1 %vm4901_vm0, %v9918_v11  ;;  %v10807_v19 = vld [vmem:[#allocation5 + $0x580] ss:$136 sps:$4 sm:$0xff]   ;;  %v10857_v11 = vld [vmem:[#allocation5 + $0xe04] ss:$136 sps:$4 sm:$0xff]  }
 0x16e   :  { %5497 = vmatpush1.bf16.msra.mxu0 %v10796_v9  ;;  %5528 = vmatprep.mubr.bf16.mxu0 %v12316_v52  ;;  %v10854_v9 = vld [vmem:[#allocation5 + $0x58c] ss:$136 sps:$4 sm:$0xff]  }
 0x16f   :  { %5447 = vmatmul.mubr.bf16.vlgmr.msra.gmra.mxu1 %v12320_v10  ;;  %5498 = vmatprep.subr.bf16.mxu0 %v10803_v13  ;;  %v10855_v13 = vld [vmem:[#allocation5 + $0xe00] ss:$136 sps:$4 sm:$0xff]  }
 0x170   :  { %5540 = vmatpush1.bf16.msra.mxu1 %v4939_v14  ;;  %5569 = vmatprep.mubr.bf16.mxu1 %v12246_v0  ;;  %v10860_v14 = vld [vmem:[#allocation5 + $0x47c] ss:$136 sps:$4 sm:$0xff]  }
 0x171   :  { %5541 = vmatprep.subr.bf16.mxu1 %v10806_v16 }
 0x172   :  { %5499 = vmatpush1.bf16.msra.mxu0 %v10801_v15  ;;  %v10863_v15 = vld [vmem:[#allocation5 + $0xcf4] ss:$136 sps:$4 sm:$0xff]  }
 0x173   :  { %5500 = vmatprep.subr.bf16.mxu0 %v10809_v17  ;;  %v10858_v17 = vld [vmem:[#allocation5 + $0x478] ss:$136 sps:$4 sm:$0xff]  }
 0x174   :  { %5542 = vmatpush1.bf16.msra.mxu1 %v10804_v18 }
 0x175   :  { %v5161_v25 = vpop.f32.mrf.mxu0  ;;  %5543 = vmatprep.subr.bf16.mxu1 %v10812_v21  ;;  %v10866_v21 = vld [vmem:[#allocation5 + $0x36c] ss:$136 sps:$4 sm:$0xff]  }
 0x176   :  { %5501 = vmatpush1.bf16.msra.mxu0 %v10807_v19  ;;  %v10861_v19 = vld [vmem:[#allocation5 + $0xcf0] ss:$136 sps:$4 sm:$0xff]  }
 0x177   :  { %v5120_v31 = vpop.f32.mrf.mxu1  ;;  %v5163_v32 = vpop.f32.mrf.mxu0  ;;  %5502 = vmatprep.subr.bf16.mxu0 %v10815_v34  ;;  %v10869_v34 = vld [vmem:[#allocation5 + $0xbe4] ss:$136 sps:$4 sm:$0xff]  }
 0x178   :  { %v5121_v33 = vadd.f32 %v5120_v31, %v903_v23  ;;  %5544 = vmatpush1.bf16.msra.mxu1 %v10810_v24  ;;  %v10864_v24 = vld [vmem:[#allocation5 + $0x368] ss:$136 sps:$4 sm:$0xff]  }
 0x179   :  { %v5122_v41 = vpop.f32.mrf.mxu1  ;;  %v5165_v42 = vpop.f32.mrf.mxu0  ;;  %5545 = vmatprep.subr.bf16.mxu1 %v10818_v27  ;;  %v10873_v31 = vld [vmem:[#allocation5 + $0xad0] ss:$136 sps:$4 sm:$0xff]  }
 0x17a   :  { %v12397_v44 = vadd.f32 %v5161_v25, %v5121_v33  ;;  %v5123_v45 = vadd.f32 %v5122_v41, %v907_v29  ;;  %5503 = vmatpush1.bf16.msra.mxu0 %v10813_v26  ;;  %v10867_v25 = vld [vmem:[#allocation5 + $0xbe0] ss:$136 sps:$4 sm:$0xff]   ;;  %v10872_v26 = vld [vmem:[#allocation5 + $0x25c] ss:$136 sps:$4 sm:$0xff]  }
 0x17b   :  { %v5124_v46 = vpop.f32.mrf.mxu1  ;;  %v5166_v47 = vpop.f32.mrf.mxu0  ;;  %5504 = vmatprep.subr.bf16.mxu0 %v10821_v28  ;;  %v10875_v28 = vld [vmem:[#allocation5 + $0xad4] ss:$136 sps:$4 sm:$0xff]   ;;  %v10870_v29 = vld [vmem:[#allocation5 + $0x258] ss:$136 sps:$4 sm:$0xff]   ;;  %v10881_v33 = vld [vmem:[#allocation5 + $0x9c4] ss:$136 sps:$4 sm:$0xff]  }
 0x17c   :  { %v12399_v48 = vadd.f32 %v5163_v32, %v5123_v45  ;;  %5546 = vmatpush1.bf16.msra.mxu1 %v10816_v37  ;;  %v10878_v32 = vld [vmem:[#allocation5 + $0x14c] ss:$136 sps:$4 sm:$0xff]   ;;  %v10876_v37 = vld [vmem:[#allocation5 + $0x148] ss:$136 sps:$4 sm:$0xff]   ;;  %v10882_v42 = vld [vmem:[#allocation5 + $0x38] ss:$136 sps:$4 sm:$0xff]  }
 0x17d   :  { %v5125_v54 = vpop.f32.mrf.mxu1  ;;  %5547 = vmatprep.subr.bf16.mxu1 %v10824_v40  ;;  %v10884_v40 = vld [vmem:[#allocation5 + $0x3c] ss:$136 sps:$4 sm:$0xff]   ;;  %v10890_v46 = vld [vmem:[#allocation5 + $0x102c] ss:$136 sps:$4 sm:$0xff]  }
 0x17e   :  { %5505 = vmatpush1.bf16.msra.mxu0 %v10819_v38  ;;  %v10879_v38 = vld [vmem:[#allocation5 + $0x9c0] ss:$136 sps:$4 sm:$0xff]   ;;  %v10887_v41 = vld [vmem:[#allocation5 + $0x8b4] ss:$136 sps:$4 sm:$0xff]  }
 0x17f   :  { %5506 = vmatprep.subr.bf16.mxu0 %v10827_v43  ;;  %v10885_v43 = vld [vmem:[#allocation5 + $0x8b0] ss:$136 sps:$4 sm:$0xff]   ;;  %v10901_v54 = vld [vmem:[#allocation5 + $0x168c] ss:$136 sps:$4 sm:$0xff]  }
 0x180   :  { %5548 = vmatpush1.bf16.msra.mxu1 %v10822_v49  ;;  %v872_v45 = vld [vmem:[#allocation5 + $0x1798] sm:$0xff] }
 0x181   :  { %5549 = vmatprep.subr.bf16.mxu1 %v10830_v51  ;;  %v9920_v47 = vcombine.high %v872_v45, %v872_v45  ;;  %v9919_v49 = vcombine.low %v872_v45, %v872_v45  ;;  %v10893_v51 = vld [vmem:[#allocation5 + $0xf1c] ss:$136 sps:$4 sm:$0xff]   ;;  %v10937_v45 = vld [vmem:[#allocation5 + $0x6a0] ss:$136 sps:$4 sm:$0xff]  }
 0x182   :  { %5507 = vmatpush1.bf16.msra.mxu0 %v10825_v50  ;;  %v10888_v50 = vld [vmem:[#allocation5 + $0x1028] ss:$136 sps:$4 sm:$0xff]  }
 0x183   :  { %5508 = vmatprep.subr.bf16.mxu0 %v10833_v55  ;;  %v4945_v55 = vsel %vm4901_vm0, %v9919_v49, 0  ;;  %v10940_v49 = vld [vmem:[#allocation5 + $0x1690] ss:$136 sps:$4 sm:$0xff]  }
 0x184   :  { %5550 = vmatpush1.bf16.msra.mxu1 %v10828_v56  ;;  %v10891_v56 = vld [vmem:[#allocation5 + $0xf18] ss:$136 sps:$4 sm:$0xff]  }
 0x185   :  { %5551 = vmatprep.subr.bf16.mxu1 %v10836_v58  ;;  %v10899_v58 = vld [vmem:[#allocation5 + $0x1688] ss:$136 sps:$4 sm:$0xff]  }
 0x186   :  { %5509 = vmatpush1.bf16.msra.mxu0 %v10831_v57  ;;  %v10898_v57 = vld [vmem:[#allocation5 + $0xe0c] ss:$136 sps:$4 sm:$0xff]  }
 0x187   :  { %5510 = vmatprep.subr.bf16.mxu0 %v10839_v59  ;;  %v12414_v59 = vsub.s32 4, %v12356_v30 }
 0x188   :  { %5552 = vmatpush1.bf16.msra.mxu1 %v10834_v62  ;;  %v10907_v62 = vld [vmem:[#allocation5 + $0x157c] ss:$136 sps:$4 sm:$0xff]  }
 0x189   :  { %5578 = vmatprep.subr.bf16.mxu1 %v10842_v2  ;;  %v12418_v2 = vsub.s32 5, %v12356_v30 }
 0x18a   :  { %5511 = vmatpush1.bf16.msra.mxu0 %v10837_v1  ;;  %v10896_v1 = vld [vmem:[#allocation5 + $0xe08] ss:$136 sps:$4 sm:$0xff]  }
 0x18b   :  { %9952 = vmatmul.mubr.msk.bf16.vlgmr.msra.gmra.mxu1 %vm4897_vm1, %v12401_v7  ;;  %5512 = vmatprep.subr.bf16.mxu0 %v10845_v60  ;;  %v10905_v60 = vld [vmem:[#allocation5 + $0x1578] ss:$136 sps:$4 sm:$0xff]  }
 0x18c   :  { %5579 = vmatpush1.bf16.msra.mxu1 %v10840_v3  ;;  %5610 = vmatprep.mubr.bf16.mxu1 %v12316_v52  ;;  %v10904_v3 = vld [vmem:[#allocation5 + $0xcfc] ss:$136 sps:$4 sm:$0xff]  }
 0x18d   :  { %5580 = vmatprep.subr.bf16.mxu1 %v10848_v5  ;;  %v10913_v5 = vld [vmem:[#allocation5 + $0x146c] ss:$136 sps:$4 sm:$0xff]  }
 0x18e   :  { %5513 = vmatpush2.bf16.msra.mxu0 %v10843_v4  ;;  %v911_v4 = vrot.slane %v12361_v35, %v12414_v59 }
 0x18f   :  { %5514 = vmatprep.subr.bf16.mxu0 %v10851_v6  ;;  %v10902_v6 = vld [vmem:[#allocation5 + $0xcf8] ss:$136 sps:$4 sm:$0xff]  }
 0x190   :  { %5581 = vmatpush1.bf16.msra.mxu1 %v10846_v63  ;;  %v915_v63 = vrot.slane %v12361_v35, %v12418_v2  ;;  %v10925_v35 = vld [vmem:[#allocation5 + $0x124c] ss:$136 sps:$4 sm:$0xff]  }
 0x191   :  { %5582 = vmatprep.subr.bf16.mxu1 %v10854_v9  ;;  %v10910_v9 = vld [vmem:[#allocation5 + $0xbec] ss:$136 sps:$4 sm:$0xff]  }
 0x192   :  { %5515 = vmatpush2.bf16.msra.mxu0 %v10849_v8 }
 0x193   :  { %v12406_v16 = vpop.f32.mrf.mxu1  ;;  %5516 = vmatprep.subr.bf16.mxu0 %v10857_v11  ;;  %v10911_v11 = vld [vmem:[#allocation5 + $0x1468] ss:$136 sps:$4 sm:$0xff]  }
 0x194   :  { %5583 = vmatpush1.bf16.msra.mxu1 %v10852_v12 }
 0x195   :  { %v12408_v18 = vpop.f32.mrf.mxu1  ;;  %5584 = vmatprep.subr.bf16.mxu1 %v10860_v14 }
 0x196   :  { %5517 = vmatpush2.bf16.msra.mxu0 %v10855_v13  ;;  %v10919_v13 = vld [vmem:[#allocation5 + $0x135c] ss:$136 sps:$4 sm:$0xff]  }
 0x197   :  { %v5247_v23 = vpop.f32.mrf.mxu1  ;;  %5518 = vmatprep.subr.bf16.mxu0 %v10863_v15 }
 0x198   :  { %5585 = vmatpush1.bf16.msra.mxu1 %v10858_v17 }
 0x199   :  { %v5248_v27 = vpop.f32.mrf.mxu1  ;;  %5586 = vmatprep.subr.bf16.mxu1 %v10866_v21  ;;  %v10916_v21 = vld [vmem:[#allocation5 + $0xadc] ss:$136 sps:$4 sm:$0xff]  }
 0x19a   :  { %5519 = vmatpush2.bf16.msra.mxu0 %v10861_v19  ;;  %v10908_v19 = vld [vmem:[#allocation5 + $0xbe8] ss:$136 sps:$4 sm:$0xff]   ;;  %v10922_v27 = vld [vmem:[#allocation5 + $0x9cc] ss:$136 sps:$4 sm:$0xff]  }
 0x19b   :  { %5520 = vmatprep.subr.bf16.mxu0 %v10869_v34  ;;  %v10917_v34 = vld [vmem:[#allocation5 + $0x1358] ss:$136 sps:$4 sm:$0xff]  }
 0x19c   :  { %5587 = vmatpush1.bf16.msra.mxu1 %v10864_v24 }
 0x19d   :  { %5588 = vmatprep.subr.bf16.mxu1 %v10872_v26  ;;  %v10914_v26 = vld [vmem:[#allocation5 + $0xad8] ss:$136 sps:$4 sm:$0xff]  }
 0x19e   :  { %5521 = vmatpush2.bf16.msra.mxu0 %v10867_v25 }
 0x19f   :  { %5522 = vmatprep.subr.bf16.mxu0 %v10875_v28  ;;  %v10923_v28 = vld [vmem:[#allocation5 + $0x1248] ss:$136 sps:$4 sm:$0xff]  }
 0x1a0   :  { %5589 = vmatpush1.bf16.msra.mxu1 %v10870_v29  ;;  %v10920_v29 = vld [vmem:[#allocation5 + $0x9c8] ss:$136 sps:$4 sm:$0xff]  }
 0x1a1   :  { %5590 = vmatprep.subr.bf16.mxu1 %v10878_v32  ;;  %v10929_v32 = vld [vmem:[#allocation5 + $0x1138] ss:$136 sps:$4 sm:$0xff]  }
 0x1a2   :  { %5523 = vmatpush2.bf16.msra.mxu0 %v10873_v31  ;;  %v10928_v31 = vld [vmem:[#allocation5 + $0x8bc] ss:$136 sps:$4 sm:$0xff]  }
 0x1a3   :  { %5524 = vmatprep.subr.bf16.mxu0 %v10881_v33  ;;  %v10934_v33 = vld [vmem:[#allocation5 + $0x7b4] ss:$136 sps:$4 sm:$0xff]  }
 0x1a4   :  { %5591 = vmatpush1.bf16.msra.mxu1 %v10876_v37  ;;  %v10926_v37 = vld [vmem:[#allocation5 + $0x8b8] ss:$136 sps:$4 sm:$0xff]  }
 0x1a5   :  { %5592 = vmatprep.subr.bf16.mxu1 %v10884_v40 }
 0x1a6   :  { %5525 = vmatpush2.bf16.msra.mxu0 %v10879_v38  ;;  %v10932_v38 = vld [vmem:[#allocation5 + $0x7b0] ss:$136 sps:$4 sm:$0xff]  }
 0x1a7   :  { %5526 = vmatprep.subr.bf16.mxu0 %v10887_v41 }
 0x1a8   :  { %5593 = vmatpush1.bf16.msra.mxu1 %v10882_v42  ;;  %v10939_v42 = vld [vmem:[#allocation5 + $0x6a4] ss:$136 sps:$4 sm:$0xff]  }
 0x1a9   :  { %5594 = vmatprep.subr.bf16.mxu1 %v10890_v46  ;;  %v10942_v46 = vld [vmem:[#allocation5 + $0x1694] ss:$136 sps:$4 sm:$0xff]  }
 0x1aa   :  { %5527 = vmatpush2.bf16.msra.mxu0 %v10885_v43 }
 0x1ab   :  { %9953 = vmatprep.subr.msk.bf16.mxu0 %vm4901_vm0, %v9920_v47  ;;  %v10945_v47 = vld [vmem:[#allocation5 + $0x594] ss:$136 sps:$4 sm:$0xff]  }
 0x1ac   :  { %5595 = vmatpush2.bf16.msra.mxu1 %v10888_v50  ;;  %v12437_v50 = vsub.s32 6, %v12356_v30 }
 0x1ad   :  { %5529 = vmatmul.mubr.bf16.vlgmr.msra.gmra.mxu0 %v12320_v10  ;;  %5596 = vmatprep.subr.bf16.mxu1 %v10893_v51  ;;  %v10943_v51 = vld [vmem:[#allocation5 + $0x590] ss:$136 sps:$4 sm:$0xff]  }
 0x1ae   :  { %5622 = vmatpush1.bf16.msra.mxu0 %v4945_v55  ;;  %5651 = vmatprep.mubr.bf16.mxu0 %v12246_v0  ;;  %v12441_v55 = vsub.s32 7, %v12356_v30 }
 0x1af   :  { %5623 = vmatprep.subr.bf16.mxu0 %v10901_v54  ;;  %v10948_v54 = vld [vmem:[#allocation5 + $0x1584] ss:$136 sps:$4 sm:$0xff]  }
 0x1b0   :  { %5597 = vmatpush2.bf16.msra.mxu1 %v10891_v56  ;;  %v10951_v56 = vld [vmem:[#allocation5 + $0x484] ss:$136 sps:$4 sm:$0xff]  }
 0x1b1   :  { %5598 = vmatprep.subr.bf16.mxu1 %v10898_v57  ;;  %v12058_v57 = vld [vmem:[#allocation7] sm:$0xff] }
 0x1b2   :  { %5624 = vmatpush1.bf16.msra.mxu0 %v10899_v58  ;;  %v919_v58 = vrot.slane %v12058_v57, %v12437_v50 }
 0x1b3   :  { %5625 = vmatprep.subr.bf16.mxu0 %v10907_v62  ;;  %v10946_v62 = vld [vmem:[#allocation5 + $0x1580] ss:$136 sps:$4 sm:$0xff]  }
 0x1b4   :  { %5599 = vmatpush2.bf16.msra.mxu1 %v10896_v1 }
 0x1b5   :  { %v5202_v8 = vpop.f32.mrf.mxu0  ;;  %5600 = vmatprep.subr.bf16.mxu1 %v10904_v3  ;;  %v10949_v3 = vld [vmem:[#allocation5 + $0x480] ss:$136 sps:$4 sm:$0xff]  }
 0x1b6   :  { %v5203_v12 = vadd.f32 %v5202_v8, %v911_v4  ;;  %5626 = vmatpush1.bf16.msra.mxu0 %v10905_v60  ;;  %v10954_v60 = vld [vmem:[#allocation5 + $0x1474] ss:$136 sps:$4 sm:$0xff]   ;;  %v10952_v8 = vld [vmem:[#allocation5 + $0x1470] ss:$136 sps:$4 sm:$0xff]  }
 0x1b7   :  { %v5204_v14 = vpop.f32.mrf.mxu0  ;;  %5627 = vmatprep.subr.bf16.mxu0 %v10913_v5  ;;  %v10957_v4 = vld [vmem:[#allocation5 + $0x374] ss:$136 sps:$4 sm:$0xff]   ;;  %v923_v5 = vrot.slane %v12058_v57, %v12441_v55  ;;  %v10999_v57 = vld [vmem:[#allocation5 + $0xd04] ss:$136 sps:$4 sm:$0xff]  }
 0x1b8   :  { %v12425_v15 = vadd.f32 %v12406_v16, %v5203_v12  ;;  %5601 = vmatpush2.bf16.msra.mxu1 %v10902_v6  ;;  %v5205_v17 = vadd.f32 %v5204_v14, %v915_v63  ;;  %v10931_v16 = vld [vmem:[#allocation5 + $0x113c] ss:$136 sps:$4 sm:$0xff]  }
 0x1b9   :  { %v5206_v23 = vpop.f32.mrf.mxu0  ;;  %5602 = vmatprep.subr.bf16.mxu1 %v10910_v9  ;;  %v10955_v9 = vld [vmem:[#allocation5 + $0x370] ss:$136 sps:$4 sm:$0xff]   ;;  %v10963_v14 = vld [vmem:[#allocation5 + $0x264] ss:$136 sps:$4 sm:$0xff]  }
 0x1ba   :  { %v12428_v24 = vadd.f32 %v12408_v18, %v5205_v17  ;;  %5628 = vmatpush1.bf16.msra.mxu0 %v10911_v11  ;;  %v873_v18 = vld [vmem:[#allocation5 + $0x17a0] sm:$0xff] }
 0x1bb   :  { %v5207_v25 = vpop.f32.mrf.mxu0  ;;  %5629 = vmatprep.subr.bf16.mxu0 %v10919_v13  ;;  %v9922_v40 = vcombine.high %v873_v18, %v873_v18  ;;  %v9921_v41 = vcombine.low %v873_v18, %v873_v18  ;;  %v10960_v11 = vld [vmem:[#allocation5 + $0x1364] ss:$136 sps:$4 sm:$0xff]   ;;  %v10973_v18 = vld [vmem:[#allocation5 + $0x40] ss:$136 sps:$4 sm:$0xff]  }
 0x1bc   :  { %5603 = vmatpush2.bf16.msra.mxu1 %v10908_v19  ;;  %v10961_v25 = vld [vmem:[#allocation5 + $0x260] ss:$136 sps:$4 sm:$0xff]  }
 0x1bd   :  { %5604 = vmatprep.subr.bf16.mxu1 %v10916_v21  ;;  %v4951_v43 = vsel %vm4901_vm0, %v9921_v41, 0  ;;  %v10979_v41 = vld [vmem:[#allocation5 + $0x1030] ss:$136 sps:$4 sm:$0xff]  }
 0x1be   :  { %5630 = vmatpush1.bf16.msra.mxu0 %v10917_v34 }
 0x1bf   :  { %5631 = vmatprep.subr.bf16.mxu0 %v10925_v35  ;;  %v10958_v35 = vld [vmem:[#allocation5 + $0x1360] ss:$136 sps:$4 sm:$0xff]  }
 0x1c0   :  { %5605 = vmatpush2.bf16.msra.mxu1 %v10914_v26  ;;  %v10966_v26 = vld [vmem:[#allocation5 + $0x1254] ss:$136 sps:$4 sm:$0xff]  }
 0x1c1   :  { %5606 = vmatprep.subr.bf16.mxu1 %v10922_v27 }
 0x1c2   :  { %5632 = vmatpush1.bf16.msra.mxu0 %v10923_v28  ;;  %v10969_v28 = vld [vmem:[#allocation5 + $0x154] ss:$136 sps:$4 sm:$0xff]  }
 0x1c3   :  { %5633 = vmatprep.subr.bf16.mxu0 %v10931_v16  ;;  %v10964_v16 = vld [vmem:[#allocation5 + $0x1250] ss:$136 sps:$4 sm:$0xff]  }
 0x1c4   :  { %5607 = vmatpush2.bf16.msra.mxu1 %v10920_v29  ;;  %v10967_v29 = vld [vmem:[#allocation5 + $0x150] ss:$136 sps:$4 sm:$0xff]  }
 0x1c5   :  { %5608 = vmatprep.subr.bf16.mxu1 %v10928_v31  ;;  %v10972_v31 = vld [vmem:[#allocation5 + $0x1144] ss:$136 sps:$4 sm:$0xff]  }
 0x1c6   :  { %5634 = vmatpush1.bf16.msra.mxu0 %v10929_v32  ;;  %v10975_v32 = vld [vmem:[#allocation5 + $0x44] ss:$136 sps:$4 sm:$0xff]  }
 0x1c7   :  { %5660 = vmatprep.subr.bf16.mxu0 %v10934_v33  ;;  %v10970_v33 = vld [vmem:[#allocation5 + $0x1140] ss:$136 sps:$4 sm:$0xff]  }
 0x1c8   :  { %5609 = vmatpush2.bf16.msra.mxu1 %v10926_v37  ;;  %v10978_v37 = vld [vmem:[#allocation5 + $0x7bc] ss:$136 sps:$4 sm:$0xff]  }
 0x1c9   :  { %9954 = vmatmul.mubr.msk.bf16.vlgmr.msra.gmra.mxu0 %vm4897_vm1, %v12401_v7  ;;  %9955 = vmatprep.subr.msk.bf16.mxu1 %vm4901_vm0, %v9922_v40  ;;  %v10981_v40 = vld [vmem:[#allocation5 + $0x1034] ss:$136 sps:$4 sm:$0xff]  }
 0x1ca   :  { %5661 = vmatpush1.bf16.msra.mxu0 %v10932_v38  ;;  %5692 = vmatprep.mubr.bf16.mxu0 %v12316_v52  ;;  %v10976_v38 = vld [vmem:[#allocation5 + $0x7b8] ss:$136 sps:$4 sm:$0xff]  }
 0x1cb   :  { %5611 = vmatmul.mubr.bf16.vlgmr.msra.gmra.mxu1 %v12320_v10  ;;  %5662 = vmatprep.subr.bf16.mxu0 %v10939_v42  ;;  %v10984_v42 = vld [vmem:[#allocation5 + $0x6ac] ss:$136 sps:$4 sm:$0xff]  }
 0x1cc   :  { %5704 = vmatpush1.bf16.msra.mxu1 %v4951_v43  ;;  %5733 = vmatprep.mubr.bf16.mxu1 %v12246_v0  ;;  %v10987_v43 = vld [vmem:[#allocation5 + $0xf24] ss:$136 sps:$4 sm:$0xff]  }
 0x1cd   :  { %5705 = vmatprep.subr.bf16.mxu1 %v10942_v46  ;;  %v10985_v46 = vld [vmem:[#allocation5 + $0xf20] ss:$136 sps:$4 sm:$0xff]  }
 0x1ce   :  { %5663 = vmatpush1.bf16.msra.mxu0 %v10937_v45  ;;  %v10982_v45 = vld [vmem:[#allocation5 + $0x6a8] ss:$136 sps:$4 sm:$0xff]  }
 0x1cf   :  { %5664 = vmatprep.subr.bf16.mxu0 %v10945_v47  ;;  %v10990_v47 = vld [vmem:[#allocation5 + $0x59c] ss:$136 sps:$4 sm:$0xff]  }
 0x1d0   :  { %5706 = vmatpush1.bf16.msra.mxu1 %v10940_v49  ;;  %v10993_v49 = vld [vmem:[#allocation5 + $0xe14] ss:$136 sps:$4 sm:$0xff]  }
 0x1d1   :  { %v5325_v1 = vpop.f32.mrf.mxu0  ;;  %5707 = vmatprep.subr.bf16.mxu1 %v10948_v54  ;;  %v10991_v54 = vld [vmem:[#allocation5 + $0xe10] ss:$136 sps:$4 sm:$0xff]  }
 0x1d2   :  { %5665 = vmatpush1.bf16.msra.mxu0 %v10943_v51  ;;  %v10988_v51 = vld [vmem:[#allocation5 + $0x598] ss:$136 sps:$4 sm:$0xff]  }
 0x1d3   :  { %v5284_v6 = vpop.f32.mrf.mxu1  ;;  %v5327_v63 = vpop.f32.mrf.mxu0  ;;  %5666 = vmatprep.subr.bf16.mxu0 %v10951_v56  ;;  %v10996_v56 = vld [vmem:[#allocation5 + $0x48c] ss:$136 sps:$4 sm:$0xff]  }
 0x1d4   :  { %v5285_v30 = vadd.f32 %v5284_v6, %v919_v58  ;;  %5708 = vmatpush1.bf16.msra.mxu1 %v10946_v62  ;;  %v11003_v6 = vld [vmem:[#allocation5 + $0xbf0] ss:$136 sps:$4 sm:$0xff]  }
 0x1d5   :  { %v5286_v12 = vpop.f32.mrf.mxu1  ;;  %v5329_v13 = vpop.f32.mrf.mxu0  ;;  %5709 = vmatprep.subr.bf16.mxu1 %v10954_v60  ;;  %v11005_v60 = vld [vmem:[#allocation5 + $0xbf4] ss:$136 sps:$4 sm:$0xff]  }
 0x1d6   :  { %v12445_v17 = vadd.f32 %v5325_v1, %v5285_v30  ;;  %v5287_v19 = vadd.f32 %v5286_v12, %v923_v5  ;;  %5667 = vmatpush1.bf16.msra.mxu0 %v10949_v3  ;;  %v10997_v1 = vld [vmem:[#allocation5 + $0xd00] ss:$136 sps:$4 sm:$0xff]   ;;  %v11002_v3 = vld [vmem:[#allocation5 + $0x37c] ss:$136 sps:$4 sm:$0xff]  }
 0x1d7   :  { %v5288_v21 = vpop.f32.mrf.mxu1  ;;  %v5330_v34 = vpop.f32.mrf.mxu0  ;;  %5668 = vmatprep.subr.bf16.mxu0 %v10957_v4  ;;  %v11000_v5 = vld [vmem:[#allocation5 + $0x378] ss:$136 sps:$4 sm:$0xff]   ;;  %v11014_v12 = vld [vmem:[#allocation5 + $0x15c] ss:$136 sps:$4 sm:$0xff]  }
 0x1d8   :  { %v12447_v23 = vadd.f32 %v5327_v63, %v5287_v19  ;;  %5710 = vmatpush1.bf16.msra.mxu1 %v10952_v8  ;;  %v11008_v63 = vld [vmem:[#allocation5 + $0x26c] ss:$136 sps:$4 sm:$0xff]   ;;  %v11015_v19 = vld [vmem:[#allocation5 + $0x9d0] ss:$136 sps:$4 sm:$0xff]  }
 0x1d9   :  { %v5289_v27 = vpop.f32.mrf.mxu1  ;;  %5711 = vmatprep.subr.bf16.mxu1 %v10960_v11  ;;  %v11011_v8 = vld [vmem:[#allocation5 + $0xae4] ss:$136 sps:$4 sm:$0xff]   ;;  %v11009_v11 = vld [vmem:[#allocation5 + $0xae0] ss:$136 sps:$4 sm:$0xff]   ;;  %v11017_v13 = vld [vmem:[#allocation5 + $0x9d4] ss:$136 sps:$4 sm:$0xff]  }
 0x1da   :  { %5669 = vmatpush1.bf16.msra.mxu0 %v10955_v9  ;;  %v11006_v9 = vld [vmem:[#allocation5 + $0x268] ss:$136 sps:$4 sm:$0xff]   ;;  %v11020_v21 = vld [vmem:[#allocation5 + $0x4c] ss:$136 sps:$4 sm:$0xff]   ;;  %v11026_v27 = vld [vmem:[#allocation5 + $0x103c] ss:$136 sps:$4 sm:$0xff]  }
 0x1db   :  { %5670 = vmatprep.subr.bf16.mxu0 %v10963_v14  ;;  %v11012_v14 = vld [vmem:[#allocation5 + $0x158] ss:$136 sps:$4 sm:$0xff]   ;;  %v11023_v34 = vld [vmem:[#allocation5 + $0x8c4] ss:$136 sps:$4 sm:$0xff]  }
 0x1dc   :  { %5712 = vmatpush1.bf16.msra.mxu1 %v10958_v35  ;;  %v11018_v35 = vld [vmem:[#allocation5 + $0x48] ss:$136 sps:$4 sm:$0xff]  }
 0x1dd   :  { %5713 = vmatprep.subr.bf16.mxu1 %v10966_v26  ;;  %v874_v26 = vld [vmem:[#allocation5 + $0x17a8] sm:$0xff] }
 0x1de   :  { %5671 = vmatpush1.bf16.msra.mxu0 %v10961_v25  ;;  %v11021_v25 = vld [vmem:[#allocation5 + $0x8c0] ss:$136 sps:$4 sm:$0xff]  }
 0x1df   :  { %5672 = vmatprep.subr.bf16.mxu0 %v10969_v28  ;;  %v9924_v28 = vcombine.high %v874_v26, %v874_v26 }
 0x1e0   :  { %5714 = vmatpush1.bf16.msra.mxu1 %v10964_v16  ;;  %v9923_v16 = vcombine.low %v874_v26, %v874_v26  ;;  %v875_v26 = vld [vmem:[#allocation5 + $0x17b0] sm:$0xff] }
 0x1e1   :  { %5715 = vmatprep.subr.bf16.mxu1 %v10972_v31  ;;  %v11029_v31 = vld [vmem:[#allocation5 + $0xf2c] ss:$136 sps:$4 sm:$0xff]  }
 0x1e2   :  { %5673 = vmatpush1.bf16.msra.mxu0 %v10967_v29  ;;  %v11024_v29 = vld [vmem:[#allocation5 + $0x1038] ss:$136 sps:$4 sm:$0xff]  }
 0x1e3   :  { %5674 = vmatprep.subr.bf16.mxu0 %v10975_v32  ;;  %v11037_v32 = vld [vmem:[#allocation5 + $0x169c] ss:$136 sps:$4 sm:$0xff]  }
 0x1e4   :  { %5716 = vmatpush1.bf16.msra.mxu1 %v10970_v33  ;;  %v11027_v33 = vld [vmem:[#allocation5 + $0xf28] ss:$136 sps:$4 sm:$0xff]  }
 0x1e5   :  { %5742 = vmatprep.subr.bf16.mxu1 %v10978_v37  ;;  %v11034_v37 = vld [vmem:[#allocation5 + $0xe1c] ss:$136 sps:$4 sm:$0xff]  }
 0x1e6   :  { %5675 = vmatpush1.bf16.msra.mxu0 %v10973_v18  ;;  %v4957_v18 = vsel %vm4901_vm0, %v9923_v16, 0  ;;  %v9926_v16 = vcombine.high %v875_v26, %v875_v26 }
 0x1e7   :  { %9956 = vmatmul.mubr.msk.bf16.vlgmr.msra.gmra.mxu1 %vm4897_vm1, %v12401_v7  ;;  %5676 = vmatprep.subr.bf16.mxu0 %v10981_v40  ;;  %v10994_v7 = vld [vmem:[#allocation5 + $0x488] ss:$136 sps:$4 sm:$0xff]  }
 0x1e8   :  { %5743 = vmatpush1.bf16.msra.mxu1 %v10976_v38  ;;  %5774 = vmatprep.mubr.bf16.mxu1 %v12316_v52  ;;  %v11035_v38 = vld [vmem:[#allocation5 + $0x1698] ss:$136 sps:$4 sm:$0xff]   ;;  %v12459_v40 = vld [vmem:[#allocation7 + $0x8] sm:$0xff] }
 0x1e9   :  { %5744 = vmatprep.subr.bf16.mxu1 %v10984_v42  ;;  %v11032_v42 = vld [vmem:[#allocation5 + $0xe18] ss:$136 sps:$4 sm:$0xff]  }
 0x1ea   :  { %5677 = vmatpush2.bf16.msra.mxu0 %v10979_v41  ;;  %v11043_v41 = vld [vmem:[#allocation5 + $0x158c] ss:$136 sps:$4 sm:$0xff]  }
 0x1eb   :  { %5678 = vmatprep.subr.bf16.mxu0 %v10987_v43  ;;  %v11040_v43 = vld [vmem:[#allocation5 + $0xd0c] ss:$136 sps:$4 sm:$0xff]  }
 0x1ec   :  { %5745 = vmatpush1.bf16.msra.mxu1 %v10982_v45  ;;  %v11041_v45 = vld [vmem:[#allocation5 + $0x1588] ss:$136 sps:$4 sm:$0xff]  }
 0x1ed   :  { %5746 = vmatprep.subr.bf16.mxu1 %v10990_v47  ;;  %v11049_v47 = vld [vmem:[#allocation5 + $0x147c] ss:$136 sps:$4 sm:$0xff]  }
 0x1ee   :  { %5679 = vmatpush2.bf16.msra.mxu0 %v10985_v46  ;;  %v927_v46 = vrot.slane %v12459_v40, %v12364_v36 }
 0x1ef   :  { %v12452_v58 = vpop.f32.mrf.mxu1  ;;  %5680 = vmatprep.subr.bf16.mxu0 %v10993_v49  ;;  %v11038_v49 = vld [vmem:[#allocation5 + $0xd08] ss:$136 sps:$4 sm:$0xff]  }
 0x1f0   :  { %5747 = vmatpush1.bf16.msra.mxu1 %v10988_v51  ;;  %v931_v51 = vrot.slane %v12459_v40, %v12368_v39 }
 0x1f1   :  { %v12454_v62 = vpop.f32.mrf.mxu1  ;;  %5748 = vmatprep.subr.bf16.mxu1 %v10996_v56  ;;  %v11046_v56 = vld [vmem:[#allocation5 + $0xbfc] ss:$136 sps:$4 sm:$0xff]  }
 0x1f2   :  { %5681 = vmatpush2.bf16.msra.mxu0 %v10991_v54 }
 0x1f3   :  { %v5411_v4 = vpop.f32.mrf.mxu1  ;;  %5682 = vmatprep.subr.bf16.mxu0 %v10999_v57  ;;  %v11047_v57 = vld [vmem:[#allocation5 + $0x1478] ss:$136 sps:$4 sm:$0xff]  }
 0x1f4   :  { %5749 = vmatpush1.bf16.msra.mxu1 %v10994_v7 }
 0x1f5   :  { %v5412_v30 = vpop.f32.mrf.mxu1  ;;  %5750 = vmatprep.subr.bf16.mxu1 %v11002_v3 }
 0x1f6   :  { %5683 = vmatpush2.bf16.msra.mxu0 %v10997_v1  ;;  %v11055_v1 = vld [vmem:[#allocation5 + $0x136c] ss:$136 sps:$4 sm:$0xff]  }
 0x1f7   :  { %5684 = vmatprep.subr.bf16.mxu0 %v11005_v60 }
 0x1f8   :  { %5751 = vmatpush1.bf16.msra.mxu1 %v11000_v5  ;;  %v11044_v5 = vld [vmem:[#allocation5 + $0xbf8] ss:$136 sps:$4 sm:$0xff]  }
 0x1f9   :  { %5752 = vmatprep.subr.bf16.mxu1 %v11008_v63  ;;  %v11053_v63 = vld [vmem:[#allocation5 + $0x1368] ss:$136 sps:$4 sm:$0xff]  }
 0x1fa   :  { %5685 = vmatpush2.bf16.msra.mxu0 %v11003_v6  ;;  %v11052_v6 = vld [vmem:[#allocation5 + $0xaec] ss:$136 sps:$4 sm:$0xff]  }
 0x1fb   :  { %5686 = vmatprep.subr.bf16.mxu0 %v11011_v8  ;;  %v11061_v8 = vld [vmem:[#allocation5 + $0x125c] ss:$136 sps:$4 sm:$0xff]  }
 0x1fc   :  { %5753 = vmatpush1.bf16.msra.mxu1 %v11006_v9 }
 0x1fd   :  { %5754 = vmatprep.subr.bf16.mxu1 %v11014_v12 }
 0x1fe   :  { %5687 = vmatpush2.bf16.msra.mxu0 %v11009_v11 }
 0x1ff   :  { %5688 = vmatprep.subr.bf16.mxu0 %v11017_v13  ;;  %v11050_v13 = vld [vmem:[#allocation5 + $0xae8] ss:$136 sps:$4 sm:$0xff]  }
 0x200   :  { %5755 = vmatpush1.bf16.msra.mxu1 %v11012_v14  ;;  %v11058_v14 = vld [vmem:[#allocation5 + $0x9dc] ss:$136 sps:$4 sm:$0xff]  }
 0x201   :  { %5756 = vmatprep.subr.bf16.mxu1 %v11020_v21  ;;  %v11067_v21 = vld [vmem:[#allocation5 + $0x114c] ss:$136 sps:$4 sm:$0xff]  }
 0x202   :  { %5689 = vmatpush2.bf16.msra.mxu0 %v11015_v19  ;;  %v11059_v19 = vld [vmem:[#allocation5 + $0x1258] ss:$136 sps:$4 sm:$0xff]  }
 0x203   :  { %5690 = vmatprep.subr.bf16.mxu0 %v11023_v34  ;;  %v11056_v34 = vld [vmem:[#allocation5 + $0x9d8] ss:$136 sps:$4 sm:$0xff]  }
 0x204   :  { %5757 = vmatpush1.bf16.msra.mxu1 %v11018_v35  ;;  %v11064_v35 = vld [vmem:[#allocation5 + $0x8cc] ss:$136 sps:$4 sm:$0xff]  }
 0x205   :  { %5758 = vmatprep.subr.bf16.mxu1 %v11026_v27  ;;  %v11062_v27 = vld [vmem:[#allocation5 + $0x8c8] ss:$136 sps:$4 sm:$0xff]  }
 0x206   :  { %5691 = vmatpush2.bf16.msra.mxu0 %v11021_v25  ;;  %v11065_v25 = vld [vmem:[#allocation5 + $0x1148] ss:$136 sps:$4 sm:$0xff]  }
 0x207   :  { %9957 = vmatprep.subr.msk.bf16.mxu0 %vm4901_vm0, %v9924_v28  ;;  %v11068_v28 = vld [vmem:[#allocation5 + $0x7c0] ss:$136 sps:$4 sm:$0xff]  }
 0x208   :  { %5759 = vmatpush2.bf16.msra.mxu1 %v11024_v29  ;;  %v9925_v29 = vcombine.low %v875_v26, %v875_v26 }
 0x209   :  { %5693 = vmatmul.mubr.bf16.vlgmr.msra.gmra.mxu0 %v12320_v10  ;;  %5760 = vmatprep.subr.bf16.mxu1 %v11029_v31  ;;  %v11075_v31 = vld [vmem:[#allocation5 + $0x6b4] ss:$136 sps:$4 sm:$0xff]  }
 0x20a   :  { %5786 = vmatpush1.bf16.msra.mxu0 %v4957_v18  ;;  %5815 = vmatprep.mubr.bf16.mxu0 %v12246_v0  ;;  %v11073_v18 = vld [vmem:[#allocation5 + $0x6b0] ss:$136 sps:$4 sm:$0xff]  }
 0x20b   :  { %5787 = vmatprep.subr.bf16.mxu0 %v11037_v32  ;;  %v12476_v32 = vld [vmem:[#allocation2 + $0x8] ss:$0 sps:$4 sm:$0xff]  }
 0x20c   :  { %5761 = vmatpush2.bf16.msra.mxu1 %v11027_v33  ;;  %v4963_v33 = vsel %vm4901_vm0, %v9925_v29, 0  ;;  %v11103_v29 = vld [vmem:[#allocation5 + $0x160] ss:$136 sps:$4 sm:$0xff]  }
 0x20d   :  { %5762 = vmatprep.subr.bf16.mxu1 %v11034_v37  ;;  %v11078_v37 = vld [vmem:[#allocation5 + $0x16a4] ss:$136 sps:$4 sm:$0xff]  }
 0x20e   :  { %5788 = vmatpush1.bf16.msra.mxu0 %v11035_v38  ;;  %v11081_v38 = vld [vmem:[#allocation5 + $0x5a4] ss:$136 sps:$4 sm:$0xff]  }
 0x20f   :  { %5789 = vmatprep.subr.bf16.mxu0 %v11043_v41  ;;  %v11076_v41 = vld [vmem:[#allocation5 + $0x16a0] ss:$136 sps:$4 sm:$0xff]  }
 0x210   :  { %5763 = vmatpush2.bf16.msra.mxu1 %v11032_v42  ;;  %v11079_v42 = vld [vmem:[#allocation5 + $0x5a0] ss:$136 sps:$4 sm:$0xff]  }
 0x211   :  { %v5366_v54 = vpop.f32.mrf.mxu0  ;;  %5764 = vmatprep.subr.bf16.mxu1 %v11040_v43  ;;  %v11084_v43 = vld [vmem:[#allocation5 + $0x1594] ss:$136 sps:$4 sm:$0xff]  }
 0x212   :  { %v5367_v7 = vadd.f32 %v5366_v54, %v927_v46  ;;  %5790 = vmatpush1.bf16.msra.mxu0 %v11041_v45  ;;  %v11087_v45 = vld [vmem:[#allocation5 + $0x494] ss:$136 sps:$4 sm:$0xff]   ;;  %v935_v46 = vrot.slane %v12459_v40, %v12387_v20  ;;  %v11090_v54 = vld [vmem:[#allocation5 + $0x1484] ss:$136 sps:$4 sm:$0xff]  }
 0x213   :  { %v5368_v3 = vpop.f32.mrf.mxu0  ;;  %5791 = vmatprep.subr.bf16.mxu0 %v11049_v47  ;;  %v11082_v47 = vld [vmem:[#allocation5 + $0x1590] ss:$136 sps:$4 sm:$0xff]  }
 0x214   :  { %v12467_v60 = vadd.f32 %v12452_v58, %v5367_v7  ;;  %5765 = vmatpush2.bf16.msra.mxu1 %v11038_v49  ;;  %v5369_v4 = vadd.f32 %v5368_v3, %v931_v51  ;;  %v11085_v51 = vld [vmem:[#allocation5 + $0x490] ss:$136 sps:$4 sm:$0xff]  }
 0x215   :  { %v5370_v30 = vpop.f32.mrf.mxu0  ;;  %5766 = vmatprep.subr.bf16.mxu1 %v11046_v56  ;;  %v11093_v56 = vld [vmem:[#allocation5 + $0x384] ss:$136 sps:$4 sm:$0xff]  }
 0x216   :  { %v6398_v9 = vmax.f32 %v12375_v53, %v12467_v60  ;;  %v12472_v11 = vadd.f32 %v12454_v62, %v5369_v4  ;;  %5792 = vmatpush1.bf16.msra.mxu0 %v11047_v57  ;;  %v11070_v62 = vld [vmem:[#allocation5 + $0x7c4] ss:$136 sps:$4 sm:$0xff]   ;;  %v939_v57 = vrot.slane %v12459_v40, %v12391_v22  ;;  %v11088_v4 = vld [vmem:[#allocation5 + $0x1480] ss:$136 sps:$4 sm:$0xff]  }
 0x217   :  { %v5371_v12 = vpop.f32.mrf.mxu0  ;;  %5793 = vmatprep.subr.bf16.mxu0 %v11055_v1  ;;  %v11609_v53 = vld [vmem:[#allocation8 + $0x104] ss:$16 sps:$4 sm:$0xff]   ;;  %v11610_v60 = vld [vmem:[#allocation8 + $0x220] ss:$16 sps:$4 sm:$0xff]  }
 0x218   :  { %v6399_v58 = vmax.f32 %v12378_v61, %v12472_v11  ;;  %5767 = vmatpush2.bf16.msra.mxu1 %v11044_v5  ;;  %v11091_v5 = vld [vmem:[#allocation5 + $0x380] ss:$136 sps:$4 sm:$0xff]  }
 0x219   :  { %5768 = vmatprep.subr.bf16.mxu1 %v11052_v6  ;;  %v11096_v6 = vld [vmem:[#allocation5 + $0x1374] ss:$136 sps:$4 sm:$0xff]  }
 0x21a   :  { %5794 = vmatpush1.bf16.msra.mxu0 %v11053_v63  ;;  %v11613_v61 = vld [vmem:[#allocation8 + $0x200] ss:$16 sps:$4 sm:$0xff]   ;;  %v11618_v11 = vld [vmem:[#allocation8 + $0x3e4] ss:$16 sps:$4 sm:$0xff]  }
 0x21b   :  { %5795 = vmatprep.subr.bf16.mxu0 %v11061_v8  ;;  %v11099_v8 = vld [vmem:[#allocation5 + $0x274] ss:$136 sps:$4 sm:$0xff]  }
 0x21c   :  { %5769 = vmatpush2.bf16.msra.mxu1 %v11050_v13 }
 0x21d   :  { %5770 = vmatprep.subr.bf16.mxu1 %v11058_v14 }
 0x21e   :  { %5796 = vmatpush1.bf16.msra.mxu0 %v11059_v19 }
 0x21f   :  { %5797 = vmatprep.subr.bf16.mxu0 %v11067_v21 }
 0x220   :  { %5771 = vmatpush2.bf16.msra.mxu1 %v11056_v34 }
 0x221   :  { %5772 = vmatprep.subr.bf16.mxu1 %v11064_v35  ;;  %v11094_v35 = vld [vmem:[#allocation5 + $0x1370] ss:$136 sps:$4 sm:$0xff]  }
 0x222   :  { %5798 = vmatpush1.bf16.msra.mxu0 %v11065_v25  ;;  %v11097_v25 = vld [vmem:[#allocation5 + $0x270] ss:$136 sps:$4 sm:$0xff]  }
 0x223   :  { %5824 = vmatprep.subr.bf16.mxu0 %v11070_v62  ;;  %v11102_v62 = vld [vmem:[#allocation5 + $0x1264] ss:$136 sps:$4 sm:$0xff]  }
 0x224   :  { %5773 = vmatpush2.bf16.msra.mxu1 %v11062_v27  ;;  %v11105_v27 = vld [vmem:[#allocation5 + $0x164] ss:$136 sps:$4 sm:$0xff]  }
 0x225   :  { %9958 = vmatmul.mubr.msk.bf16.vlgmr.msra.gmra.mxu0 %vm4897_vm1, %v12476_v32  ;;  %9959 = vmatprep.subr.msk.bf16.mxu1 %vm4901_vm0, %v9926_v16  ;;  %v11100_v16 = vld [vmem:[#allocation5 + $0x1260] ss:$136 sps:$4 sm:$0xff]  }
 0x226   :  { %5825 = vmatpush1.bf16.msra.mxu0 %v11068_v28  ;;  %5856 = vmatprep.mubr.bf16.mxu0 %v12316_v52 }
 0x227   :  { %5775 = vmatmul.mubr.bf16.vlgmr.msra.gmra.mxu1 %v12320_v10  ;;  %5826 = vmatprep.subr.bf16.mxu0 %v11075_v31  ;;  %v11108_v31 = vld [vmem:[#allocation5 + $0x1154] ss:$136 sps:$4 sm:$0xff]  }
 0x228   :  { %5868 = vmatpush1.bf16.msra.mxu1 %v4963_v33  ;;  %5897 = vmatprep.mubr.bf16.mxu1 %v12246_v0  ;;  %v11111_v33 = vld [vmem:[#allocation5 + $0x54] ss:$136 sps:$4 sm:$0xff]  }
 0x229   :  { %5869 = vmatprep.subr.bf16.mxu1 %v11078_v37  ;;  %v11109_v37 = vld [vmem:[#allocation5 + $0x50] ss:$136 sps:$4 sm:$0xff]  }
 0x22a   :  { %5827 = vmatpush1.bf16.msra.mxu0 %v11073_v18  ;;  %v11106_v18 = vld [vmem:[#allocation5 + $0x1150] ss:$136 sps:$4 sm:$0xff]  }
 0x22b   :  { %5828 = vmatprep.subr.bf16.mxu0 %v11081_v38  ;;  %v11114_v38 = vld [vmem:[#allocation5 + $0x7cc] ss:$136 sps:$4 sm:$0xff]  }
 0x22c   :  { %5870 = vmatpush1.bf16.msra.mxu1 %v11076_v41  ;;  %v11112_v41 = vld [vmem:[#allocation5 + $0x7c8] ss:$136 sps:$4 sm:$0xff]  }
 0x22d   :  { %v5489_v49 = vpop.f32.mrf.mxu0  ;;  %5871 = vmatprep.subr.bf16.mxu1 %v11084_v43  ;;  %v11115_v43 = vld [vmem:[#allocation5 + $0x1040] ss:$136 sps:$4 sm:$0xff]  }
 0x22e   :  { %5829 = vmatpush1.bf16.msra.mxu0 %v11079_v42  ;;  %v11117_v42 = vld [vmem:[#allocation5 + $0x1044] ss:$136 sps:$4 sm:$0xff]  }
 0x22f   :  { %v5448_v7 = vpop.f32.mrf.mxu1  ;;  %v5491_v1 = vpop.f32.mrf.mxu0  ;;  %5830 = vmatprep.subr.bf16.mxu0 %v11087_v45  ;;  %v11120_v45 = vld [vmem:[#allocation5 + $0x6bc] ss:$136 sps:$4 sm:$0xff]  }
 0x230   :  { %v5449_v3 = vadd.f32 %v5448_v7, %v935_v46  ;;  %5872 = vmatpush1.bf16.msra.mxu1 %v11082_v47  ;;  %v11123_v46 = vld [vmem:[#allocation5 + $0xf34] ss:$136 sps:$4 sm:$0xff]   ;;  %v11118_v47 = vld [vmem:[#allocation5 + $0x6b8] ss:$136 sps:$4 sm:$0xff]  }
 0x231   :  { %v5450_v63 = vpop.f32.mrf.mxu1  ;;  %v5493_v30 = vpop.f32.mrf.mxu0  ;;  %5873 = vmatprep.subr.bf16.mxu1 %v11090_v54  ;;  %v11129_v54 = vld [vmem:[#allocation5 + $0xe24] ss:$136 sps:$4 sm:$0xff]  }
 0x232   :  { %v12489_v12 = vadd.f32 %v5489_v49, %v5449_v3  ;;  %v5451_v13 = vadd.f32 %v5450_v63, %v939_v57  ;;  %5831 = vmatpush1.bf16.msra.mxu0 %v11085_v51  ;;  %v11121_v49 = vld [vmem:[#allocation5 + $0xf30] ss:$136 sps:$4 sm:$0xff]   ;;  %v11126_v51 = vld [vmem:[#allocation5 + $0x5ac] ss:$136 sps:$4 sm:$0xff]   ;;  %v11127_v57 = vld [vmem:[#allocation5 + $0xe20] ss:$136 sps:$4 sm:$0xff]  }
 0x233   :  { %v5452_v14 = vpop.f32.mrf.mxu1  ;;  %v5494_v19 = vpop.f32.mrf.mxu0  ;;  %5832 = vmatprep.subr.bf16.mxu0 %v11093_v56  ;;  %v11124_v56 = vld [vmem:[#allocation5 + $0x5a8] ss:$136 sps:$4 sm:$0xff]   ;;  %v11132_v7 = vld [vmem:[#allocation5 + $0x49c] ss:$136 sps:$4 sm:$0xff]   ;;  %v11138_v63 = vld [vmem:[#allocation5 + $0x38c] ss:$136 sps:$4 sm:$0xff]  }
 0x234   :  { %v6400_v21 = vmax.f32 %v12397_v44, %v12489_v12  ;;  %v12493_v34 = vadd.f32 %v5491_v1, %v5451_v13  ;;  %5874 = vmatpush1.bf16.msra.mxu1 %v11088_v4  ;;  %v11135_v1 = vld [vmem:[#allocation5 + $0xd14] ss:$136 sps:$4 sm:$0xff]   ;;  %v11130_v4 = vld [vmem:[#allocation5 + $0x498] ss:$136 sps:$4 sm:$0xff]   ;;  %v11141_v30 = vld [vmem:[#allocation5 + $0xc04] ss:$136 sps:$4 sm:$0xff]  }
 0x235   :  { %v5453_v26 = vpop.f32.mrf.mxu1  ;;  %5875 = vmatprep.subr.bf16.mxu1 %v11096_v6  ;;  %v11133_v6 = vld [vmem:[#allocation5 + $0xd10] ss:$136 sps:$4 sm:$0xff]   ;;  %v11139_v14 = vld [vmem:[#allocation5 + $0xc00] ss:$136 sps:$4 sm:$0xff]   ;;  %v11144_v19 = vld [vmem:[#allocation5 + $0x27c] ss:$136 sps:$4 sm:$0xff]  }
 0x236   :  { %v6401_v28 = vmax.f32 %v12399_v48, %v12493_v34  ;;  %5833 = vmatpush1.bf16.msra.mxu0 %v11091_v5  ;;  %v11136_v13 = vld [vmem:[#allocation5 + $0x388] ss:$136 sps:$4 sm:$0xff]  }
 0x237   :  { %5834 = vmatprep.subr.bf16.mxu0 %v11099_v8  ;;  %v11145_v26 = vld [vmem:[#allocation5 + $0xaf0] ss:$136 sps:$4 sm:$0xff]  }
 0x238   :  { %5876 = vmatpush1.bf16.msra.mxu1 %v11094_v35  ;;  %v11642_v44 = vld [vmem:[#allocation8 + $0x324] ss:$16 sps:$4 sm:$0xff]   ;;  %v11658_v12 = vld [vmem:[#allocation8 + $0x420] ss:$16 sps:$4 sm:$0xff]  }
 0x239   :  { %5877 = vmatprep.subr.bf16.mxu1 %v11102_v62  ;;  %v11142_v62 = vld [vmem:[#allocation5 + $0x278] ss:$136 sps:$4 sm:$0xff]  }
 0x23a   :  { %5835 = vmatpush1.bf16.msra.mxu0 %v11097_v25  ;;  %v11147_v25 = vld [vmem:[#allocation5 + $0xaf4] ss:$136 sps:$4 sm:$0xff]  }
 0x23b   :  { %5836 = vmatprep.subr.bf16.mxu0 %v11105_v27  ;;  %v11150_v27 = vld [vmem:[#allocation5 + $0x16c] ss:$136 sps:$4 sm:$0xff]  }
 0x23c   :  { %5878 = vmatpush1.bf16.msra.mxu1 %v11100_v16  ;;  %v11153_v16 = vld [vmem:[#allocation5 + $0x9e4] ss:$136 sps:$4 sm:$0xff]  }
 0x23d   :  { %5879 = vmatprep.subr.bf16.mxu1 %v11108_v31  ;;  %v11151_v31 = vld [vmem:[#allocation5 + $0x9e0] ss:$136 sps:$4 sm:$0xff]  }
 0x23e   :  { %5837 = vmatpush1.bf16.msra.mxu0 %v11103_v29  ;;  %v11148_v29 = vld [vmem:[#allocation5 + $0x168] ss:$136 sps:$4 sm:$0xff]  }
 0x23f   :  { %5838 = vmatprep.subr.bf16.mxu0 %v11111_v33  ;;  %v11156_v33 = vld [vmem:[#allocation5 + $0x5c] ss:$136 sps:$4 sm:$0xff]  }
 0x240   :  { %5880 = vmatpush1.bf16.msra.mxu1 %v11106_v18  ;;  %v11159_v18 = vld [vmem:[#allocation5 + $0x8d4] ss:$136 sps:$4 sm:$0xff]  }
 0x241   :  { %5906 = vmatprep.subr.bf16.mxu1 %v11114_v38  ;;  %v11157_v38 = vld [vmem:[#allocation5 + $0x8d0] ss:$136 sps:$4 sm:$0xff]  }
 0x242   :  { %5839 = vmatpush1.bf16.msra.mxu0 %v11109_v37  ;;  %v11154_v37 = vld [vmem:[#allocation5 + $0x58] ss:$136 sps:$4 sm:$0xff]  }
 0x243   :  { %9960 = vmatmul.mubr.msk.bf16.vlgmr.msra.gmra.mxu1 %vm4897_vm1, %v12476_v32  ;;  %5840 = vmatprep.subr.bf16.mxu0 %v11117_v42  ;;  %v11162_v42 = vld [vmem:[#allocation5 + $0x104c] ss:$136 sps:$4 sm:$0xff]  }
 0x244   :  { %5907 = vmatpush1.bf16.msra.mxu1 %v11112_v41  ;;  %5938 = vmatprep.mubr.bf16.mxu1 %v12316_v52  ;;  %v876_v41 = vld [vmem:[#allocation5 + $0x17b8] sm:$0xff] }
 0x245   :  { %5908 = vmatprep.subr.bf16.mxu1 %v11120_v45  ;;  %v9927_v45 = vcombine.low %v876_v41, %v876_v41  ;;  %v11648_v48 = vld [vmem:[#allocation8 + $0x304] ss:$16 sps:$4 sm:$0xff]   ;;  %v11664_v34 = vld [vmem:[#allocation8 + $0x400] ss:$16 sps:$4 sm:$0xff]  }
 0x246   :  { %5841 = vmatpush2.bf16.msra.mxu0 %v11115_v43  ;;  %v9928_v43 = vcombine.high %v876_v41, %v876_v41 }
 0x247   :  { %5842 = vmatprep.subr.bf16.mxu0 %v11123_v46  ;;  %v11160_v46 = vld [vmem:[#allocation5 + $0x1048] ss:$136 sps:$4 sm:$0xff]  }
 0x248   :  { %5909 = vmatpush1.bf16.msra.mxu1 %v11118_v47  ;;  %v11165_v47 = vld [vmem:[#allocation5 + $0xf3c] ss:$136 sps:$4 sm:$0xff]  }
 0x249   :  { %5910 = vmatprep.subr.bf16.mxu1 %v11126_v51  ;;  %v4969_v51 = vsel %vm4901_vm0, %v9927_v45, 0  ;;  %v11195_v45 = vld [vmem:[#allocation5 + $0x1268] ss:$136 sps:$4 sm:$0xff]  }
 0x24a   :  { %5843 = vmatpush2.bf16.msra.mxu0 %v11121_v49  ;;  %v11173_v49 = vld [vmem:[#allocation5 + $0x16ac] ss:$136 sps:$4 sm:$0xff]  }
 0x24b   :  { %v12500_v3 = vpop.f32.mrf.mxu1  ;;  %5844 = vmatprep.subr.bf16.mxu0 %v11129_v54  ;;  %v11163_v54 = vld [vmem:[#allocation5 + $0xf38] ss:$136 sps:$4 sm:$0xff]  }
 0x24c   :  { %5911 = vmatpush1.bf16.msra.mxu1 %v11124_v56  ;;  %v11170_v56 = vld [vmem:[#allocation5 + $0xe2c] ss:$136 sps:$4 sm:$0xff]  }
 0x24d   :  { %v12502_v5 = vpop.f32.mrf.mxu1  ;;  %5912 = vmatprep.subr.bf16.mxu1 %v11132_v7  ;;  %v11179_v7 = vld [vmem:[#allocation5 + $0x159c] ss:$136 sps:$4 sm:$0xff]  }
 0x24e   :  { %5845 = vmatpush2.bf16.msra.mxu0 %v11127_v57  ;;  %v11171_v57 = vld [vmem:[#allocation5 + $0x16a8] ss:$136 sps:$4 sm:$0xff]  }
 0x24f   :  { %v5575_v8 = vpop.f32.mrf.mxu1  ;;  %5846 = vmatprep.subr.bf16.mxu0 %v11135_v1  ;;  %v11168_v1 = vld [vmem:[#allocation5 + $0xe28] ss:$136 sps:$4 sm:$0xff]  }
 0x250   :  { %5913 = vmatpush1.bf16.msra.mxu1 %v11130_v4  ;;  %v11176_v4 = vld [vmem:[#allocation5 + $0xd1c] ss:$136 sps:$4 sm:$0xff]   ;;  %v11174_v8 = vld [vmem:[#allocation5 + $0xd18] ss:$136 sps:$4 sm:$0xff]  }
 0x251   :  { %v5576_v35 = vpop.f32.mrf.mxu1  ;;  %5914 = vmatprep.subr.bf16.mxu1 %v11138_v63  ;;  %v943_v63 = vrot.slane %v12459_v40, %v12414_v59 }
 0x252   :  { %5847 = vmatpush2.bf16.msra.mxu0 %v11133_v6  ;;  %v11177_v6 = vld [vmem:[#allocation5 + $0x1598] ss:$136 sps:$4 sm:$0xff]   ;;  %v11183_v35 = vld [vmem:[#allocation5 + $0x1488] ss:$136 sps:$4 sm:$0xff]  }
 0x253   :  { %5848 = vmatprep.subr.bf16.mxu0 %v11141_v30  ;;  %v11185_v30 = vld [vmem:[#allocation5 + $0x148c] ss:$136 sps:$4 sm:$0xff]  }
 0x254   :  { %5915 = vmatpush1.bf16.msra.mxu1 %v11136_v13  ;;  %v947_v13 = vrot.slane %v12459_v40, %v12418_v2  ;;  %v11197_v40 = vld [vmem:[#allocation5 + $0x126c] ss:$136 sps:$4 sm:$0xff]  }
 0x255   :  { %5916 = vmatprep.subr.bf16.mxu1 %v11144_v19  ;;  %v11182_v19 = vld [vmem:[#allocation5 + $0xc0c] ss:$136 sps:$4 sm:$0xff]  }
 0x256   :  { %5849 = vmatpush2.bf16.msra.mxu0 %v11139_v14 }
 0x257   :  { %5850 = vmatprep.subr.bf16.mxu0 %v11147_v25  ;;  %v11191_v25 = vld [vmem:[#allocation5 + $0x137c] ss:$136 sps:$4 sm:$0xff]  }
 0x258   :  { %5917 = vmatpush1.bf16.msra.mxu1 %v11142_v62 }
 0x259   :  { %5918 = vmatprep.subr.bf16.mxu1 %v11150_v27 }
 0x25a   :  { %5851 = vmatpush2.bf16.msra.mxu0 %v11145_v26 }
 0x25b   :  { %5852 = vmatprep.subr.bf16.mxu0 %v11153_v16 }
 0x25c   :  { %5919 = vmatpush1.bf16.msra.mxu1 %v11148_v29  ;;  %v11180_v29 = vld [vmem:[#allocation5 + $0xc08] ss:$136 sps:$4 sm:$0xff]  }
 0x25d   :  { %5920 = vmatprep.subr.bf16.mxu1 %v11156_v33  ;;  %v11189_v33 = vld [vmem:[#allocation5 + $0x1378] ss:$136 sps:$4 sm:$0xff]  }
 0x25e   :  { %5853 = vmatpush2.bf16.msra.mxu0 %v11151_v31  ;;  %v11188_v31 = vld [vmem:[#allocation5 + $0xafc] ss:$136 sps:$4 sm:$0xff]  }
 0x25f   :  { %5854 = vmatprep.subr.bf16.mxu0 %v11159_v18 }
 0x260   :  { %5921 = vmatpush1.bf16.msra.mxu1 %v11154_v37 }
 0x261   :  { %5922 = vmatprep.subr.bf16.mxu1 %v11162_v42  ;;  %v11186_v42 = vld [vmem:[#allocation5 + $0xaf8] ss:$136 sps:$4 sm:$0xff]  }
 0x262   :  { %5855 = vmatpush2.bf16.msra.mxu0 %v11157_v38 }
 0x263   :  { %9961 = vmatprep.subr.msk.bf16.mxu0 %vm4901_vm0, %v9928_v43  ;;  %v11194_v43 = vld [vmem:[#allocation5 + $0x9ec] ss:$136 sps:$4 sm:$0xff]  }
 0x264   :  { %5923 = vmatpush2.bf16.msra.mxu1 %v11160_v46  ;;  %v11203_v46 = vld [vmem:[#allocation5 + $0x115c] ss:$136 sps:$4 sm:$0xff]  }
 0x265   :  { %5857 = vmatmul.mubr.bf16.vlgmr.msra.gmra.mxu0 %v12320_v10  ;;  %5924 = vmatprep.subr.bf16.mxu1 %v11165_v47  ;;  %v11192_v47 = vld [vmem:[#allocation5 + $0x9e8] ss:$136 sps:$4 sm:$0xff]  }
 0x266   :  { %5950 = vmatpush1.bf16.msra.mxu0 %v4969_v51  ;;  %5979 = vmatprep.mubr.bf16.mxu0 %v12246_v0  ;;  %v11201_v51 = vld [vmem:[#allocation5 + $0x1158] ss:$136 sps:$4 sm:$0xff]  }
 0x267   :  { %5951 = vmatprep.subr.bf16.mxu0 %v11173_v49  ;;  %v11200_v49 = vld [vmem:[#allocation5 + $0x8dc] ss:$136 sps:$4 sm:$0xff]  }
 0x268   :  { %5925 = vmatpush2.bf16.msra.mxu1 %v11163_v54  ;;  %v877_v54 = vld [vmem:[#allocation5 + $0x17c0] sm:$0xff] }
 0x269   :  { %5926 = vmatprep.subr.bf16.mxu1 %v11170_v56  ;;  %v11198_v56 = vld [vmem:[#allocation5 + $0x8d8] ss:$136 sps:$4 sm:$0xff]  }
 0x26a   :  { %5952 = vmatpush1.bf16.msra.mxu0 %v11171_v57  ;;  %v11204_v57 = vld [vmem:[#allocation5 + $0x7d0] ss:$136 sps:$4 sm:$0xff]  }
 0x26b   :  { %5953 = vmatprep.subr.bf16.mxu0 %v11179_v7  ;;  %v9930_v7 = vcombine.high %v877_v54, %v877_v54 }
 0x26c   :  { %5927 = vmatpush2.bf16.msra.mxu1 %v11168_v1  ;;  %v9929_v1 = vcombine.low %v877_v54, %v877_v54 }
 0x26d   :  { %v5530_v14 = vpop.f32.mrf.mxu0  ;;  %5928 = vmatprep.subr.bf16.mxu1 %v11176_v4  ;;  %v11211_v4 = vld [vmem:[#allocation5 + $0x6c4] ss:$136 sps:$4 sm:$0xff]  }
 0x26e   :  { %v5531_v62 = vadd.f32 %v5530_v14, %v943_v63  ;;  %5954 = vmatpush1.bf16.msra.mxu0 %v11177_v6  ;;  %v4975_v6 = vsel %vm4901_vm0, %v9929_v1, 0  ;;  %v11209_v63 = vld [vmem:[#allocation5 + $0x6c0] ss:$136 sps:$4 sm:$0xff]   ;;  %v11215_v14 = vld [vmem:[#allocation5 + $0x5b0] ss:$136 sps:$4 sm:$0xff]  }
 0x26f   :  { %v5532_v26 = vpop.f32.mrf.mxu0  ;;  %5955 = vmatprep.subr.bf16.mxu0 %v11185_v30  ;;  %v11214_v30 = vld [vmem:[#allocation5 + $0x16b4] ss:$136 sps:$4 sm:$0xff]   ;;  %v11230_v1 = vld [vmem:[#allocation5 + $0x1380] ss:$136 sps:$4 sm:$0xff]  }
 0x270   :  { %v12513_v27 = vadd.f32 %v12500_v3, %v5531_v62  ;;  %5929 = vmatpush2.bf16.msra.mxu1 %v11174_v8  ;;  %v5533_v16 = vadd.f32 %v5532_v26, %v947_v13  ;;  %v11217_v8 = vld [vmem:[#allocation5 + $0x5b4] ss:$136 sps:$4 sm:$0xff]   ;;  %v11212_v13 = vld [vmem:[#allocation5 + $0x16b0] ss:$136 sps:$4 sm:$0xff]   ;;  %v11218_v62 = vld [vmem:[#allocation5 + $0x15a0] ss:$136 sps:$4 sm:$0xff]  }
 0x271   :  { %v5534_v18 = vpop.f32.mrf.mxu0  ;;  %5930 = vmatprep.subr.bf16.mxu1 %v11182_v19  ;;  %v11223_v19 = vld [vmem:[#allocation5 + $0x4a4] ss:$136 sps:$4 sm:$0xff]  }
 0x272   :  { %v6402_v37 = vmax.f32 %v12425_v15, %v12513_v27  ;;  %v12518_v38 = vadd.f32 %v12502_v5, %v5533_v16  ;;  %5956 = vmatpush1.bf16.msra.mxu0 %v11183_v35  ;;  %v11206_v5 = vld [vmem:[#allocation5 + $0x7d4] ss:$136 sps:$4 sm:$0xff]   ;;  %v11221_v16 = vld [vmem:[#allocation5 + $0x4a0] ss:$136 sps:$4 sm:$0xff]  }
 0x273   :  { %v5535_v41 = vpop.f32.mrf.mxu0  ;;  %5957 = vmatprep.subr.bf16.mxu0 %v11191_v25  ;;  %v12060_v35 = vld [vmem:[#allocation7 + $0x8] sm:$0xff]  ;;  %v11727_v15 = vld [vmem:[#allocation8 + $0x740] ss:$16 sps:$4 sm:$0xff]  }
 0x274   :  { %v6403_v3 = vmax.f32 %v12428_v24, %v12518_v38  ;;  %5931 = vmatpush2.bf16.msra.mxu1 %v11180_v29  ;;  %v951_v25 = vrot.slane %v12060_v35, %v12437_v50  ;;  %v11226_v29 = vld [vmem:[#allocation5 + $0x1494] ss:$136 sps:$4 sm:$0xff]  }
 0x275   :  { %5932 = vmatprep.subr.bf16.mxu1 %v11188_v31  ;;  %v11229_v31 = vld [vmem:[#allocation5 + $0x394] ss:$136 sps:$4 sm:$0xff]  }
 0x276   :  { %5958 = vmatpush1.bf16.msra.mxu0 %v11189_v33  ;;  %v955_v33 = vrot.slane %v12060_v35, %v12441_v55  ;;  %v11242_v35 = vld [vmem:[#allocation5 + $0x1160] ss:$136 sps:$4 sm:$0xff]  }
 0x277   :  { %5959 = vmatprep.subr.bf16.mxu0 %v11197_v40  ;;  %v11732_v27 = vld [vmem:[#allocation8 + $0x724] ss:$16 sps:$4 sm:$0xff]   ;;  %v11739_v24 = vld [vmem:[#allocation8 + $0x8c0] ss:$16 sps:$4 sm:$0xff]  }
 0x278   :  { %5933 = vmatpush2.bf16.msra.mxu1 %v11186_v42  ;;  %v11224_v42 = vld [vmem:[#allocation5 + $0x1490] ss:$136 sps:$4 sm:$0xff]  }
 0x279   :  { %5934 = vmatprep.subr.bf16.mxu1 %v11194_v43  ;;  %v11227_v43 = vld [vmem:[#allocation5 + $0x390] ss:$136 sps:$4 sm:$0xff]  }
 0x27a   :  { %5960 = vmatpush1.bf16.msra.mxu0 %v11195_v45  ;;  %v11232_v45 = vld [vmem:[#allocation5 + $0x1384] ss:$136 sps:$4 sm:$0xff]  }
 0x27b   :  { %5961 = vmatprep.subr.bf16.mxu0 %v11203_v46  ;;  %v11730_v38 = vld [vmem:[#allocation8 + $0x720] ss:$16 sps:$4 sm:$0xff]  }
 0x27c   :  { %5935 = vmatpush2.bf16.msra.mxu1 %v11192_v47 }
 0x27d   :  { %5936 = vmatprep.subr.bf16.mxu1 %v11200_v49  ;;  %v11235_v49 = vld [vmem:[#allocation5 + $0x284] ss:$136 sps:$4 sm:$0xff]  }
 0x27e   :  { %5962 = vmatpush1.bf16.msra.mxu0 %v11201_v51 }
 0x27f   :  { %5988 = vmatprep.subr.bf16.mxu0 %v11206_v5 }
 0x280   :  { %5937 = vmatpush2.bf16.msra.mxu1 %v11198_v56 }
 0x281   :  { %9962 = vmatmul.mubr.msk.bf16.vlgmr.msra.gmra.mxu0 %vm4897_vm1, %v12476_v32  ;;  %9963 = vmatprep.subr.msk.bf16.mxu1 %vm4901_vm0, %v9930_v7  ;;  %v11220_v32 = vld [vmem:[#allocation5 + $0x15a4] ss:$136 sps:$4 sm:$0xff]  }
 0x282   :  { %5989 = vmatpush1.bf16.msra.mxu0 %v11204_v57  ;;  %6020 = vmatprep.mubr.bf16.mxu0 %v12316_v52 }
 0x283   :  { %5939 = vmatmul.mubr.bf16.vlgmr.msra.gmra.mxu1 %v12320_v10  ;;  %5990 = vmatprep.subr.bf16.mxu0 %v11211_v4  ;;  %v11233_v4 = vld [vmem:[#allocation5 + $0x280] ss:$136 sps:$4 sm:$0xff]  }
 0x284   :  { %6032 = vmatpush1.bf16.msra.mxu1 %v4975_v6  ;;  %6061 = vmatprep.mubr.bf16.mxu1 %v12246_v0  ;;  %v11238_v6 = vld [vmem:[#allocation5 + $0x1274] ss:$136 sps:$4 sm:$0xff]  }
 0x285   :  { %6033 = vmatprep.subr.bf16.mxu1 %v11214_v30  ;;  %v11241_v30 = vld [vmem:[#allocation5 + $0x174] ss:$136 sps:$4 sm:$0xff]  }
 0x286   :  { %5991 = vmatpush1.bf16.msra.mxu0 %v11209_v63 }
 0x287   :  { %5992 = vmatprep.subr.bf16.mxu0 %v11217_v8 }
 0x288   :  { %6034 = vmatpush1.bf16.msra.mxu1 %v11212_v13  ;;  %v11236_v13 = vld [vmem:[#allocation5 + $0x1270] ss:$136 sps:$4 sm:$0xff]  }
 0x289   :  { %v5653_v26 = vpop.f32.mrf.mxu0  ;;  %6035 = vmatprep.subr.bf16.mxu1 %v11220_v32  ;;  %v11244_v32 = vld [vmem:[#allocation5 + $0x1164] ss:$136 sps:$4 sm:$0xff]  }
 0x28a   :  { %5993 = vmatpush1.bf16.msra.mxu0 %v11215_v14  ;;  %v11239_v14 = vld [vmem:[#allocation5 + $0x170] ss:$136 sps:$4 sm:$0xff]  }
 0x28b   :  { %v5612_v18 = vpop.f32.mrf.mxu1  ;;  %v5655_v40 = vpop.f32.mrf.mxu0  ;;  %5994 = vmatprep.subr.bf16.mxu0 %v11223_v19  ;;  %v11247_v19 = vld [vmem:[#allocation5 + $0x64] ss:$136 sps:$4 sm:$0xff]  }
 0x28c   :  { %v5613_v41 = vadd.f32 %v5612_v18, %v951_v25  ;;  %6036 = vmatpush1.bf16.msra.mxu1 %v11218_v62  ;;  %v11245_v25 = vld [vmem:[#allocation5 + $0x60] ss:$136 sps:$4 sm:$0xff]   ;;  %v11250_v62 = vld [vmem:[#allocation5 + $0x7dc] ss:$136 sps:$4 sm:$0xff]  }
 0x28d   :  { %v5614_v46 = vpop.f32.mrf.mxu1  ;;  %v5657_v47 = vpop.f32.mrf.mxu0  ;;  %6037 = vmatprep.subr.bf16.mxu1 %v11226_v29  ;;  %v11251_v29 = vld [vmem:[#allocation5 + $0x1050] ss:$136 sps:$4 sm:$0xff]   ;;  %v12539_v18 = vld [vmem:[#allocation2 + $0x8] ss:$0 sps:$4 sm:$0xff]  }
 0x28e   :  { %v12531_v51 = vadd.f32 %v5653_v26, %v5613_v41  ;;  %v5615_v5 = vadd.f32 %v5614_v46, %v955_v33  ;;  %5995 = vmatpush1.bf16.msra.mxu0 %v11221_v16  ;;  %v11248_v26 = vld [vmem:[#allocation5 + $0x7d8] ss:$136 sps:$4 sm:$0xff]   ;;  %v11253_v16 = vld [vmem:[#allocation5 + $0x1054] ss:$136 sps:$4 sm:$0xff]   ;;  %v11259_v33 = vld [vmem:[#allocation5 + $0xf44] ss:$136 sps:$4 sm:$0xff]  }
 0x28f   :  { %v5616_v54 = vpop.f32.mrf.mxu1  ;;  %v5658_v56 = vpop.f32.mrf.mxu0  ;;  %5996 = vmatprep.subr.bf16.mxu0 %v11229_v31  ;;  %v11256_v31 = vld [vmem:[#allocation5 + $0x6cc] ss:$136 sps:$4 sm:$0xff]   ;;  %v11257_v41 = vld [vmem:[#allocation5 + $0xf40] ss:$136 sps:$4 sm:$0xff]   ;;  %v11263_v46 = vld [vmem:[#allocation5 + $0xe30] ss:$136 sps:$4 sm:$0xff]  }
 0x290   :  { %v6404_v57 = vmax.f32 %v12445_v17, %v12531_v51  ;;  %v12535_v7 = vadd.f32 %v5655_v40, %v5615_v5  ;;  %6038 = vmatpush1.bf16.msra.mxu1 %v11224_v42  ;;  %v11254_v40 = vld [vmem:[#allocation5 + $0x6c8] ss:$136 sps:$4 sm:$0xff]   ;;  %v11262_v42 = vld [vmem:[#allocation5 + $0x5bc] ss:$136 sps:$4 sm:$0xff]   ;;  %v11268_v47 = vld [vmem:[#allocation5 + $0x4ac] ss:$136 sps:$4 sm:$0xff]  }
 0x291   :  { %v5617_v63 = vpop.f32.mrf.mxu1  ;;  %6039 = vmatprep.subr.bf16.mxu1 %v11232_v45  ;;  %v11260_v45 = vld [vmem:[#allocation5 + $0x5b8] ss:$136 sps:$4 sm:$0xff]   ;;  %v11266_v54 = vld [vmem:[#allocation5 + $0x4a8] ss:$136 sps:$4 sm:$0xff]  }
 0x292   :  { %v6405_v8 = vmax.f32 %v12447_v23, %v12535_v7  ;;  %5997 = vmatpush1.bf16.msra.mxu0 %v11227_v43  ;;  %v11265_v43 = vld [vmem:[#allocation5 + $0xe34] ss:$136 sps:$4 sm:$0xff]  }
 0x293   :  { %5998 = vmatprep.subr.bf16.mxu0 %v11235_v49  ;;  %v11271_v49 = vld [vmem:[#allocation5 + $0xd24] ss:$136 sps:$4 sm:$0xff]  }
 0x294   :  { %6040 = vmatpush1.bf16.msra.mxu1 %v11230_v1  ;;  %v11269_v1 = vld [vmem:[#allocation5 + $0xd20] ss:$136 sps:$4 sm:$0xff]  }
 0x295   :  { %6041 = vmatprep.subr.bf16.mxu1 %v11238_v6  ;;  %v11277_v6 = vld [vmem:[#allocation5 + $0xc14] ss:$136 sps:$4 sm:$0xff]  }
 0x296   :  { %5999 = vmatpush1.bf16.msra.mxu0 %v11233_v4  ;;  %v11274_v4 = vld [vmem:[#allocation5 + $0x39c] ss:$136 sps:$4 sm:$0xff]  }
 0x297   :  { %6000 = vmatprep.subr.bf16.mxu0 %v11241_v30  ;;  %v11272_v30 = vld [vmem:[#allocation5 + $0x398] ss:$136 sps:$4 sm:$0xff]  }
 0x298   :  { %6042 = vmatpush1.bf16.msra.mxu1 %v11236_v13  ;;  %v11275_v13 = vld [vmem:[#allocation5 + $0xc10] ss:$136 sps:$4 sm:$0xff]  }
 0x299   :  { %6043 = vmatprep.subr.bf16.mxu1 %v11244_v32  ;;  %v11781_v17 = vld [vmem:[#allocation8 + $0x9e0] ss:$16 sps:$4 sm:$0xff]   ;;  %v11789_v51 = vld [vmem:[#allocation8 + $0x9c4] ss:$16 sps:$4 sm:$0xff]   ;;  %v11748_v23 = vld [vmem:[#allocation8 + $0xc8] ss:$16 sps:$4 sm:$0xff]  }
 0x29a   :  { %6001 = vmatpush1.bf16.msra.mxu0 %v11239_v14  ;;  %v11280_v14 = vld [vmem:[#allocation5 + $0x28c] ss:$136 sps:$4 sm:$0xff]  }
 0x29b   :  { %6002 = vmatprep.subr.bf16.mxu0 %v11247_v19  ;;  %v11283_v19 = vld [vmem:[#allocation5 + $0xb04] ss:$136 sps:$4 sm:$0xff]  }
 0x29c   :  { %6044 = vmatpush1.bf16.msra.mxu1 %v11242_v35  ;;  %v11278_v35 = vld [vmem:[#allocation5 + $0x288] ss:$136 sps:$4 sm:$0xff]  }
 0x29d   :  { %6070 = vmatprep.subr.bf16.mxu1 %v11250_v62  ;;  %v11286_v62 = vld [vmem:[#allocation5 + $0x17c] ss:$136 sps:$4 sm:$0xff]  }
 0x29e   :  { %6003 = vmatpush1.bf16.msra.mxu0 %v11245_v25  ;;  %v11281_v25 = vld [vmem:[#allocation5 + $0xb00] ss:$136 sps:$4 sm:$0xff]  }
 0x29f   :  { %9964 = vmatmul.mubr.msk.bf16.vlgmr.msra.gmra.mxu1 %vm4897_vm1, %v12539_v18  ;;  %6004 = vmatprep.subr.bf16.mxu0 %v11253_v16  ;;  %v11284_v16 = vld [vmem:[#allocation5 + $0x178] ss:$136 sps:$4 sm:$0xff]  }
 0x2a0   :  { %6071 = vmatpush1.bf16.msra.mxu1 %v11248_v26  ;;  %6102 = vmatprep.mubr.bf16.mxu1 %v12316_v52  ;;  %v11289_v26 = vld [vmem:[#allocation5 + $0x9f4] ss:$136 sps:$4 sm:$0xff]  }
 0x2a1   :  { %6072 = vmatprep.subr.bf16.mxu1 %v11256_v31  ;;  %v11292_v31 = vld [vmem:[#allocation5 + $0x6c] ss:$136 sps:$4 sm:$0xff]  }
 0x2a2   :  { %6005 = vmatpush2.bf16.msra.mxu0 %v11251_v29  ;;  %v11287_v29 = vld [vmem:[#allocation5 + $0x9f0] ss:$136 sps:$4 sm:$0xff]  }
 0x2a3   :  { %6006 = vmatprep.subr.bf16.mxu0 %v11259_v33  ;;  %v11295_v33 = vld [vmem:[#allocation5 + $0x8e4] ss:$136 sps:$4 sm:$0xff]  }
 0x2a4   :  { %6073 = vmatpush1.bf16.msra.mxu1 %v11254_v40  ;;  %v878_v40 = vld [vmem:[#allocation5 + $0x17c8] sm:$0xff] }
 0x2a5   :  { %6074 = vmatprep.subr.bf16.mxu1 %v11262_v42  ;;  %v11293_v42 = vld [vmem:[#allocation5 + $0x8e0] ss:$136 sps:$4 sm:$0xff]  }
 0x2a6   :  { %6007 = vmatpush2.bf16.msra.mxu0 %v11257_v41  ;;  %v11290_v41 = vld [vmem:[#allocation5 + $0x68] ss:$136 sps:$4 sm:$0xff]  }
 0x2a7   :  { %v12544_v5 = vpop.f32.mrf.mxu1  ;;  %6008 = vmatprep.subr.bf16.mxu0 %v11265_v43  ;;  %v9931_v43 = vcombine.low %v878_v40, %v878_v40  ;;  %v11787_v7 = vld [vmem:[#allocation8 + $0x9c0] ss:$16 sps:$4 sm:$0xff]  }
 0x2a8   :  { %6075 = vmatpush1.bf16.msra.mxu1 %v11260_v45  ;;  %v11298_v45 = vld [vmem:[#allocation5 + $0x105c] ss:$136 sps:$4 sm:$0xff]  }
 0x2a9   :  { %v12546_v56 = vpop.f32.mrf.mxu1  ;;  %6076 = vmatprep.subr.bf16.mxu1 %v11268_v47  ;;  %v11296_v47 = vld [vmem:[#allocation5 + $0x1058] ss:$136 sps:$4 sm:$0xff]  }
 0x2aa   :  { %6009 = vmatpush2.bf16.msra.mxu0 %v11263_v46  ;;  %v9932_v46 = vcombine.high %v878_v40, %v878_v40 }
 0x2ab   :  { %v5739_v63 = vpop.f32.mrf.mxu1  ;;  %6010 = vmatprep.subr.bf16.mxu0 %v11271_v49  ;;  %v11301_v49 = vld [vmem:[#allocation5 + $0xf4c] ss:$136 sps:$4 sm:$0xff]  }
 0x2ac   :  { %6077 = vmatpush1.bf16.msra.mxu1 %v11266_v54  ;;  %v4981_v54 = vsel %vm4901_vm0, %v9931_v43, 0  ;;  %v11307_v63 = vld [vmem:[#allocation5 + $0x16b8] ss:$136 sps:$4 sm:$0xff]  }
 0x2ad   :  { %v5740_v32 = vpop.f32.mrf.mxu1  ;;  %6078 = vmatprep.subr.bf16.mxu1 %v11274_v4  ;;  %v11299_v4 = vld [vmem:[#allocation5 + $0xf48] ss:$136 sps:$4 sm:$0xff]  }
 0x2ae   :  { %6011 = vmatpush2.bf16.msra.mxu0 %v11269_v1  ;;  %v11309_v1 = vld [vmem:[#allocation5 + $0x16bc] ss:$136 sps:$4 sm:$0xff]   ;;  %v11312_v32 = vld [vmem:[#allocation5 + $0xd2c] ss:$136 sps:$4 sm:$0xff]  }
 0x2af   :  { %6012 = vmatprep.subr.bf16.mxu0 %v11277_v6  ;;  %v11306_v6 = vld [vmem:[#allocation5 + $0xe3c] ss:$136 sps:$4 sm:$0xff]  }
 0x2b0   :  { %6079 = vmatpush1.bf16.msra.mxu1 %v11272_v30  ;;  %v12551_v30 = vld [vmem:[#allocation7 + $0x10] sm:$0xff] }
 0x2b1   :  { %6080 = vmatprep.subr.bf16.mxu1 %v11280_v14  ;;  %v11304_v14 = vld [vmem:[#allocation5 + $0xe38] ss:$136 sps:$4 sm:$0xff]  }
 0x2b2   :  { %6013 = vmatpush2.bf16.msra.mxu0 %v11275_v13  ;;  %v11315_v13 = vld [vmem:[#allocation5 + $0x15ac] ss:$136 sps:$4 sm:$0xff]  }
 0x2b3   :  { %6014 = vmatprep.subr.bf16.mxu0 %v11283_v19  ;;  %v959_v19 = vrot.slane %v12551_v30, %v12364_v36 }
 0x2b4   :  { %6081 = vmatpush1.bf16.msra.mxu1 %v11278_v35  ;;  %v11313_v35 = vld [vmem:[#allocation5 + $0x15a8] ss:$136 sps:$4 sm:$0xff]  }
 0x2b5   :  { %6082 = vmatprep.subr.bf16.mxu1 %v11286_v62  ;;  %v11310_v62 = vld [vmem:[#allocation5 + $0xd28] ss:$136 sps:$4 sm:$0xff]  }
 0x2b6   :  { %6015 = vmatpush2.bf16.msra.mxu0 %v11281_v25  ;;  %v11321_v25 = vld [vmem:[#allocation5 + $0x149c] ss:$136 sps:$4 sm:$0xff]  }
 0x2b7   :  { %6016 = vmatprep.subr.bf16.mxu0 %v11289_v26  ;;  %v963_v26 = vrot.slane %v12551_v30, %v12368_v39 }
 0x2b8   :  { %6083 = vmatpush1.bf16.msra.mxu1 %v11284_v16 }
 0x2b9   :  { %6084 = vmatprep.subr.bf16.mxu1 %v11292_v31 }
 0x2ba   :  { %6017 = vmatpush2.bf16.msra.mxu0 %v11287_v29  ;;  %v11318_v29 = vld [vmem:[#allocation5 + $0xc1c] ss:$136 sps:$4 sm:$0xff]  }
 0x2bb   :  { %6018 = vmatprep.subr.bf16.mxu0 %v11295_v33  ;;  %v11319_v33 = vld [vmem:[#allocation5 + $0x1498] ss:$136 sps:$4 sm:$0xff]  }
 0x2bc   :  { %6085 = vmatpush1.bf16.msra.mxu1 %v11290_v41  ;;  %v11327_v41 = vld [vmem:[#allocation5 + $0x138c] ss:$136 sps:$4 sm:$0xff]  }
 0x2bd   :  { %6086 = vmatprep.subr.bf16.mxu1 %v11298_v45  ;;  %v11316_v45 = vld [vmem:[#allocation5 + $0xc18] ss:$136 sps:$4 sm:$0xff]  }
 0x2be   :  { %6019 = vmatpush2.bf16.msra.mxu0 %v11293_v42 }
 0x2bf   :  { %9965 = vmatprep.subr.msk.bf16.mxu0 %vm4901_vm0, %v9932_v46 }
 0x2c0   :  { %6087 = vmatpush2.bf16.msra.mxu1 %v11296_v47  ;;  %v11324_v47 = vld [vmem:[#allocation5 + $0xb0c] ss:$136 sps:$4 sm:$0xff]  }
 0x2c1   :  { %6021 = vmatmul.mubr.bf16.vlgmr.msra.gmra.mxu0 %v12320_v10  ;;  %6088 = vmatprep.subr.bf16.mxu1 %v11301_v49 }
 0x2c2   :  { %6114 = vmatpush1.bf16.msra.mxu0 %v4981_v54  ;;  %6143 = vmatprep.mubr.bf16.mxu0 %v12246_v0  ;;  %v11325_v54 = vld [vmem:[#allocation5 + $0x1388] ss:$136 sps:$4 sm:$0xff]  }
 0x2c3   :  { %6115 = vmatprep.subr.bf16.mxu0 %v11309_v1 }
 0x2c4   :  { %6089 = vmatpush2.bf16.msra.mxu1 %v11299_v4  ;;  %v11333_v4 = vld [vmem:[#allocation5 + $0x127c] ss:$136 sps:$4 sm:$0xff]  }
 0x2c5   :  { %6090 = vmatprep.subr.bf16.mxu1 %v11306_v6  ;;  %v11322_v6 = vld [vmem:[#allocation5 + $0xb08] ss:$136 sps:$4 sm:$0xff]  }
 0x2c6   :  { %6116 = vmatpush1.bf16.msra.mxu0 %v11307_v63  ;;  %v11330_v63 = vld [vmem:[#allocation5 + $0x9fc] ss:$136 sps:$4 sm:$0xff]  }
 0x2c7   :  { %6117 = vmatprep.subr.bf16.mxu0 %v11315_v13  ;;  %v11339_v13 = vld [vmem:[#allocation5 + $0x116c] ss:$136 sps:$4 sm:$0xff]  }
 0x2c8   :  { %6091 = vmatpush2.bf16.msra.mxu1 %v11304_v14  ;;  %v11328_v14 = vld [vmem:[#allocation5 + $0x9f8] ss:$136 sps:$4 sm:$0xff]  }
 0x2c9   :  { %v5694_v16 = vpop.f32.mrf.mxu0  ;;  %6092 = vmatprep.subr.bf16.mxu1 %v11312_v32  ;;  %v11336_v32 = vld [vmem:[#allocation5 + $0x8ec] ss:$136 sps:$4 sm:$0xff]  }
 0x2ca   :  { %v5695_v31 = vadd.f32 %v5694_v16, %v959_v19  ;;  %6118 = vmatpush1.bf16.msra.mxu0 %v11313_v35  ;;  %v879_v19 = vld [vmem:[#allocation5 + $0x17d0] sm:$0xff]  ;;  %v11342_v35 = vld [vmem:[#allocation5 + $0x7e4] ss:$136 sps:$4 sm:$0xff]   ;;  %v11340_v16 = vld [vmem:[#allocation5 + $0x7e0] ss:$136 sps:$4 sm:$0xff]  }
 0x2cb   :  { %v5696_v40 = vpop.f32.mrf.mxu0  ;;  %6119 = vmatprep.subr.bf16.mxu0 %v11321_v25  ;;  %v11334_v25 = vld [vmem:[#allocation5 + $0x8e8] ss:$136 sps:$4 sm:$0xff]  }
 0x2cc   :  { %v12559_v42 = vadd.f32 %v12544_v5, %v5695_v31  ;;  %6093 = vmatpush2.bf16.msra.mxu1 %v11310_v62  ;;  %v5697_v43 = vadd.f32 %v5696_v40, %v963_v26  ;;  %v11331_v5 = vld [vmem:[#allocation5 + $0x1278] ss:$136 sps:$4 sm:$0xff]   ;;  %v9934_v62 = vcombine.high %v879_v19, %v879_v19  ;;  %v9933_v26 = vcombine.low %v879_v19, %v879_v19 }
 0x2cd   :  { %v5698_v46 = vpop.f32.mrf.mxu0  ;;  %6094 = vmatprep.subr.bf16.mxu1 %v11318_v29  ;;  %v11347_v29 = vld [vmem:[#allocation5 + $0x6d4] ss:$136 sps:$4 sm:$0xff]   ;;  %v11345_v40 = vld [vmem:[#allocation5 + $0x6d0] ss:$136 sps:$4 sm:$0xff]   ;;  %v11360_v19 = vld [vmem:[#allocation5 + $0x14a0] ss:$136 sps:$4 sm:$0xff]  }
 0x2ce   :  { %v12562_v49 = vadd.f32 %v12546_v56, %v5697_v43  ;;  %6120 = vmatpush1.bf16.msra.mxu0 %v11319_v33  ;;  %v11337_v56 = vld [vmem:[#allocation5 + $0x1168] ss:$136 sps:$4 sm:$0xff]   ;;  %v4987_v31 = vsel %vm4901_vm0, %v9933_v26, 0  ;;  %v11350_v33 = vld [vmem:[#allocation5 + $0x16c4] ss:$136 sps:$4 sm:$0xff]  }
 0x2cf   :  { %v5699_v1 = vpop.f32.mrf.mxu0  ;;  %6121 = vmatprep.subr.bf16.mxu0 %v11327_v41  ;;  %v11353_v41 = vld [vmem:[#allocation5 + $0x5c4] ss:$136 sps:$4 sm:$0xff]   ;;  %v11348_v43 = vld [vmem:[#allocation5 + $0x16c0] ss:$136 sps:$4 sm:$0xff]  }
 0x2d0   :  { %6095 = vmatpush2.bf16.msra.mxu1 %v11316_v45  ;;  %v11356_v45 = vld [vmem:[#allocation5 + $0x15b4] ss:$136 sps:$4 sm:$0xff]   ;;  %v11351_v46 = vld [vmem:[#allocation5 + $0x5c0] ss:$136 sps:$4 sm:$0xff]   ;;  %v11354_v1 = vld [vmem:[#allocation5 + $0x15b0] ss:$136 sps:$4 sm:$0xff]  }
 0x2d1   :  { %6096 = vmatprep.subr.bf16.mxu1 %v11324_v47  ;;  %v11359_v47 = vld [vmem:[#allocation5 + $0x4b4] ss:$136 sps:$4 sm:$0xff]  }
 0x2d2   :  { %6122 = vmatpush1.bf16.msra.mxu0 %v11325_v54  ;;  %v967_v54 = vrot.slane %v12551_v30, %v12387_v20 }
 0x2d3   :  { %6123 = vmatprep.subr.bf16.mxu0 %v11333_v4 }
 0x2d4   :  { %6097 = vmatpush2.bf16.msra.mxu1 %v11322_v6  ;;  %v11362_v6 = vld [vmem:[#allocation5 + $0x14a4] ss:$136 sps:$4 sm:$0xff]  }
 0x2d5   :  { %6098 = vmatprep.subr.bf16.mxu1 %v11330_v63  ;;  %v971_v63 = vrot.slane %v12551_v30, %v12391_v22 }
 0x2d6   :  { %6124 = vmatpush1.bf16.msra.mxu0 %v11331_v5  ;;  %v11357_v5 = vld [vmem:[#allocation5 + $0x4b0] ss:$136 sps:$4 sm:$0xff]  }
 0x2d7   :  { %6125 = vmatprep.subr.bf16.mxu0 %v11339_v13 }
 0x2d8   :  { %6099 = vmatpush2.bf16.msra.mxu1 %v11328_v14 }
 0x2d9   :  { %6100 = vmatprep.subr.bf16.mxu1 %v11336_v32  ;;  %v11365_v32 = vld [vmem:[#allocation5 + $0x3a4] ss:$136 sps:$4 sm:$0xff]  }
 0x2da   :  { %6126 = vmatpush1.bf16.msra.mxu0 %v11337_v56 }
 0x2db   :  { %6152 = vmatprep.subr.bf16.mxu0 %v11342_v35 }
 0x2dc   :  { %6101 = vmatpush2.bf16.msra.mxu1 %v11334_v25 }
 0x2dd   :  { %9966 = vmatmul.mubr.msk.bf16.vlgmr.msra.gmra.mxu0 %vm4897_vm1, %v12539_v18  ;;  %9967 = vmatprep.subr.msk.bf16.mxu1 %vm4901_vm0, %v9934_v62  ;;  %v11368_v62 = vld [vmem:[#allocation5 + $0x1394] ss:$136 sps:$4 sm:$0xff]  }
 0x2de   :  { %6153 = vmatpush1.bf16.msra.mxu0 %v11340_v16  ;;  %6184 = vmatprep.mubr.bf16.mxu0 %v12316_v52 }
 0x2df   :  { %6103 = vmatmul.mubr.bf16.vlgmr.msra.gmra.mxu1 %v12320_v10  ;;  %6154 = vmatprep.subr.bf16.mxu0 %v11347_v29  ;;  %v11363_v29 = vld [vmem:[#allocation5 + $0x3a0] ss:$136 sps:$4 sm:$0xff]  }
 0x2e0   :  { %6196 = vmatpush1.bf16.msra.mxu1 %v4987_v31  ;;  %6225 = vmatprep.mubr.bf16.mxu1 %v12246_v0 }
 0x2e1   :  { %6197 = vmatprep.subr.bf16.mxu1 %v11350_v33 }
 0x2e2   :  { %6155 = vmatpush1.bf16.msra.mxu0 %v11345_v40  ;;  %v11371_v40 = vld [vmem:[#allocation5 + $0x294] ss:$136 sps:$4 sm:$0xff]  }
 0x2e3   :  { %6156 = vmatprep.subr.bf16.mxu0 %v11353_v41 }
 0x2e4   :  { %6198 = vmatpush1.bf16.msra.mxu1 %v11348_v43  ;;  %v11366_v43 = vld [vmem:[#allocation5 + $0x1390] ss:$136 sps:$4 sm:$0xff]  }
 0x2e5   :  { %v5817_v4 = vpop.f32.mrf.mxu0  ;;  %6199 = vmatprep.subr.bf16.mxu1 %v11356_v45 }
 0x2e6   :  { %6157 = vmatpush1.bf16.msra.mxu0 %v11351_v46  ;;  %v11374_v46 = vld [vmem:[#allocation5 + $0x1284] ss:$136 sps:$4 sm:$0xff]  }
 0x2e7   :  { %v5776_v13 = vpop.f32.mrf.mxu1  ;;  %v5819_v14 = vpop.f32.mrf.mxu0  ;;  %6158 = vmatprep.subr.bf16.mxu0 %v11359_v47  ;;  %v11369_v47 = vld [vmem:[#allocation5 + $0x290] ss:$136 sps:$4 sm:$0xff]  }
 0x2e8   :  { %v5777_v56 = vadd.f32 %v5776_v13, %v967_v54  ;;  %6200 = vmatpush1.bf16.msra.mxu1 %v11354_v1  ;;  %v11377_v54 = vld [vmem:[#allocation5 + $0x184] ss:$136 sps:$4 sm:$0xff]   ;;  %v11372_v1 = vld [vmem:[#allocation5 + $0x1280] ss:$136 sps:$4 sm:$0xff]  }
 0x2e9   :  { %v5778_v35 = vpop.f32.mrf.mxu1  ;;  %v5821_v25 = vpop.f32.mrf.mxu0  ;;  %6201 = vmatprep.subr.bf16.mxu1 %v11362_v6  ;;  %v11375_v6 = vld [vmem:[#allocation5 + $0x180] ss:$136 sps:$4 sm:$0xff]   ;;  %v11386_v13 = vld [vmem:[#allocation5 + $0x7ec] ss:$136 sps:$4 sm:$0xff]  }
 0x2ea   :  { %v12575_v26 = vadd.f32 %v5817_v4, %v5777_v56  ;;  %v5779_v16 = vadd.f32 %v5778_v35, %v971_v63  ;;  %6159 = vmatpush1.bf16.msra.mxu0 %v11357_v5  ;;  %v11380_v4 = vld [vmem:[#allocation5 + $0x1174] ss:$136 sps:$4 sm:$0xff]   ;;  %v11378_v5 = vld [vmem:[#allocation5 + $0x1170] ss:$136 sps:$4 sm:$0xff]   ;;  %v11387_v35 = vld [vmem:[#allocation5 + $0x1060] ss:$136 sps:$4 sm:$0xff]  }
 0x2eb   :  { %v5780_v31 = vpop.f32.mrf.mxu1  ;;  %v5822_v33 = vpop.f32.mrf.mxu0  ;;  %6160 = vmatprep.subr.bf16.mxu0 %v11365_v32  ;;  %v11383_v63 = vld [vmem:[#allocation5 + $0x74] ss:$136 sps:$4 sm:$0xff]   ;;  %v11389_v32 = vld [vmem:[#allocation5 + $0x1064] ss:$136 sps:$4 sm:$0xff]   ;;  %v11384_v56 = vld [vmem:[#allocation5 + $0x7e8] ss:$136 sps:$4 sm:$0xff]  }
 0x2ec   :  { %v12577_v41 = vadd.f32 %v5819_v14, %v5779_v16  ;;  %6202 = vmatpush1.bf16.msra.mxu1 %v11360_v19  ;;  %v11381_v14 = vld [vmem:[#allocation5 + $0x70] ss:$136 sps:$4 sm:$0xff]   ;;  %v11392_v19 = vld [vmem:[#allocation5 + $0x6dc] ss:$136 sps:$4 sm:$0xff]   ;;  %v11398_v16 = vld [vmem:[#allocation5 + $0x5cc] ss:$136 sps:$4 sm:$0xff]  }
 0x2ed   :  { %v5781_v45 = vpop.f32.mrf.mxu1  ;;  %6203 = vmatprep.subr.bf16.mxu1 %v11368_v62  ;;  %v11395_v25 = vld [vmem:[#allocation5 + $0xf54] ss:$136 sps:$4 sm:$0xff]   ;;  %v11390_v62 = vld [vmem:[#allocation5 + $0x6d8] ss:$136 sps:$4 sm:$0xff]   ;;  %v11401_v31 = vld [vmem:[#allocation5 + $0xe44] ss:$136 sps:$4 sm:$0xff]  }
 0x2ee   :  { %6161 = vmatpush1.bf16.msra.mxu0 %v11363_v29  ;;  %v11393_v29 = vld [vmem:[#allocation5 + $0xf50] ss:$136 sps:$4 sm:$0xff]  }
 0x2ef   :  { %6162 = vmatprep.subr.bf16.mxu0 %v11371_v40  ;;  %v11396_v33 = vld [vmem:[#allocation5 + $0x5c8] ss:$136 sps:$4 sm:$0xff]   ;;  %v11404_v40 = vld [vmem:[#allocation5 + $0x4bc] ss:$136 sps:$4 sm:$0xff]  }
 0x2f0   :  { %6204 = vmatpush1.bf16.msra.mxu1 %v11366_v43  ;;  %v11399_v43 = vld [vmem:[#allocation5 + $0xe40] ss:$136 sps:$4 sm:$0xff]  }
 0x2f1   :  { %6205 = vmatprep.subr.bf16.mxu1 %v11374_v46  ;;  %v11407_v46 = vld [vmem:[#allocation5 + $0xd34] ss:$136 sps:$4 sm:$0xff]  }
 0x2f2   :  { %6163 = vmatpush1.bf16.msra.mxu0 %v11369_v47  ;;  %v11402_v47 = vld [vmem:[#allocation5 + $0x4b8] ss:$136 sps:$4 sm:$0xff]  }
 0x2f3   :  { %6164 = vmatprep.subr.bf16.mxu0 %v11377_v54 }
 0x2f4   :  { %6206 = vmatpush1.bf16.msra.mxu1 %v11372_v1  ;;  %v11410_v1 = vld [vmem:[#allocation5 + $0x3ac] ss:$136 sps:$4 sm:$0xff]  }
 0x2f5   :  { %6207 = vmatprep.subr.bf16.mxu1 %v11380_v4  ;;  %v11405_v4 = vld [vmem:[#allocation5 + $0xd30] ss:$136 sps:$4 sm:$0xff]  }
 0x2f6   :  { %6165 = vmatpush1.bf16.msra.mxu0 %v11375_v6 }
 0x2f7   :  { %6166 = vmatprep.subr.bf16.mxu0 %v11383_v63  ;;  %v11413_v63 = vld [vmem:[#allocation5 + $0xc24] ss:$136 sps:$4 sm:$0xff]  }
 0x2f8   :  { %6208 = vmatpush1.bf16.msra.mxu1 %v11378_v5  ;;  %v11408_v5 = vld [vmem:[#allocation5 + $0x3a8] ss:$136 sps:$4 sm:$0xff]  }
 0x2f9   :  { %6234 = vmatprep.subr.bf16.mxu1 %v11386_v13 }
 0x2fa   :  { %6167 = vmatpush1.bf16.msra.mxu0 %v11381_v14  ;;  %v11416_v14 = vld [vmem:[#allocation5 + $0x29c] ss:$136 sps:$4 sm:$0xff]  }
 0x2fb   :  { %9968 = vmatmul.mubr.msk.bf16.vlgmr.msra.gmra.mxu1 %vm4897_vm1, %v12539_v18  ;;  %6168 = vmatprep.subr.bf16.mxu0 %v11389_v32  ;;  %v11411_v32 = vld [vmem:[#allocation5 + $0xc20] ss:$136 sps:$4 sm:$0xff]  }
 0x2fc   :  { %6235 = vmatpush1.bf16.msra.mxu1 %v11384_v56  ;;  %6266 = vmatprep.mubr.bf16.mxu1 %v12316_v52  ;;  %v11419_v56 = vld [vmem:[#allocation5 + $0xb14] ss:$136 sps:$4 sm:$0xff]  }
 0x2fd   :  { %6236 = vmatprep.subr.bf16.mxu1 %v11392_v19  ;;  %v11414_v19 = vld [vmem:[#allocation5 + $0x298] ss:$136 sps:$4 sm:$0xff]  }
 0x2fe   :  { %6169 = vmatpush2.bf16.msra.mxu0 %v11387_v35  ;;  %v11422_v35 = vld [vmem:[#allocation5 + $0x18c] ss:$136 sps:$4 sm:$0xff]  }
 0x2ff   :  { %6170 = vmatprep.subr.bf16.mxu0 %v11395_v25  ;;  %v11417_v25 = vld [vmem:[#allocation5 + $0xb10] ss:$136 sps:$4 sm:$0xff]  }
 0x300   :  { %6237 = vmatpush1.bf16.msra.mxu1 %v11390_v62  ;;  %v11425_v62 = vld [vmem:[#allocation5 + $0xa04] ss:$136 sps:$4 sm:$0xff]  }
 0x301   :  { %6238 = vmatprep.subr.bf16.mxu1 %v11398_v16  ;;  %v11420_v16 = vld [vmem:[#allocation5 + $0x188] ss:$136 sps:$4 sm:$0xff]  }
 0x302   :  { %6171 = vmatpush2.bf16.msra.mxu0 %v11393_v29  ;;  %v11428_v29 = vld [vmem:[#allocation5 + $0x7c] ss:$136 sps:$4 sm:$0xff]  }
 0x303   :  { %v12582_v45 = vpop.f32.mrf.mxu1  ;;  %6172 = vmatprep.subr.bf16.mxu0 %v11401_v31  ;;  %v11423_v31 = vld [vmem:[#allocation5 + $0xa00] ss:$136 sps:$4 sm:$0xff]  }
 0x304   :  { %6239 = vmatpush1.bf16.msra.mxu1 %v11396_v33  ;;  %v11431_v33 = vld [vmem:[#allocation5 + $0x8f4] ss:$136 sps:$4 sm:$0xff]  }
 0x305   :  { %v12584_v54 = vpop.f32.mrf.mxu1  ;;  %6240 = vmatprep.subr.bf16.mxu1 %v11404_v40  ;;  %v11426_v40 = vld [vmem:[#allocation5 + $0x78] ss:$136 sps:$4 sm:$0xff]  }
 0x306   :  { %6173 = vmatpush2.bf16.msra.mxu0 %v11399_v43  ;;  %v880_v43 = vld [vmem:[#allocation5 + $0x17d8] sm:$0xff] }
 0x307   :  { %v5903_v6 = vpop.f32.mrf.mxu1  ;;  %6174 = vmatprep.subr.bf16.mxu0 %v11407_v46  ;;  %v11434_v46 = vld [vmem:[#allocation5 + $0x106c] ss:$136 sps:$4 sm:$0xff]  }
 0x308   :  { %6241 = vmatpush1.bf16.msra.mxu1 %v11402_v47  ;;  %v11429_v47 = vld [vmem:[#allocation5 + $0x8f0] ss:$136 sps:$4 sm:$0xff]  }
 0x309   :  { %v5904_v13 = vpop.f32.mrf.mxu1  ;;  %6242 = vmatprep.subr.bf16.mxu1 %v11410_v1  ;;  %v9936_v1 = vcombine.high %v880_v43, %v880_v43  ;;  %v11432_v6 = vld [vmem:[#allocation5 + $0x1068] ss:$136 sps:$4 sm:$0xff]  }
 0x30a   :  { %6175 = vmatpush2.bf16.msra.mxu0 %v11405_v4  ;;  %v9935_v4 = vcombine.low %v880_v43, %v880_v43  ;;  %v11445_v13 = vld [vmem:[#allocation5 + $0x16cc] ss:$136 sps:$4 sm:$0xff]  }
 0x30b   :  { %6176 = vmatprep.subr.bf16.mxu0 %v11413_v63  ;;  %v11437_v63 = vld [vmem:[#allocation5 + $0xf5c] ss:$136 sps:$4 sm:$0xff]   ;;  %v11454_v43 = vld [vmem:[#allocation5 + $0xc2c] ss:$136 sps:$4 sm:$0xff]  }
 0x30c   :  { %6243 = vmatpush1.bf16.msra.mxu1 %v11408_v5  ;;  %v4993_v5 = vsel %vm4901_vm0, %v9935_v4, 0  ;;  %v11463_v4 = vld [vmem:[#allocation5 + $0x139c] ss:$136 sps:$4 sm:$0xff]  }
 0x30d   :  { %6244 = vmatprep.subr.bf16.mxu1 %v11416_v14  ;;  %v11435_v14 = vld [vmem:[#allocation5 + $0xf58] ss:$136 sps:$4 sm:$0xff]  }
 0x30e   :  { %6177 = vmatpush2.bf16.msra.mxu0 %v11411_v32  ;;  %v11442_v32 = vld [vmem:[#allocation5 + $0xe4c] ss:$136 sps:$4 sm:$0xff]  }
 0x30f   :  { %6178 = vmatprep.subr.bf16.mxu0 %v11419_v56  ;;  %v11443_v56 = vld [vmem:[#allocation5 + $0x16c8] ss:$136 sps:$4 sm:$0xff]  }
 0x310   :  { %6245 = vmatpush1.bf16.msra.mxu1 %v11414_v19  ;;  %v11451_v19 = vld [vmem:[#allocation5 + $0x15bc] ss:$136 sps:$4 sm:$0xff]  }
 0x311   :  { %6246 = vmatprep.subr.bf16.mxu1 %v11422_v35  ;;  %v11440_v35 = vld [vmem:[#allocation5 + $0xe48] ss:$136 sps:$4 sm:$0xff]  }
 0x312   :  { %6179 = vmatpush2.bf16.msra.mxu0 %v11417_v25  ;;  %v11448_v25 = vld [vmem:[#allocation5 + $0xd3c] ss:$136 sps:$4 sm:$0xff]  }
 0x313   :  { %6180 = vmatprep.subr.bf16.mxu0 %v11425_v62  ;;  %v975_v62 = vrot.slane %v12551_v30, %v12414_v59 }
 0x314   :  { %6247 = vmatpush1.bf16.msra.mxu1 %v11420_v16  ;;  %v11449_v16 = vld [vmem:[#allocation5 + $0x15b8] ss:$136 sps:$4 sm:$0xff]  }
 0x315   :  { %6248 = vmatprep.subr.bf16.mxu1 %v11428_v29  ;;  %v11457_v29 = vld [vmem:[#allocation5 + $0x14ac] ss:$136 sps:$4 sm:$0xff]  }
 0x316   :  { %6181 = vmatpush2.bf16.msra.mxu0 %v11423_v31  ;;  %v11446_v31 = vld [vmem:[#allocation5 + $0xd38] ss:$136 sps:$4 sm:$0xff]  }
 0x317   :  { %6182 = vmatprep.subr.bf16.mxu0 %v11431_v33  ;;  %v979_v33 = vrot.slane %v12551_v30, %v12418_v2 }
 0x318   :  { %6249 = vmatpush1.bf16.msra.mxu1 %v11426_v40 }
 0x319   :  { %6250 = vmatprep.subr.bf16.mxu1 %v11434_v46 }
 0x31a   :  { %6183 = vmatpush2.bf16.msra.mxu0 %v11429_v47  ;;  %v11455_v47 = vld [vmem:[#allocation5 + $0x14a8] ss:$136 sps:$4 sm:$0xff]  }
 0x31b   :  { %9969 = vmatprep.subr.msk.bf16.mxu0 %vm4901_vm0, %v9936_v1 }
 0x31c   :  { %6251 = vmatpush2.bf16.msra.mxu1 %v11432_v6 }
 0x31d   :  { %6185 = vmatmul.mubr.bf16.vlgmr.msra.gmra.mxu0 %v12320_v10  ;;  %6252 = vmatprep.subr.bf16.mxu1 %v11437_v63 }
 0x31e   :  { %6278 = vmatpush1.bf16.msra.mxu0 %v4993_v5  ;;  %6307 = vmatprep.mubr.bf16.mxu0 %v12246_v0  ;;  %v11452_v5 = vld [vmem:[#allocation5 + $0xc28] ss:$136 sps:$4 sm:$0xff]  }
 0x31f   :  { %6279 = vmatprep.subr.bf16.mxu0 %v11445_v13 }
 0x320   :  { %6253 = vmatpush2.bf16.msra.mxu1 %v11435_v14  ;;  %v11460_v14 = vld [vmem:[#allocation5 + $0xb1c] ss:$136 sps:$4 sm:$0xff]  }
 0x321   :  { %6254 = vmatprep.subr.bf16.mxu1 %v11442_v32 }
 0x322   :  { %6280 = vmatpush1.bf16.msra.mxu0 %v11443_v56  ;;  %v11461_v56 = vld [vmem:[#allocation5 + $0x1398] ss:$136 sps:$4 sm:$0xff]  }
 0x323   :  { %6281 = vmatprep.subr.bf16.mxu0 %v11451_v19 }
 0x324   :  { %6255 = vmatpush2.bf16.msra.mxu1 %v11440_v35  ;;  %v11469_v35 = vld [vmem:[#allocation5 + $0x128c] ss:$136 sps:$4 sm:$0xff]  }
 0x325   :  { %v5858_v40 = vpop.f32.mrf.mxu0  ;;  %6256 = vmatprep.subr.bf16.mxu1 %v11448_v25  ;;  %v11458_v25 = vld [vmem:[#allocation5 + $0xb18] ss:$136 sps:$4 sm:$0xff]  }
 0x326   :  { %v5859_v46 = vadd.f32 %v5858_v40, %v975_v62  ;;  %6282 = vmatpush1.bf16.msra.mxu0 %v11449_v16  ;;  %v11466_v62 = vld [vmem:[#allocation5 + $0xa0c] ss:$136 sps:$4 sm:$0xff]   ;;  %v11475_v16 = vld [vmem:[#allocation5 + $0x117c] ss:$136 sps:$4 sm:$0xff]  }
 0x327   :  { %v5860_v1 = vpop.f32.mrf.mxu0  ;;  %6283 = vmatprep.subr.bf16.mxu0 %v11457_v29  ;;  %v11464_v29 = vld [vmem:[#allocation5 + $0xa08] ss:$136 sps:$4 sm:$0xff]   ;;  %v11478_v40 = vld [vmem:[#allocation5 + $0x7f4] ss:$136 sps:$4 sm:$0xff]  }
 0x328   :  { %v12595_v6 = vadd.f32 %v12582_v45, %v5859_v46  ;;  %6257 = vmatpush2.bf16.msra.mxu1 %v11446_v31  ;;  %v5861_v63 = vadd.f32 %v5860_v1, %v979_v33  ;;  %v11467_v45 = vld [vmem:[#allocation5 + $0x1288] ss:$136 sps:$4 sm:$0xff]   ;;  %v11472_v31 = vld [vmem:[#allocation5 + $0x8fc] ss:$136 sps:$4 sm:$0xff]  }
 0x329   :  { %v5862_v13 = vpop.f32.mrf.mxu0  ;;  %6258 = vmatprep.subr.bf16.mxu1 %v11454_v43  ;;  %v881_v33 = vld [vmem:[#allocation5 + $0x17e0] sm:$0xff]  ;;  %v11476_v1 = vld [vmem:[#allocation5 + $0x7f0] ss:$136 sps:$4 sm:$0xff]  }
 0x32a   :  { %v12598_v32 = vadd.f32 %v12584_v54, %v5861_v63  ;;  %6284 = vmatpush1.bf16.msra.mxu0 %v11455_v47  ;;  %v11473_v54 = vld [vmem:[#allocation5 + $0x1178] ss:$136 sps:$4 sm:$0xff]   ;;  %v9938_v46 = vcombine.high %v881_v33, %v881_v33  ;;  %v9937_v47 = vcombine.low %v881_v33, %v881_v33 }
 0x32b   :  { %v5863_v19 = vpop.f32.mrf.mxu0  ;;  %6285 = vmatprep.subr.bf16.mxu0 %v11463_v4  ;;  %v11470_v43 = vld [vmem:[#allocation5 + $0x8f8] ss:$136 sps:$4 sm:$0xff]   ;;  %v11483_v4 = vld [vmem:[#allocation5 + $0x6e4] ss:$136 sps:$4 sm:$0xff]  }
 0x32c   :  { %6259 = vmatpush2.bf16.msra.mxu1 %v11452_v5  ;;  %v4999_v63 = vsel %vm4901_vm0, %v9937_v47, 0  ;;  %v11486_v5 = vld [vmem:[#allocation5 + $0x16d4] ss:$136 sps:$4 sm:$0xff]   ;;  %v11481_v13 = vld [vmem:[#allocation5 + $0x6e0] ss:$136 sps:$4 sm:$0xff]  }
 0x32d   :  { %6260 = vmatprep.subr.bf16.mxu1 %v11460_v14  ;;  %v11489_v14 = vld [vmem:[#allocation5 + $0x5d4] ss:$136 sps:$4 sm:$0xff]   ;;  %v11492_v19 = vld [vmem:[#allocation5 + $0x15c4] ss:$136 sps:$4 sm:$0xff]  }
 0x32e   :  { %6286 = vmatpush1.bf16.msra.mxu0 %v11461_v56  ;;  %v11484_v56 = vld [vmem:[#allocation5 + $0x16d0] ss:$136 sps:$4 sm:$0xff]   ;;  %v11504_v47 = vld [vmem:[#allocation5 + $0x13a4] ss:$136 sps:$4 sm:$0xff]  }
 0x32f   :  { %6287 = vmatprep.subr.bf16.mxu0 %v11469_v35  ;;  %v11495_v35 = vld [vmem:[#allocation5 + $0x4c4] ss:$136 sps:$4 sm:$0xff]  }
 0x330   :  { %6261 = vmatpush2.bf16.msra.mxu1 %v11458_v25  ;;  %v983_v25 = vrot.slane %v12551_v30, %v12437_v50 }
 0x331   :  { %6262 = vmatprep.subr.bf16.mxu1 %v11466_v62  ;;  %v11490_v62 = vld [vmem:[#allocation5 + $0x15c0] ss:$136 sps:$4 sm:$0xff]  }
 0x332   :  { %6288 = vmatpush1.bf16.msra.mxu0 %v11467_v45  ;;  %v11498_v45 = vld [vmem:[#allocation5 + $0x14b4] ss:$136 sps:$4 sm:$0xff]  }
 0x333   :  { %6289 = vmatprep.subr.bf16.mxu0 %v11475_v16  ;;  %v987_v16 = vrot.slane %v12551_v30, %v12441_v55  ;;  %v11507_v30 = vld [vmem:[#allocation5 + $0x2a4] ss:$136 sps:$4 sm:$0xff]  }
 0x334   :  { %6263 = vmatpush2.bf16.msra.mxu1 %v11464_v29  ;;  %v11493_v29 = vld [vmem:[#allocation5 + $0x4c0] ss:$136 sps:$4 sm:$0xff]  }
 0x335   :  { %6264 = vmatprep.subr.bf16.mxu1 %v11472_v31 }
 0x336   :  { %6290 = vmatpush1.bf16.msra.mxu0 %v11473_v54  ;;  %v11501_v54 = vld [vmem:[#allocation5 + $0x3b4] ss:$136 sps:$4 sm:$0xff]  }
 0x337   :  { %6316 = vmatprep.subr.bf16.mxu0 %v11478_v40  ;;  %v11496_v40 = vld [vmem:[#allocation5 + $0x14b0] ss:$136 sps:$4 sm:$0xff]  }
 0x338   :  { %6265 = vmatpush2.bf16.msra.mxu1 %v11470_v43 }
 0x339   :  { %9970 = vmatmul.mubr.msk.bf16.vlgmr.msra.gmra.mxu0 %vm4897_vm1, %v12539_v18  ;;  %9971 = vmatprep.subr.msk.bf16.mxu1 %vm4901_vm0, %v9938_v46  ;;  %v11487_v18 = vld [vmem:[#allocation5 + $0x5d0] ss:$136 sps:$4 sm:$0xff]  }
 0x33a   :  { %6317 = vmatpush1.bf16.msra.mxu0 %v11476_v1  ;;  %6348 = vmatprep.mubr.bf16.mxu0 %v12316_v52 }
 0x33b   :  { %6267 = vmatmul.mubr.bf16.vlgmr.msra.gmra.mxu1 %v12320_v10  ;;  %6318 = vmatprep.subr.bf16.mxu0 %v11483_v4 }
 0x33c   :  { %6360 = vmatpush1.bf16.msra.mxu1 %v4999_v63  ;;  %6389 = vmatprep.mubr.bf16.mxu1 %v12246_v0  ;;  %v11499_v63 = vld [vmem:[#allocation5 + $0x3b0] ss:$136 sps:$4 sm:$0xff]  }
 0x33d   :  { %6361 = vmatprep.subr.bf16.mxu1 %v11486_v5 }
 0x33e   :  { %6319 = vmatpush1.bf16.msra.mxu0 %v11481_v13 }
 0x33f   :  { %6320 = vmatprep.subr.bf16.mxu0 %v11489_v14 }
 0x340   :  { %6362 = vmatpush1.bf16.msra.mxu1 %v11484_v56  ;;  %v11502_v56 = vld [vmem:[#allocation5 + $0x13a0] ss:$136 sps:$4 sm:$0xff]  }
 0x341   :  { %v5981_v52 = vpop.f32.mrf.mxu0  ;;  %6363 = vmatprep.subr.bf16.mxu1 %v11492_v19 }
 0x342   :  { %6321 = vmatpush1.bf16.msra.mxu0 %v11487_v18  ;;  %v11510_v18 = vld [vmem:[#allocation5 + $0x1294] ss:$136 sps:$4 sm:$0xff]  }
 0x343   :  { %v5940_v0 = vpop.f32.mrf.mxu1  ;;  %v5983_v31 = vpop.f32.mrf.mxu0  ;;  %6322 = vmatprep.subr.bf16.mxu0 %v11495_v35  ;;  %v11505_v35 = vld [vmem:[#allocation5 + $0x2a0] ss:$136 sps:$4 sm:$0xff]  }
 0x344   :  { %v5941_v33 = vadd.f32 %v5940_v0, %v983_v25  ;;  %6364 = vmatpush1.bf16.msra.mxu1 %v11490_v62  ;;  %v11513_v25 = vld [vmem:[#allocation5 + $0x194] ss:$136 sps:$4 sm:$0xff]   ;;  %v11508_v62 = vld [vmem:[#allocation5 + $0x1290] ss:$136 sps:$4 sm:$0xff]  }
 0x345   :  { %v5942_v43 = vpop.f32.mrf.mxu1  ;;  %v5985_v46 = vpop.f32.mrf.mxu0  ;;  %6365 = vmatprep.subr.bf16.mxu1 %v11498_v45  ;;  %v11511_v45 = vld [vmem:[#allocation5 + $0x190] ss:$136 sps:$4 sm:$0xff]  }
 0x346   :  { %v12611_v1 = vadd.f32 %v5981_v52, %v5941_v33  ;;  %v5943_v4 = vadd.f32 %v5942_v43, %v987_v16  ;;  %6323 = vmatpush1.bf16.msra.mxu0 %v11493_v29  ;;  %v11516_v52 = vld [vmem:[#allocation5 + $0x1184] ss:$136 sps:$4 sm:$0xff]   ;;  %v11514_v29 = vld [vmem:[#allocation5 + $0x1180] ss:$136 sps:$4 sm:$0xff]   ;;  %v11523_v43 = vld [vmem:[#allocation5 + $0x1070] ss:$136 sps:$4 sm:$0xff]  }
 0x347   :  { %v5944_v5 = vpop.f32.mrf.mxu1  ;;  %v5986_v13 = vpop.f32.mrf.mxu0  ;;  %6324 = vmatprep.subr.bf16.mxu0 %v11501_v54  ;;  %v11519_v16 = vld [vmem:[#allocation5 + $0x84] ss:$136 sps:$4 sm:$0xff]   ;;  %v11525_v54 = vld [vmem:[#allocation5 + $0x1074] ss:$136 sps:$4 sm:$0xff]  }
 0x348   :  { %v12613_v14 = vadd.f32 %v5983_v31, %v5943_v4  ;;  %6366 = vmatpush1.bf16.msra.mxu1 %v11496_v40  ;;  %v11522_v0 = vld [vmem:[#allocation8 + $0xe4] ss:$16 sps:$4 sm:$0xff]   ;;  %v11520_v33 = vld [vmem:[#allocation8 + $0xe0] ss:$16 sps:$4 sm:$0xff]  }
 0x349   :  { %v5945_v19 = vpop.f32.mrf.mxu1  ;;  %6367 = vmatprep.subr.bf16.mxu1 %v11504_v47  ;;  %v11517_v31 = vld [vmem:[#allocation5 + $0x80] ss:$136 sps:$4 sm:$0xff]   ;;  %v12062_v46 = vld [vmem:[#allocation2 + $0x8] ss:$0 sps:$4 sm:$0xff]   ;;  %v11531_v47 = vld [vmem:[#allocation5 + $0xf64] ss:$136 sps:$4 sm:$0xff]  }
 0x34a   :  { %6325 = vmatpush1.bf16.msra.mxu0 %v11499_v63  ;;  %v11528_v40 = vld [vmem:[#allocation8 + $0xc4] ss:$16 sps:$4 sm:$0xff]   ;;  %v11526_v4 = vld [vmem:[#allocation8 + $0xc0] ss:$16 sps:$4 sm:$0xff]  }
 0x34b   :  { %6326 = vmatprep.subr.bf16.mxu0 %v11507_v30  ;;  %v11534_v63 = vld [vmem:[#allocation8 + $0xa4] ss:$16 sps:$4 sm:$0xff]   ;;  %v11532_v30 = vld [vmem:[#allocation8 + $0xa0] ss:$16 sps:$4 sm:$0xff]  }
 0x34c   :  { %6368 = vmatpush1.bf16.msra.mxu1 %v11502_v56  ;;  %v11529_v5 = vld [vmem:[#allocation5 + $0xf60] ss:$136 sps:$4 sm:$0xff]   ;;  %v11537_v13 = vld [vmem:[#allocation5 + $0xe54] ss:$136 sps:$4 sm:$0xff]   ;;  %v11535_v19 = vld [vmem:[#allocation5 + $0xe50] ss:$136 sps:$4 sm:$0xff]  }
 0x34d   :  { %6369 = vmatprep.subr.bf16.mxu1 %v11510_v18  ;;  %v11540_v56 = vld [vmem:[#allocation8 + $0x84] ss:$16 sps:$4 sm:$0xff]  }
 0x34e   :  { %6327 = vmatpush1.bf16.msra.mxu0 %v11505_v35  ;;  %v11543_v35 = vld [vmem:[#allocation5 + $0xd44] ss:$136 sps:$4 sm:$0xff]  }
 0x34f   :  { %6328 = vmatprep.subr.bf16.mxu0 %v11513_v25  ;;  %v11538_v25 = vld [vmem:[#allocation8 + $0x80] ss:$16 sps:$4 sm:$0xff]  }
 0x350   :  { %6370 = vmatpush1.bf16.msra.mxu1 %v11508_v62 }
 0x351   :  { %6371 = vmatprep.subr.bf16.mxu1 %v11516_v52  ;;  %v11546_v52 = vld [vmem:[#allocation8 + $0x64] ss:$16 sps:$4 sm:$0xff]  }
 0x352   :  { %6329 = vmatpush1.bf16.msra.mxu0 %v11511_v45  ;;  %v11541_v45 = vld [vmem:[#allocation5 + $0xd40] ss:$136 sps:$4 sm:$0xff]  }
 0x353   :  { %6330 = vmatprep.subr.bf16.mxu0 %v11519_v16 }
 0x354   :  { %6372 = vmatpush1.bf16.msra.mxu1 %v11514_v29  ;;  %v11549_v29 = vld [vmem:[#allocation5 + $0xc34] ss:$136 sps:$4 sm:$0xff]  }
 0x355   :  { %8374 = vmatprep.subr.bf16.mxu1 %v11522_v0  ;;  %v11544_v0 = vld [vmem:[#allocation8 + $0x60] ss:$16 sps:$4 sm:$0xff]  }
 0x356   :  { %6331 = vmatpush1.bf16.msra.mxu0 %v11517_v31 }
 0x357   :  { %9972 = vmatmul.mubr.msk.bf16.vlgmr.msra.gmra.mxu1 %vm4897_vm1, %v12062_v46  ;;  %6332 = vmatprep.subr.bf16.mxu0 %v11525_v54  ;;  %v11552_v54 = vld [vmem:[#allocation8 + $0x44] ss:$16 sps:$4 sm:$0xff]  }
 0x358   :  { %8375 = vmatpush1.bf16.msra.mxu1 %v11520_v33  ;;  %v11547_v33 = vld [vmem:[#allocation5 + $0xc30] ss:$136 sps:$4 sm:$0xff]  }
 0x359   :  { %8376 = vmatprep.subr.bf16.mxu1 %v11528_v40  ;;  %v11555_v40 = vld [vmem:[#allocation5 + $0xb24] ss:$136 sps:$4 sm:$0xff]  }
 0x35a   :  { %6333 = vmatpush2.bf16.msra.mxu0 %v11523_v43  ;;  %v11550_v43 = vld [vmem:[#allocation8 + $0x40] ss:$16 sps:$4 sm:$0xff]   ;;  %v11558_v46 = vld [vmem:[#allocation8 + $0x24] ss:$16 sps:$4 sm:$0xff]  }
 0x35b   :  { %6334 = vmatprep.subr.bf16.mxu0 %v11531_v47  ;;  %v11553_v47 = vld [vmem:[#allocation5 + $0xb20] ss:$136 sps:$4 sm:$0xff]  }
 0x35c   :  { %8377 = vmatpush1.bf16.msra.mxu1 %v11526_v4  ;;  %v11561_v4 = vld [vmem:[#allocation5 + $0xa14] ss:$136 sps:$4 sm:$0xff]  }
 0x35d   :  { %8378 = vmatprep.subr.bf16.mxu1 %v11534_v63  ;;  %v11556_v63 = vld [vmem:[#allocation8 + $0x20] ss:$16 sps:$4 sm:$0xff]  }
 0x35e   :  { %6335 = vmatpush2.bf16.msra.mxu0 %v11529_v5  ;;  %v11564_v5 = vld [vmem:[#allocation8 + $0x4] ss:$16 sps:$4 sm:$0xff]  }
 0x35f   :  { %v12616_v18 = vpop.f32.mrf.mxu1  ;;  %6336 = vmatprep.subr.bf16.mxu0 %v11537_v13  ;;  %v11559_v13 = vld [vmem:[#allocation5 + $0xa10] ss:$136 sps:$4 sm:$0xff]  }
 0x360   :  { %8379 = vmatpush1.bf16.msra.mxu1 %v11532_v30  ;;  %v11567_v30 = vld [vmem:[#allocation5 + $0x904] ss:$136 sps:$4 sm:$0xff]  }
 0x361   :  { %v12618_v62 = vpop.f32.mrf.mxu1  ;;  %8380 = vmatprep.subr.bf16.mxu1 %v11540_v56  ;;  %v11562_v56 = vld [vmem:[#allocation8] ss:$16 sps:$4 sm:$0xff]  }
 0x362   :  { %6337 = vmatpush2.bf16.msra.mxu0 %v11535_v19  ;;  %v11570_v19 = vld [vmem:[#allocation8 + $0x1e4] ss:$16 sps:$4 sm:$0xff]  }
 0x363   :  { %v6067_v16 = vpop.f32.mrf.mxu1  ;;  %6338 = vmatprep.subr.bf16.mxu0 %v11543_v35  ;;  %v11565_v35 = vld [vmem:[#allocation5 + $0x900] ss:$136 sps:$4 sm:$0xff]  }
 0x364   :  { %8381 = vmatpush1.bf16.msra.mxu1 %v11538_v25  ;;  %v11576_v25 = vld [vmem:[#allocation8 + $0x2e4] ss:$16 sps:$4 sm:$0xff]   ;;  %v11574_v16 = vld [vmem:[#allocation8 + $0x2e0] ss:$16 sps:$4 sm:$0xff]  }
 0x365   :  { %v6068_v31 = vpop.f32.mrf.mxu1  ;;  %8382 = vmatprep.subr.bf16.mxu1 %v11546_v52  ;;  %v11568_v52 = vld [vmem:[#allocation8 + $0x1e0] ss:$16 sps:$4 sm:$0xff]  }
 0x366   :  { %6339 = vmatpush2.bf16.msra.mxu0 %v11541_v45  ;;  %v11573_v45 = vld [vmem:[#allocation8 + $0x1c4] ss:$16 sps:$4 sm:$0xff]  }
 0x367   :  { %6340 = vmatprep.subr.bf16.mxu0 %v11549_v29  ;;  %v11582_v29 = vld [vmem:[#allocation8 + $0x2c4] ss:$16 sps:$4 sm:$0xff]  }
 0x368   :  { %8383 = vmatpush1.bf16.msra.mxu1 %v11544_v0  ;;  %v11571_v0 = vld [vmem:[#allocation8 + $0x1c0] ss:$16 sps:$4 sm:$0xff]   ;;  %v11579_v31 = vld [vmem:[#allocation8 + $0x1a4] ss:$16 sps:$4 sm:$0xff]  }
 0x369   :  { %8384 = vmatprep.subr.bf16.mxu1 %v11552_v54  ;;  %v11580_v54 = vld [vmem:[#allocation8 + $0x2c0] ss:$16 sps:$4 sm:$0xff]  }
 0x36a   :  { %6341 = vmatpush2.bf16.msra.mxu0 %v11547_v33  ;;  %v12621_v33 = vld [vmem:[#allocation7 + $0x18] sm:$0xff] }
 0x36b   :  { %6342 = vmatprep.subr.bf16.mxu0 %v11555_v40  ;;  %v11588_v40 = vld [vmem:[#allocation8 + $0x2a4] ss:$16 sps:$4 sm:$0xff]  }
 0x36c   :  { %8385 = vmatpush1.bf16.msra.mxu1 %v11550_v43  ;;  %v11577_v43 = vld [vmem:[#allocation8 + $0x1a0] ss:$16 sps:$4 sm:$0xff]  }
 0x36d   :  { %8386 = vmatprep.subr.bf16.mxu1 %v11558_v46  ;;  %v11585_v46 = vld [vmem:[#allocation8 + $0x184] ss:$16 sps:$4 sm:$0xff]  }
 0x36e   :  { %6343 = vmatpush2.bf16.msra.mxu0 %v11553_v47  ;;  %v991_v47 = vrot.slane %v12621_v33, %v12364_v36 }
 0x36f   :  { %6344 = vmatprep.subr.bf16.mxu0 %v11561_v4  ;;  %v11586_v4 = vld [vmem:[#allocation8 + $0x2a0] ss:$16 sps:$4 sm:$0xff]  }
 0x370   :  { %8387 = vmatpush1.bf16.msra.mxu1 %v11556_v63  ;;  %v11594_v63 = vld [vmem:[#allocation8 + $0x284] ss:$16 sps:$4 sm:$0xff]  }
 0x371   :  { %8388 = vmatprep.subr.bf16.mxu1 %v11564_v5  ;;  %v995_v5 = vrot.slane %v12621_v33, %v12368_v39 }
 0x372   :  { %6345 = vmatpush2.bf16.msra.mxu0 %v11559_v13 }
 0x373   :  { %6346 = vmatprep.subr.bf16.mxu0 %v11567_v30  ;;  %v11591_v30 = vld [vmem:[#allocation8 + $0x164] ss:$16 sps:$4 sm:$0xff]  }
 0x374   :  { %8389 = vmatpush1.bf16.msra.mxu1 %v11562_v56 }
 0x375   :  { %8390 = vmatprep.subr.bf16.mxu1 %v11570_v19  ;;  %v11592_v19 = vld [vmem:[#allocation8 + $0x280] ss:$16 sps:$4 sm:$0xff]  }
 0x376   :  { %6347 = vmatpush2.bf16.msra.mxu0 %v11565_v35 }
 0x377   :  { %8415 = vmatprep.subr.bf16.mxu0 %v11576_v25  ;;  %v11600_v25 = vld [vmem:[#allocation8 + $0x264] ss:$16 sps:$4 sm:$0xff]  }
 0x378   :  { %8391 = vmatpush2.bf16.msra.mxu1 %v11568_v52 }
 0x379   :  { %6349 = vmatmul.mubr.bf16.vlgmr.msra.gmra.mxu0 %v12320_v10  ;;  %8392 = vmatprep.subr.bf16.mxu1 %v11573_v45  ;;  %v11583_v10 = vld [vmem:[#allocation8 + $0x180] ss:$16 sps:$4 sm:$0xff]  }
 0x37a   :  { %8416 = vmatpush1.bf16.msra.mxu0 %v11574_v16  ;;  %v11589_v16 = vld [vmem:[#allocation8 + $0x160] ss:$16 sps:$4 sm:$0xff]  }
 0x37b   :  { %8417 = vmatprep.subr.bf16.mxu0 %v11582_v29 }
 0x37c   :  { %8393 = vmatpush2.bf16.msra.mxu1 %v11571_v0  ;;  %v11597_v0 = vld [vmem:[#allocation8 + $0x144] ss:$16 sps:$4 sm:$0xff]  }
 0x37d   :  { %8394 = vmatprep.subr.bf16.mxu1 %v11579_v31 }
 0x37e   :  { %8418 = vmatpush1.bf16.msra.mxu0 %v11580_v54 }
 0x37f   :  { %8419 = vmatprep.subr.bf16.mxu0 %v11588_v40  ;;  %v11598_v40 = vld [vmem:[#allocation8 + $0x260] ss:$16 sps:$4 sm:$0xff]  }
 0x380   :  { %8395 = vmatpush2.bf16.msra.mxu1 %v11577_v43 }
 0x381   :  { %v6022_v13 = vpop.f32.mrf.mxu0  ;;  %8396 = vmatprep.subr.bf16.mxu1 %v11585_v46  ;;  %v11606_v46 = vld [vmem:[#allocation8 + $0x244] ss:$16 sps:$4 sm:$0xff]  }
 0x382   :  { %v6023_v56 = vadd.f32 %v6022_v13, %v991_v47  ;;  %8420 = vmatpush1.bf16.msra.mxu0 %v11586_v4  ;;  %v11595_v4 = vld [vmem:[#allocation8 + $0x140] ss:$16 sps:$4 sm:$0xff]  }
 0x383   :  { %v6024_v35 = vpop.f32.mrf.mxu0  ;;  %8421 = vmatprep.subr.bf16.mxu0 %v11594_v63  ;;  %v11603_v63 = vld [vmem:[#allocation8 + $0x124] ss:$16 sps:$4 sm:$0xff]  }
 0x384   :  { %v6064_v52 = vadd.f32 %v12616_v18, %v6023_v56  ;;  %8397 = vmatpush2.bf16.msra.mxu1 %v11583_v10  ;;  %v6025_v45 = vadd.f32 %v6024_v35, %v995_v5  ;;  %v11604_v10 = vld [vmem:[#allocation8 + $0x240] ss:$16 sps:$4 sm:$0xff]  }
 0x385   :  { %v6026_v29 = vpop.f32.mrf.mxu0  ;;  %8398 = vmatprep.subr.bf16.mxu1 %v11591_v30  ;;  %v11601_v5 = vld [vmem:[#allocation8 + $0x120] ss:$16 sps:$4 sm:$0xff]   ;;  %v11633_v30 = vld [vmem:[#allocation8 + $0x4e4] ss:$16 sps:$4 sm:$0xff]  }
 0x386   :  { %v6406_v31 = vmax.f32 %v12559_v42, %v6064_v52  ;;  %v6066_v54 = vadd.f32 %v12618_v62, %v6025_v45  ;;  %8422 = vmatpush1.bf16.msra.mxu0 %v11592_v19  ;;  %v11612_v62 = vld [vmem:[#allocation8 + $0x224] ss:$16 sps:$4 sm:$0xff]   ;;  %v11616_v35 = vld [vmem:[#allocation8 + $0x3e0] ss:$16 sps:$4 sm:$0xff]  }
 0x387   :  { %v6027_v43 = vpop.f32.mrf.mxu0  ;;  %8423 = vmatprep.subr.bf16.mxu0 %v11600_v25  ;;  %v11639_v19 = vld [vmem:[#allocation8 + $0x4c4] ss:$16 sps:$4 sm:$0xff]   ;;  %v11637_v52 = vld [vmem:[#allocation8 + $0x4c0] ss:$16 sps:$4 sm:$0xff]  }
 0x388   :  { %v6414_v47 = vmax.f32 %v6398_v9, %v6406_v31  ;;  %v6407_v18 = vmax.f32 %v12562_v49, %v6066_v54  ;;  %8399 = vmatpush2.bf16.msra.mxu1 %v11589_v16  ;;  %v11615_v9 = vld [vmem:[#allocation8 + $0x204] ss:$16 sps:$4 sm:$0xff]   ;;  %v11607_v49 = vld [vmem:[#allocation8 + $0x100] ss:$16 sps:$4 sm:$0xff]   ;;  %v1003_v43 = vrot.slane %v12621_v33, %v12391_v22 }
 0x389   :  { %8400 = vmatprep.subr.bf16.mxu1 %v11597_v0  ;;  %v11621_v25 = vld [vmem:[#allocation8 + $0x3c4] ss:$16 sps:$4 sm:$0xff]   ;;  %v11619_v16 = vld [vmem:[#allocation8 + $0x3c0] ss:$16 sps:$4 sm:$0xff]   ;;  %v999_v0 = vrot.slane %v12621_v33, %v12387_v20 }
 0x38a   :  { %8424 = vmatpush1.bf16.msra.mxu0 %v11598_v40  ;;  %v6415_v42 = vmax.f32 %v6399_v58, %v6407_v18  ;;  %v11631_v58 = vld [vmem:[#allocation8 + $0x4e0] ss:$16 sps:$4 sm:$0xff]   ;;  %v12640_v56 = vpack.c.bf16 %v6414_v47, %v6414_v47  ;;  %v11645_v45 = vld [vmem:[#allocation8 + $0x4a4] ss:$16 sps:$4 sm:$0xff]  }
 0x38b   :  { %8425 = vmatprep.subr.bf16.mxu0 %v11606_v46  ;;  %v11624_v29 = vld [vmem:[#allocation8 + $0x3a4] ss:$16 sps:$4 sm:$0xff]   ;;  %v11643_v31 = vld [vmem:[#allocation8 + $0x4a0] ss:$16 sps:$4 sm:$0xff]  }
 0x38c   :  { %8401 = vmatpush2.bf16.msra.mxu1 %v11595_v4  ;;  %v12637_v13 = vpack.c.bf16 %v6415_v42, %v6415_v42  ;;  %v11651_v40 = vld [vmem:[#allocation8 + $0x484] ss:$16 sps:$4 sm:$0xff]   ;;  %v11622_v46 = vld [vmem:[#allocation8 + $0x3a0] ss:$16 sps:$4 sm:$0xff]  }
 0x38d   :  { %8402 = vmatprep.subr.bf16.mxu1 %v11603_v63  ;;  %v11627_v4 = vld [vmem:[#allocation8 + $0x384] ss:$16 sps:$4 sm:$0xff]  }
 0x38e   :  { %8406 = vmatprep.mubr.bf16.mxu1 %v12637_v13  ;;  %8426 = vmatpush1.bf16.msra.mxu0 %v11604_v10  ;;  %v11649_v10 = vld [vmem:[#allocation8 + $0x480] ss:$16 sps:$4 sm:$0xff]  }
 0x38f   :  { %8427 = vmatprep.subr.bf16.mxu0 %v11612_v62 }
 0x390   :  { %8403 = vmatpush2.bf16.msra.mxu1 %v11601_v5  ;;  %v11654_v5 = vld [vmem:[#allocation8 + $0x464] ss:$16 sps:$4 sm:$0xff]  }
 0x391   :  { %8404 = vmatprep.subr.bf16.mxu1 %v11609_v53 }
 0x392   :  { %8428 = vmatpush1.bf16.msra.mxu0 %v11610_v60 }
 0x393   :  { %8429 = vmatprep.subr.bf16.mxu0 %v11615_v9  ;;  %v11625_v9 = vld [vmem:[#allocation8 + $0x380] ss:$16 sps:$4 sm:$0xff]  }
 0x394   :  { %8405 = vmatpush2.bf16.msra.mxu1 %v11607_v49 }
 0x395   :  { %8456 = vmatprep.subr.bf16.mxu1 %v11633_v30 }
 0x396   :  { %8430 = vmatpush1.bf16.msra.mxu0 %v11613_v61  ;;  %v11630_v61 = vld [vmem:[#allocation8 + $0x364] ss:$16 sps:$4 sm:$0xff]  }
 0x397   :  { %8407 = vmatmul.mubr.bf16.vlgmr.msra.gmra.mxu1 %v12640_v56  ;;  %8431 = vmatprep.subr.bf16.mxu0 %v11618_v11 }
 0x398   :  { %8457 = vmatpush1.bf16.msra.mxu1 %v11631_v58 }
 0x399   :  { %8458 = vmatprep.subr.bf16.mxu1 %v11639_v19  ;;  %v11652_v19 = vld [vmem:[#allocation8 + $0x460] ss:$16 sps:$4 sm:$0xff]  }
 0x39a   :  { %8432 = vmatpush2.bf16.msra.mxu0 %v11616_v35 }
 0x39b   :  { %8433 = vmatprep.subr.bf16.mxu0 %v11621_v25  ;;  %v11657_v25 = vld [vmem:[#allocation8 + $0x444] ss:$16 sps:$4 sm:$0xff]  }
 0x39c   :  { %8459 = vmatpush1.bf16.msra.mxu1 %v11637_v52 }
 0x39d   :  { %v6145_v54 = vpop.f32.mrf.mxu0  ;;  %8460 = vmatprep.subr.bf16.mxu1 %v11645_v45 }
 0x39e   :  { %8434 = vmatpush2.bf16.msra.mxu0 %v11619_v16  ;;  %v11628_v16 = vld [vmem:[#allocation8 + $0x360] ss:$16 sps:$4 sm:$0xff]  }
 0x39f   :  { %v6104_v47 = vpop.f32.mrf.mxu1  ;;  %v6147_v18 = vpop.f32.mrf.mxu0  ;;  %8435 = vmatprep.subr.bf16.mxu0 %v11624_v29  ;;  %v11636_v29 = vld [vmem:[#allocation8 + $0x344] ss:$16 sps:$4 sm:$0xff]  }
 0x3a0   :  { %v6105_v63 = vadd.f32 %v6104_v47, %v999_v0  ;;  %8461 = vmatpush1.bf16.msra.mxu1 %v11643_v31  ;;  %v11655_v0 = vld [vmem:[#allocation8 + $0x440] ss:$16 sps:$4 sm:$0xff]   ;;  %v11660_v31 = vld [vmem:[#allocation8 + $0x424] ss:$16 sps:$4 sm:$0xff]  }
 0x3a1   :  { %v6106_v42 = vpop.f32.mrf.mxu1  ;;  %v6149_v62 = vpop.f32.mrf.mxu0  ;;  %8462 = vmatprep.subr.bf16.mxu1 %v11651_v40  ;;  %v11634_v40 = vld [vmem:[#allocation8 + $0x340] ss:$16 sps:$4 sm:$0xff]  }
 0x3a2   :  { %v6146_v53 = vadd.f32 %v6145_v54, %v6105_v63  ;;  %v6107_v60 = vadd.f32 %v6106_v42, %v1003_v43  ;;  %8436 = vmatpush2.bf16.msra.mxu0 %v11622_v46  ;;  %v11646_v43 = vld [vmem:[#allocation8 + $0x300] ss:$16 sps:$4 sm:$0xff]   ;;  %v11663_v46 = vld [vmem:[#allocation8 + $0x6e4] ss:$16 sps:$4 sm:$0xff]  }
 0x3a3   :  { %v6108_v49 = vpop.f32.mrf.mxu1  ;;  %v6150_v30 = vpop.f32.mrf.mxu0  ;;  %8437 = vmatprep.subr.bf16.mxu0 %v11627_v4  ;;  %v11670_v47 = vld [vmem:[#allocation8 + $0x5e0] ss:$16 sps:$4 sm:$0xff]   ;;  %v11684_v62 = vld [vmem:[#allocation8 + $0x5a4] ss:$16 sps:$4 sm:$0xff]  }
 0x3a4   :  { %v6408_v11 = vmax.f32 %v12575_v26, %v6146_v53  ;;  %v6148_v58 = vadd.f32 %v6147_v18, %v6107_v60  ;;  %8463 = vmatpush1.bf16.msra.mxu1 %v11649_v10  ;;  %v11678_v18 = vld [vmem:[#allocation8 + $0x5c4] ss:$16 sps:$4 sm:$0xff]   ;;  %v11661_v4 = vld [vmem:[#allocation8 + $0x6e0] ss:$16 sps:$4 sm:$0xff]  }
 0x3a5   :  { %v6109_v35 = vpop.f32.mrf.mxu1  ;;  %8464 = vmatprep.subr.bf16.mxu1 %v11654_v5  ;;  %v11669_v10 = vld [vmem:[#allocation8 + $0x6c4] ss:$16 sps:$4 sm:$0xff]   ;;  %v11676_v42 = vld [vmem:[#allocation8 + $0x5c0] ss:$16 sps:$4 sm:$0xff]  }
 0x3a6   :  { %v6416_v52 = vmax.f32 %v6400_v21, %v6408_v11  ;;  %v6409_v45 = vmax.f32 %v12577_v41, %v6148_v58  ;;  %8438 = vmatpush2.bf16.msra.mxu0 %v11625_v9  ;;  %v11666_v21 = vld [vmem:[#allocation8 + $0x404] ss:$16 sps:$4 sm:$0xff]   ;;  %v11640_v41 = vld [vmem:[#allocation8 + $0x320] ss:$16 sps:$4 sm:$0xff]  }
 0x3a7   :  { %8439 = vmatprep.subr.bf16.mxu0 %v11630_v61  ;;  %v11667_v5 = vld [vmem:[#allocation8 + $0x6c0] ss:$16 sps:$4 sm:$0xff]   ;;  %v11675_v60 = vld [vmem:[#allocation8 + $0x6a4] ss:$16 sps:$4 sm:$0xff]  }
 0x3a8   :  { %v6417_v26 = vmax.f32 %v6401_v28, %v6409_v45  ;;  %8465 = vmatpush1.bf16.msra.mxu1 %v11652_v19  ;;  %v11672_v28 = vld [vmem:[#allocation8 + $0x5e4] ss:$16 sps:$4 sm:$0xff]   ;;  %v12658_v63 = vpack.c.bf16 %v6416_v52, %v6416_v52  ;;  %v11682_v9 = vld [vmem:[#allocation8 + $0x5a0] ss:$16 sps:$4 sm:$0xff]  }
 0x3a9   :  { %8466 = vmatprep.subr.bf16.mxu1 %v11657_v25  ;;  %v11690_v30 = vld [vmem:[#allocation8 + $0x584] ss:$16 sps:$4 sm:$0xff]   ;;  %v11673_v61 = vld [vmem:[#allocation8 + $0x6a0] ss:$16 sps:$4 sm:$0xff]  }
 0x3aa   :  { %8440 = vmatpush2.bf16.msra.mxu0 %v11628_v16  ;;  %v12655_v54 = vpack.c.bf16 %v6417_v26, %v6417_v26  ;;  %v11681_v58 = vld [vmem:[#allocation8 + $0x684] ss:$16 sps:$4 sm:$0xff]   ;;  %v11688_v19 = vld [vmem:[#allocation8 + $0x580] ss:$16 sps:$4 sm:$0xff]  }
 0x3ab   :  { %8441 = vmatprep.subr.bf16.mxu0 %v11636_v29  ;;  %v11696_v25 = vld [vmem:[#allocation8 + $0x564] ss:$16 sps:$4 sm:$0xff]   ;;  %v11679_v52 = vld [vmem:[#allocation8 + $0x680] ss:$16 sps:$4 sm:$0xff]  }
 0x3ac   :  { %8447 = vmatprep.mubr.bf16.mxu0 %v12655_v54  ;;  %8467 = vmatpush1.bf16.msra.mxu1 %v11655_v0  ;;  %v11687_v45 = vld [vmem:[#allocation8 + $0x664] ss:$16 sps:$4 sm:$0xff]   ;;  %v11694_v16 = vld [vmem:[#allocation8 + $0x560] ss:$16 sps:$4 sm:$0xff]  }
 0x3ad   :  { %8468 = vmatprep.subr.bf16.mxu1 %v11660_v31  ;;  %v11702_v29 = vld [vmem:[#allocation8 + $0x544] ss:$16 sps:$4 sm:$0xff]   ;;  %v11685_v26 = vld [vmem:[#allocation8 + $0x660] ss:$16 sps:$4 sm:$0xff]  }
 0x3ae   :  { %8442 = vmatpush2.bf16.msra.mxu0 %v11634_v40  ;;  %v11693_v0 = vld [vmem:[#allocation8 + $0x644] ss:$16 sps:$4 sm:$0xff]   ;;  %v11700_v31 = vld [vmem:[#allocation8 + $0x540] ss:$16 sps:$4 sm:$0xff]  }
 0x3af   :  { %8443 = vmatprep.subr.bf16.mxu0 %v11642_v44  ;;  %v11708_v40 = vld [vmem:[#allocation8 + $0x524] ss:$16 sps:$4 sm:$0xff]   ;;  %v11691_v44 = vld [vmem:[#allocation8 + $0x640] ss:$16 sps:$4 sm:$0xff]  }
 0x3b0   :  { %8469 = vmatpush1.bf16.msra.mxu1 %v11658_v12  ;;  %v11699_v12 = vld [vmem:[#allocation8 + $0x624] ss:$16 sps:$4 sm:$0xff]  }
 0x3b1   :  { %8470 = vmatprep.subr.bf16.mxu1 %v11666_v21  ;;  %v11706_v21 = vld [vmem:[#allocation8 + $0x520] ss:$16 sps:$4 sm:$0xff]  }
 0x3b2   :  { %8444 = vmatpush2.bf16.msra.mxu0 %v11640_v41  ;;  %v11714_v41 = vld [vmem:[#allocation8 + $0x504] ss:$16 sps:$4 sm:$0xff]  }
 0x3b3   :  { %8445 = vmatprep.subr.bf16.mxu0 %v11648_v48  ;;  %v11697_v48 = vld [vmem:[#allocation8 + $0x620] ss:$16 sps:$4 sm:$0xff]  }
 0x3b4   :  { %8471 = vmatpush1.bf16.msra.mxu1 %v11664_v34  ;;  %v11705_v34 = vld [vmem:[#allocation8 + $0x604] ss:$16 sps:$4 sm:$0xff]  }
 0x3b5   :  { %8472 = vmatprep.subr.bf16.mxu1 %v11672_v28  ;;  %v11712_v28 = vld [vmem:[#allocation8 + $0x500] ss:$16 sps:$4 sm:$0xff]  }
 0x3b6   :  { %8446 = vmatpush2.bf16.msra.mxu0 %v11646_v43  ;;  %v11738_v43 = vld [vmem:[#allocation8 + $0x8e4] ss:$16 sps:$4 sm:$0xff]  }
 0x3b7   :  { %8497 = vmatprep.subr.bf16.mxu0 %v11663_v46  ;;  %v11703_v46 = vld [vmem:[#allocation8 + $0x600] ss:$16 sps:$4 sm:$0xff]  }
 0x3b8   :  { %8473 = vmatpush2.bf16.msra.mxu1 %v11670_v47  ;;  %v11711_v47 = vld [vmem:[#allocation8 + $0x7e4] ss:$16 sps:$4 sm:$0xff]  }
 0x3b9   :  { %8448 = vmatmul.mubr.bf16.vlgmr.msra.gmra.mxu0 %v12658_v63  ;;  %8474 = vmatprep.subr.bf16.mxu1 %v11678_v18  ;;  %v11709_v18 = vld [vmem:[#allocation8 + $0x7e0] ss:$16 sps:$4 sm:$0xff]  }
 0x3ba   :  { %8498 = vmatpush1.bf16.msra.mxu0 %v11661_v4  ;;  %v11717_v4 = vld [vmem:[#allocation8 + $0x7c4] ss:$16 sps:$4 sm:$0xff]  }
 0x3bb   :  { %v12661_v53 = vpop.f32.mrf.mxu1  ;;  %8499 = vmatprep.subr.bf16.mxu0 %v11669_v10  ;;  %v1007_v10 = vrot.slane %v12621_v33, %v12414_v59 }
 0x3bc   :  { %8475 = vmatpush2.bf16.msra.mxu1 %v11676_v42  ;;  %v11715_v42 = vld [vmem:[#allocation8 + $0x7c0] ss:$16 sps:$4 sm:$0xff]  }
 0x3bd   :  { %v12663_v49 = vpop.f32.mrf.mxu1  ;;  %8476 = vmatprep.subr.bf16.mxu1 %v11684_v62  ;;  %v11720_v62 = vld [vmem:[#allocation8 + $0x7a4] ss:$16 sps:$4 sm:$0xff]  }
 0x3be   :  { %8500 = vmatpush1.bf16.msra.mxu0 %v11667_v5  ;;  %v1011_v5 = vrot.slane %v12621_v33, %v12418_v2  ;;  %v11726_v2 = vld [vmem:[#allocation8 + $0x764] ss:$16 sps:$4 sm:$0xff]  }
 0x3bf   :  { %v6231_v11 = vpop.f32.mrf.mxu1  ;;  %8501 = vmatprep.subr.bf16.mxu0 %v11675_v60 }
 0x3c0   :  { %8477 = vmatpush2.bf16.msra.mxu1 %v11682_v9  ;;  %v11723_v11 = vld [vmem:[#allocation8 + $0x784] ss:$16 sps:$4 sm:$0xff]  }
 0x3c1   :  { %v6232_v35 = vpop.f32.mrf.mxu1  ;;  %8478 = vmatprep.subr.bf16.mxu1 %v11690_v30  ;;  %v11718_v30 = vld [vmem:[#allocation8 + $0x7a0] ss:$16 sps:$4 sm:$0xff]  }
 0x3c2   :  { %8502 = vmatpush1.bf16.msra.mxu0 %v11673_v61 }
 0x3c3   :  { %8503 = vmatprep.subr.bf16.mxu0 %v11681_v58 }
 0x3c4   :  { %8479 = vmatpush2.bf16.msra.mxu1 %v11688_v19 }
 0x3c5   :  { %8480 = vmatprep.subr.bf16.mxu1 %v11696_v25 }
 0x3c6   :  { %8504 = vmatpush1.bf16.msra.mxu0 %v11679_v52  ;;  %v11721_v52 = vld [vmem:[#allocation8 + $0x780] ss:$16 sps:$4 sm:$0xff]  }
 0x3c7   :  { %8505 = vmatprep.subr.bf16.mxu0 %v11687_v45 }
 0x3c8   :  { %8481 = vmatpush2.bf16.msra.mxu1 %v11694_v16 }
 0x3c9   :  { %8482 = vmatprep.subr.bf16.mxu1 %v11702_v29 }
 0x3ca   :  { %8506 = vmatpush1.bf16.msra.mxu0 %v11685_v26  ;;  %v11724_v26 = vld [vmem:[#allocation8 + $0x760] ss:$16 sps:$4 sm:$0xff]  }
 0x3cb   :  { %8507 = vmatprep.subr.bf16.mxu0 %v11693_v0  ;;  %v11736_v0 = vld [vmem:[#allocation8 + $0x8e0] ss:$16 sps:$4 sm:$0xff]  }
 0x3cc   :  { %8483 = vmatpush2.bf16.msra.mxu1 %v11700_v31 }
 0x3cd   :  { %8484 = vmatprep.subr.bf16.mxu1 %v11708_v40  ;;  %v11741_v40 = vld [vmem:[#allocation8 + $0x8c4] ss:$16 sps:$4 sm:$0xff]  }
 0x3ce   :  { %8508 = vmatpush1.bf16.msra.mxu0 %v11691_v44  ;;  %v11753_v44 = vld [vmem:[#allocation8 + $0x884] ss:$16 sps:$4 sm:$0xff]  }
 0x3cf   :  { %8509 = vmatprep.subr.bf16.mxu0 %v11699_v12  ;;  %v11733_v12 = vld [vmem:[#allocation8 + $0x700] ss:$16 sps:$4 sm:$0xff]  }
 0x3d0   :  { %8485 = vmatpush2.bf16.msra.mxu1 %v11706_v21  ;;  %v11744_v21 = vld [vmem:[#allocation8 + $0xec] ss:$16 sps:$4 sm:$0xff]  }
 0x3d1   :  { %8486 = vmatprep.subr.bf16.mxu1 %v11714_v41  ;;  %v11751_v41 = vld [vmem:[#allocation8 + $0x880] ss:$16 sps:$4 sm:$0xff]  }
 0x3d2   :  { %8510 = vmatpush1.bf16.msra.mxu0 %v11697_v48  ;;  %v11759_v48 = vld [vmem:[#allocation8 + $0x864] ss:$16 sps:$4 sm:$0xff]  }
 0x3d3   :  { %8511 = vmatprep.subr.bf16.mxu0 %v11705_v34  ;;  %v1015_v34 = vrot.slane %v12621_v33, %v12437_v50 }
 0x3d4   :  { %8487 = vmatpush2.bf16.msra.mxu1 %v11712_v28  ;;  %v11757_v28 = vld [vmem:[#allocation8 + $0x860] ss:$16 sps:$4 sm:$0xff]  }
 0x3d5   :  { %8538 = vmatprep.subr.bf16.mxu1 %v11738_v43 }
 0x3d6   :  { %8512 = vmatpush1.bf16.msra.mxu0 %v11703_v46  ;;  %v11765_v46 = vld [vmem:[#allocation8 + $0x844] ss:$16 sps:$4 sm:$0xff]  }
 0x3d7   :  { %8513 = vmatprep.subr.bf16.mxu0 %v11711_v47  ;;  %v1019_v47 = vrot.slane %v12621_v33, %v12441_v55  ;;  %v11777_v55 = vld [vmem:[#allocation8 + $0x804] ss:$16 sps:$4 sm:$0xff]  }
 0x3da   :  { %8514 = vmatpush2.bf16.msra.mxu0 %v11709_v18 }
 0x3db   :  { %8515 = vmatprep.subr.bf16.mxu0 %v11717_v4 }
 0x3dd   :  { %v6186_v60 = vpop.f32.mrf.mxu0 }
 0x3de   :  { %v6187_v9 = vadd.f32 %v6186_v60, %v1007_v10  ;;  %8516 = vmatpush2.bf16.msra.mxu0 %v11715_v42  ;;  %v11763_v42 = vld [vmem:[#allocation8 + $0x840] ss:$16 sps:$4 sm:$0xff]   ;;  %v11771_v60 = vld [vmem:[#allocation8 + $0x824] ss:$16 sps:$4 sm:$0xff]  }
 0x3df   :  { %v6188_v61 = vpop.f32.mrf.mxu0  ;;  %8517 = vmatprep.subr.bf16.mxu0 %v11720_v62 }
 0x3e0   :  { %v6228_v58 = vadd.f32 %v12661_v53, %v6187_v9  ;;  %v6189_v19 = vadd.f32 %v6188_v61, %v1011_v5 }
 0x3e1   :  { %v6190_v35 = vpop.f32.mrf.mxu0 }
 0x3e2   :  { %v6410_v59 = vmax.f32 %v12595_v6, %v6228_v58  ;;  %v6230_v25 = vadd.f32 %v12663_v49, %v6189_v19  ;;  %8518 = vmatpush2.bf16.msra.mxu0 %v11718_v30  ;;  %v11729_v6 = vld [vmem:[#allocation8 + $0x744] ss:$16 sps:$4 sm:$0xff]   ;;  %v11769_v19 = vld [vmem:[#allocation8 + $0x820] ss:$16 sps:$4 sm:$0xff]  }
 0x3e3   :  { %v6191_v45 = vpop.f32.mrf.mxu0  ;;  %8519 = vmatprep.subr.bf16.mxu0 %v11723_v11 }
 0x3e4   :  { %v6418_v16 = vmax.f32 %v6402_v37, %v6410_v59  ;;  %v6411_v29 = vmax.f32 %v12598_v32, %v6230_v25  ;;  %v11747_v37 = vld [vmem:[#allocation8 + $0x8a4] ss:$16 sps:$4 sm:$0xff]   ;;  %v11745_v32 = vld [vmem:[#allocation8 + $0x8a0] ss:$16 sps:$4 sm:$0xff]  }
 0x3e6   :  { %v6419_v53 = vmax.f32 %v6403_v3, %v6411_v29  ;;  %8520 = vmatpush2.bf16.msra.mxu0 %v11721_v52  ;;  %v12681_v31 = vpack.c.bf16 %v6418_v16, %v6418_v16  ;;  %v11735_v3 = vld [vmem:[#allocation8 + $0x704] ss:$16 sps:$4 sm:$0xff]   ;;  %v11775_v52 = vld [vmem:[#allocation8 + $0x800] ss:$16 sps:$4 sm:$0xff]   ;;  %v11750_v29 = vld [vmem:[#allocation8 + $0xcc] ss:$16 sps:$4 sm:$0xff]  }
 0x3e7   :  { %8521 = vmatprep.subr.bf16.mxu0 %v11726_v2  ;;  %v11742_v2 = vld [vmem:[#allocation8 + $0xe8] ss:$16 sps:$4 sm:$0xff]  }
 0x3e8   :  { %v12679_v49 = vpack.c.bf16 %v6419_v53, %v6419_v53  ;;  %v11762_v53 = vld [vmem:[#allocation8 + $0x8c] ss:$16 sps:$4 sm:$0xff]  }
 0x3ea   :  { %8488 = vmatprep.mubr.bf16.mxu1 %v12679_v49  ;;  %8522 = vmatpush2.bf16.msra.mxu0 %v11724_v26  ;;  %v11793_v26 = vld [vmem:[#allocation8 + $0x9a0] ss:$16 sps:$4 sm:$0xff]  }
 0x3eb   :  { %8489 = vmatmul.mubr.bf16.vlgmr.msra.gmra.mxu1 %v12681_v31  ;;  %8523 = vmatprep.subr.bf16.mxu0 %v11729_v6  ;;  %v11801_v6 = vld [vmem:[#allocation8 + $0x984] ss:$16 sps:$4 sm:$0xff]  }
 0x3ec   :  { %8539 = vmatpush1.bf16.msra.mxu1 %v11736_v0  ;;  %v11760_v0 = vld [vmem:[#allocation8 + $0x88] ss:$16 sps:$4 sm:$0xff]  }
 0x3ed   :  { %8540 = vmatprep.subr.bf16.mxu1 %v11741_v40  ;;  %v11768_v40 = vld [vmem:[#allocation8 + $0x6c] ss:$16 sps:$4 sm:$0xff]  }
 0x3ee   :  { %8524 = vmatpush2.bf16.msra.mxu0 %v11727_v15  ;;  %v11807_v15 = vld [vmem:[#allocation8 + $0x964] ss:$16 sps:$4 sm:$0xff]  }
 0x3ef   :  { %8525 = vmatprep.subr.bf16.mxu0 %v11732_v27  ;;  %v11766_v27 = vld [vmem:[#allocation8 + $0x68] ss:$16 sps:$4 sm:$0xff]  }
 0x3f0   :  { %8541 = vmatpush1.bf16.msra.mxu1 %v11739_v24  ;;  %v11774_v24 = vld [vmem:[#allocation8 + $0x4c] ss:$16 sps:$4 sm:$0xff]  }
 0x3f1   :  { %8542 = vmatprep.subr.bf16.mxu1 %v11747_v37 }
 0x3f2   :  { %8526 = vmatpush2.bf16.msra.mxu0 %v11730_v38  ;;  %v11805_v38 = vld [vmem:[#allocation8 + $0x960] ss:$16 sps:$4 sm:$0xff]  }
 0x3f3   :  { %8527 = vmatprep.subr.bf16.mxu0 %v11735_v3  ;;  %v11813_v3 = vld [vmem:[#allocation8 + $0x944] ss:$16 sps:$4 sm:$0xff]  }
 0x3f4   :  { %8543 = vmatpush1.bf16.msra.mxu1 %v11745_v32 }
 0x3f5   :  { %8544 = vmatprep.subr.bf16.mxu1 %v11753_v44  ;;  %v11772_v44 = vld [vmem:[#allocation8 + $0x48] ss:$16 sps:$4 sm:$0xff]  }
 0x3f6   :  { %8528 = vmatpush2.bf16.msra.mxu0 %v11733_v12  ;;  %v11780_v12 = vld [vmem:[#allocation8 + $0x2c] ss:$16 sps:$4 sm:$0xff]  }
 0x3f7   :  { %8579 = vmatprep.subr.bf16.mxu0 %v11744_v21 }
 0x3f8   :  { %8545 = vmatpush1.bf16.msra.mxu1 %v11751_v41  ;;  %v11811_v41 = vld [vmem:[#allocation8 + $0x940] ss:$16 sps:$4 sm:$0xff]  }
 0x3f9   :  { %v6309_v43 = vpop.f32.mrf.mxu0  ;;  %8546 = vmatprep.subr.bf16.mxu1 %v11759_v48  ;;  %v11819_v48 = vld [vmem:[#allocation8 + $0x924] ss:$16 sps:$4 sm:$0xff]  }
 0x3fb   :  { %v6268_v18 = vpop.f32.mrf.mxu1  ;;  %v6311_v4 = vpop.f32.mrf.mxu0 }
 0x3fc   :  { %v6269_v10 = vadd.f32 %v6268_v18, %v1015_v34  ;;  %8547 = vmatpush1.bf16.msra.mxu1 %v11757_v28  ;;  %v11778_v28 = vld [vmem:[#allocation8 + $0x28] ss:$16 sps:$4 sm:$0xff]  }
 0x3fd   :  { %v6270_v62 = vpop.f32.mrf.mxu1  ;;  %v6313_v5 = vpop.f32.mrf.mxu0  ;;  %8548 = vmatprep.subr.bf16.mxu1 %v11765_v46  ;;  %v11817_v46 = vld [vmem:[#allocation8 + $0x920] ss:$16 sps:$4 sm:$0xff]   ;;  %v11784_v18 = vld [vmem:[#allocation8 + $0x8] ss:$16 sps:$4 sm:$0xff]  }
 0x3fe   :  { %v6310_v9 = vadd.f32 %v6309_v43, %v6269_v10  ;;  %v6271_v30 = vadd.f32 %v6270_v62, %v1019_v47  ;;  %v11786_v43 = vld [vmem:[#allocation8 + $0xc] ss:$16 sps:$4 sm:$0xff]   ;;  %v11825_v47 = vld [vmem:[#allocation8 + $0x904] ss:$16 sps:$4 sm:$0xff]   ;;  %v11823_v10 = vld [vmem:[#allocation8 + $0x900] ss:$16 sps:$4 sm:$0xff]  }
 0x3ff   :  { %v6272_v50 = vpop.f32.mrf.mxu1  ;;  %v6314_v61 = vpop.f32.mrf.mxu0  ;;  %v11790_v62 = vld [vmem:[#allocation8 + $0x1e8] ss:$16 sps:$4 sm:$0xff]   ;;  %v11798_v5 = vld [vmem:[#allocation8 + $0x1cc] ss:$16 sps:$4 sm:$0xff]  }
 0x400   :  { %v6412_v11 = vmax.f32 %v12611_v1, %v6310_v9  ;;  %v6312_v58 = vadd.f32 %v6311_v4, %v6271_v30  ;;  %8549 = vmatpush1.bf16.msra.mxu1 %v11763_v42  ;;  %v11783_v1 = vld [vmem:[#allocation8 + $0x9e4] ss:$16 sps:$4 sm:$0xff]   ;;  %v11792_v4 = vld [vmem:[#allocation8 + $0x1ec] ss:$16 sps:$4 sm:$0xff]   ;;  %v11802_v30 = vld [vmem:[#allocation8 + $0x1a8] ss:$16 sps:$4 sm:$0xff]  }
 0x401   :  { %v6273_v35 = vpop.f32.mrf.mxu1  ;;  %8550 = vmatprep.subr.bf16.mxu1 %v11771_v60  ;;  %v11834_v42 = vld [vmem:[#allocation8 + $0x2ec] ss:$16 sps:$4 sm:$0xff]   ;;  %v11796_v60 = vld [vmem:[#allocation8 + $0x1c8] ss:$16 sps:$4 sm:$0xff]  }
 0x402   :  { %v6420_v33 = vmax.f32 %v6404_v57, %v6412_v11  ;;  %v6413_v59 = vmax.f32 %v12613_v14, %v6312_v58  ;;  %v11756_v57 = vld [vmem:[#allocation8 + $0xac] ss:$16 sps:$4 sm:$0xff]   ;;  %v11754_v14 = vld [vmem:[#allocation8 + $0xa8] ss:$16 sps:$4 sm:$0xff]  }
 0x403   :  { %v11804_v9 = vld [vmem:[#allocation8 + $0x1ac] ss:$16 sps:$4 sm:$0xff]   ;;  %v11808_v61 = vld [vmem:[#allocation8 + $0x188] ss:$16 sps:$4 sm:$0xff]  }
 0x404   :  { %v6421_v25 = vmax.f32 %v6405_v8, %v6413_v59  ;;  %8551 = vmatpush1.bf16.msra.mxu1 %v11769_v19  ;;  %v12699_v16 = vpack.c.bf16 %v6420_v33, %v6420_v33  ;;  %v11795_v8 = vld [vmem:[#allocation8 + $0x9a4] ss:$16 sps:$4 sm:$0xff]   ;;  %v11810_v50 = vld [vmem:[#allocation8 + $0x18c] ss:$16 sps:$4 sm:$0xff]   ;;  %v11814_v19 = vld [vmem:[#allocation8 + $0x168] ss:$16 sps:$4 sm:$0xff]  }
 0x405   :  { %8552 = vmatprep.subr.bf16.mxu1 %v11777_v55  ;;  %v11816_v11 = vld [vmem:[#allocation8 + $0x16c] ss:$16 sps:$4 sm:$0xff]  }
 0x406   :  { %v12697_v45 = vpack.c.bf16 %v6421_v25, %v6421_v25  ;;  %v886_v58 = vld [vmem:[#allocation7 + $0x20] sm:$0x3] }
 0x407   :  { %v1023_v35 = vrot.slane %v886_v58, %v12364_v36  ;;  %v11822_v55 = vld [vmem:[#allocation8 + $0x14c] ss:$16 sps:$4 sm:$0xff]   ;;  %v1027_v33 = vrot.slane %v886_v58, %v12368_v39 }
 0x408   :  { %8529 = vmatprep.mubr.bf16.mxu0 %v12697_v45  ;;  %8553 = vmatpush1.bf16.msra.mxu1 %v11775_v52  ;;  %v11820_v52 = vld [vmem:[#allocation8 + $0x148] ss:$16 sps:$4 sm:$0xff]   ;;  %v11885_v58 = vld [vmem:[#allocation8 + $0x3cc] ss:$16 sps:$4 sm:$0xff]  }
 0x409   :  { %8530 = vmatmul.mubr.bf16.vlgmr.msra.gmra.mxu0 %v12699_v16  ;;  %8554 = vmatprep.subr.bf16.mxu1 %v11783_v1 }
 0x40a   :  { %8580 = vmatpush1.bf16.msra.mxu0 %v11742_v2  ;;  %8611 = vmatprep.mubr.bf16.mxu0 %v12637_v13  ;;  %v11799_v13 = vld [vmem:[#allocation8 + $0x980] ss:$16 sps:$4 sm:$0xff]   ;;  %v11828_v2 = vld [vmem:[#allocation8 + $0x12c] ss:$16 sps:$4 sm:$0xff]  }
 0x40b   :  { %8581 = vmatprep.subr.bf16.mxu0 %v11750_v29 }
 0x40c   :  { %8555 = vmatpush2.bf16.msra.mxu1 %v11781_v17 }
 0x40d   :  { %8556 = vmatprep.subr.bf16.mxu1 %v11789_v51 }
 0x40e   :  { %8582 = vmatpush1.bf16.msra.mxu0 %v11748_v23 }
 0x40f   :  { %8583 = vmatprep.subr.bf16.mxu0 %v11756_v57  ;;  %v11826_v57 = vld [vmem:[#allocation8 + $0x128] ss:$16 sps:$4 sm:$0xff]  }
 0x410   :  { %8557 = vmatpush2.bf16.msra.mxu1 %v11787_v7 }
 0x411   :  { %8558 = vmatprep.subr.bf16.mxu1 %v11795_v8 }
 0x412   :  { %8584 = vmatpush1.bf16.msra.mxu0 %v11754_v14  ;;  %v11831_v14 = vld [vmem:[#allocation8 + $0x10c] ss:$16 sps:$4 sm:$0xff]  }
 0x413   :  { %8585 = vmatprep.subr.bf16.mxu0 %v11762_v53 }
 0x414   :  { %8559 = vmatpush2.bf16.msra.mxu1 %v11793_v26  ;;  %v11832_v26 = vld [vmem:[#allocation8 + $0x2e8] ss:$16 sps:$4 sm:$0xff]  }
 0x415   :  { %8560 = vmatprep.subr.bf16.mxu1 %v11801_v6  ;;  %v11837_v6 = vld [vmem:[#allocation8 + $0x2cc] ss:$16 sps:$4 sm:$0xff]  }
 0x416   :  { %8586 = vmatpush1.bf16.msra.mxu0 %v11760_v0  ;;  %v11829_v0 = vld [vmem:[#allocation8 + $0x108] ss:$16 sps:$4 sm:$0xff]  }
 0x417   :  { %8587 = vmatprep.subr.bf16.mxu0 %v11768_v40  ;;  %v12704_v37 = vpop.f32.mrf.mxu1  ;;  %v11840_v40 = vld [vmem:[#allocation8 + $0x4ec] ss:$16 sps:$4 sm:$0xff]  }
 0x418   :  { %8561 = vmatpush2.bf16.msra.mxu1 %v11799_v13  ;;  %v11835_v13 = vld [vmem:[#allocation8 + $0x2c8] ss:$16 sps:$4 sm:$0xff]  }
 0x419   :  { %8562 = vmatprep.subr.bf16.mxu1 %v11807_v15  ;;  %v6393_v32 = vpop.f32.mrf.mxu1  ;;  %v11843_v15 = vld [vmem:[#allocation8 + $0x2ac] ss:$16 sps:$4 sm:$0xff]  }
 0x41a   :  { %8588 = vmatpush1.bf16.msra.mxu0 %v11766_v27  ;;  %v11838_v27 = vld [vmem:[#allocation8 + $0x4e8] ss:$16 sps:$4 sm:$0xff]  }
 0x41b   :  { %8589 = vmatprep.subr.bf16.mxu0 %v11774_v24  ;;  %v6395_v21 = vpop.f32.mrf.mxu1  ;;  %v11846_v24 = vld [vmem:[#allocation8 + $0x4cc] ss:$16 sps:$4 sm:$0xff]  }
 0x41c   :  { %8563 = vmatpush2.bf16.msra.mxu1 %v11805_v38  ;;  %v11849_v38 = vld [vmem:[#allocation8 + $0x28c] ss:$16 sps:$4 sm:$0xff]  }
 0x41d   :  { %8564 = vmatprep.subr.bf16.mxu1 %v11813_v3  ;;  %v6396_v34 = vpop.f32.mrf.mxu1  ;;  %v11844_v3 = vld [vmem:[#allocation8 + $0x4c8] ss:$16 sps:$4 sm:$0xff]   ;;  %v11858_v21 = vld [vmem:[#allocation8 + $0x48c] ss:$16 sps:$4 sm:$0xff]  }
 0x41e   :  { %8590 = vmatpush1.bf16.msra.mxu0 %v11772_v44  ;;  %v11855_v44 = vld [vmem:[#allocation8 + $0x26c] ss:$16 sps:$4 sm:$0xff]  }
 0x41f   :  { %8591 = vmatprep.subr.bf16.mxu0 %v11780_v12  ;;  %v11850_v12 = vld [vmem:[#allocation8 + $0x4a8] ss:$16 sps:$4 sm:$0xff]   ;;  %v11864_v34 = vld [vmem:[#allocation8 + $0x46c] ss:$16 sps:$4 sm:$0xff]  }
 0x420   :  { %8565 = vmatpush2.bf16.msra.mxu1 %v11811_v41  ;;  %v11853_v41 = vld [vmem:[#allocation8 + $0x268] ss:$16 sps:$4 sm:$0xff]  }
 0x421   :  { %8566 = vmatprep.subr.bf16.mxu1 %v11819_v48  ;;  %v11856_v48 = vld [vmem:[#allocation8 + $0x488] ss:$16 sps:$4 sm:$0xff]  }
 0x422   :  { %8592 = vmatpush1.bf16.msra.mxu0 %v11778_v28  ;;  %v11867_v28 = vld [vmem:[#allocation8 + $0x22c] ss:$16 sps:$4 sm:$0xff]  }
 0x423   :  { %8593 = vmatprep.subr.bf16.mxu0 %v11786_v43  ;;  %v11862_v43 = vld [vmem:[#allocation8 + $0x468] ss:$16 sps:$4 sm:$0xff]  }
 0x424   :  { %8567 = vmatpush2.bf16.msra.mxu1 %v11817_v46 }
 0x425   :  { %8568 = vmatprep.subr.bf16.mxu1 %v11825_v47  ;;  %v11870_v47 = vld [vmem:[#allocation8 + $0x44c] ss:$16 sps:$4 sm:$0xff]  }
 0x426   :  { %8594 = vmatpush1.bf16.msra.mxu0 %v11784_v18  ;;  %v11865_v18 = vld [vmem:[#allocation8 + $0x228] ss:$16 sps:$4 sm:$0xff]  }
 0x427   :  { %8595 = vmatprep.subr.bf16.mxu0 %v11792_v4 }
 0x428   :  { %8569 = vmatpush2.bf16.msra.mxu1 %v11823_v10  ;;  %v11873_v10 = vld [vmem:[#allocation8 + $0x20c] ss:$16 sps:$4 sm:$0xff]  }
 0x429   :  { %8620 = vmatprep.subr.bf16.mxu1 %v11834_v42  ;;  %v11868_v42 = vld [vmem:[#allocation8 + $0x448] ss:$16 sps:$4 sm:$0xff]  }
 0x42a   :  { %8596 = vmatpush2.bf16.msra.mxu0 %v11790_v62 }
 0x42b   :  { %8597 = vmatprep.subr.bf16.mxu0 %v11798_v5  ;;  %v11876_v5 = vld [vmem:[#allocation8 + $0x42c] ss:$16 sps:$4 sm:$0xff]  }
 0x42e   :  { %8598 = vmatpush2.bf16.msra.mxu0 %v11796_v60  ;;  %v11871_v60 = vld [vmem:[#allocation8 + $0x208] ss:$16 sps:$4 sm:$0xff]  }
 0x42f   :  { %8599 = vmatprep.subr.bf16.mxu0 %v11804_v9 }
 0x432   :  { %8600 = vmatpush2.bf16.msra.mxu0 %v11802_v30  ;;  %v11879_v30 = vld [vmem:[#allocation8 + $0x3ec] ss:$16 sps:$4 sm:$0xff]  }
 0x433   :  { %8601 = vmatprep.subr.bf16.mxu0 %v11810_v50  ;;  %v11874_v50 = vld [vmem:[#allocation8 + $0x428] ss:$16 sps:$4 sm:$0xff]  }
 0x436   :  { %8602 = vmatpush2.bf16.msra.mxu0 %v11808_v61  ;;  %v11882_v61 = vld [vmem:[#allocation8 + $0x40c] ss:$16 sps:$4 sm:$0xff]  }
 0x437   :  { %8603 = vmatprep.subr.bf16.mxu0 %v11816_v11  ;;  %v11877_v11 = vld [vmem:[#allocation8 + $0x3e8] ss:$16 sps:$4 sm:$0xff]  }
 0x439   :  { %v6350_v59 = vpop.f32.mrf.mxu0 }
 0x43a   :  { %8604 = vmatpush2.bf16.msra.mxu0 %v11814_v19  ;;  %v6351_v25 = vadd.f32 %v6350_v59, %v1023_v35  ;;  %v11880_v19 = vld [vmem:[#allocation8 + $0x408] ss:$16 sps:$4 sm:$0xff]   ;;  %v11888_v35 = vld [vmem:[#allocation8 + $0x5ec] ss:$16 sps:$4 sm:$0xff]  }
 0x43b   :  { %8605 = vmatprep.subr.bf16.mxu0 %v11822_v55  ;;  %v6352_v1 = vpop.f32.mrf.mxu0  ;;  %v11883_v55 = vld [vmem:[#allocation8 + $0x3c8] ss:$16 sps:$4 sm:$0xff]  }
 0x43c   :  { %v6392_v29 = vadd.f32 %v12704_v37, %v6351_v25  ;;  %v6353_v17 = vadd.f32 %v6352_v1, %v1027_v33  ;;  %v11841_v37 = vld [vmem:[#allocation8 + $0x2a8] ss:$16 sps:$4 sm:$0xff]   ;;  %v11891_v33 = vld [vmem:[#allocation8 + $0x3ac] ss:$16 sps:$4 sm:$0xff]  }
 0x43d   :  { %v6354_v51 = vpop.f32.mrf.mxu0  ;;  %v11886_v59 = vld [vmem:[#allocation8 + $0x5e8] ss:$16 sps:$4 sm:$0xff]   ;;  %v11894_v25 = vld [vmem:[#allocation8 + $0x5cc] ss:$16 sps:$4 sm:$0xff]  }
 0x43e   :  { %v6394_v23 = vadd.f32 %v6393_v32, %v6353_v17  ;;  %8606 = vmatpush2.bf16.msra.mxu0 %v11820_v52  ;;  %v12709_v7 = vpack.c.bf16 %v6392_v29, %v6392_v29  ;;  %v11852_v32 = vld [vmem:[#allocation8 + $0x4ac] ss:$16 sps:$4 sm:$0xff]   ;;  %v11889_v52 = vld [vmem:[#allocation8 + $0x3a8] ss:$16 sps:$4 sm:$0xff]  }
 0x43f   :  { %8607 = vmatprep.subr.bf16.mxu0 %v11828_v2  ;;  %v6355_v8 = vpop.f32.mrf.mxu0  ;;  %v11897_v1 = vld [vmem:[#allocation8 + $0x38c] ss:$16 sps:$4 sm:$0xff]   ;;  %v11892_v2 = vld [vmem:[#allocation8 + $0x5c8] ss:$16 sps:$4 sm:$0xff]  }
 0x440   :  { %v12711_v53 = vpack.c.bf16 %v6394_v23, %v6394_v23  ;;  %v11900_v29 = vld [vmem:[#allocation8 + $0x5ac] ss:$16 sps:$4 sm:$0xff]   ;;  %v11895_v17 = vld [vmem:[#allocation8 + $0x388] ss:$16 sps:$4 sm:$0xff]  }
 0x441   :  { %v11903_v51 = vld [vmem:[#allocation8 + $0x36c] ss:$16 sps:$4 sm:$0xff]   ;;  %v11898_v23 = vld [vmem:[#allocation8 + $0x5a8] ss:$16 sps:$4 sm:$0xff]  }
 0x442   :  { %8608 = vmatpush2.bf16.msra.mxu0 %v11826_v57  ;;  %8570 = vmatprep.mubr.bf16.mxu1 %v12711_v53  ;;  %v11906_v57 = vld [vmem:[#allocation8 + $0x58c] ss:$16 sps:$4 sm:$0xff]   ;;  %v11901_v8 = vld [vmem:[#allocation8 + $0x368] ss:$16 sps:$4 sm:$0xff]  }
 0x443   :  { %8609 = vmatprep.subr.bf16.mxu0 %v11831_v14  ;;  %8571 = vmatmul.mubr.bf16.vlgmr.msra.gmra.mxu1 %v12709_v7  ;;  %v12722_v14 = vld [vmem:[#allocation10] sm:$0xf] }
 0x444   :  { %8621 = vmatpush1.bf16.msra.mxu1 %v11832_v26  ;;  %8652 = vmatprep.mubr.bf16.mxu1 %v12655_v54  ;;  %v11847_v54 = vld [vmem:[#allocation8 + $0x288] ss:$16 sps:$4 sm:$0xff]   ;;  %v11909_v26 = vld [vmem:[#allocation8 + $0x34c] ss:$16 sps:$4 sm:$0xff]  }
 0x445   :  { %8622 = vmatprep.subr.bf16.mxu1 %v11837_v6  ;;  %v11904_v6 = vld [vmem:[#allocation8 + $0x588] ss:$16 sps:$4 sm:$0xff]  }
 0x446   :  { %8610 = vmatpush2.bf16.msra.mxu0 %v11829_v0  ;;  %v11912_v0 = vld [vmem:[#allocation8 + $0x56c] ss:$16 sps:$4 sm:$0xff]  }
 0x447   :  { %8661 = vmatprep.subr.bf16.mxu0 %v11840_v40  ;;  %v6757_v40 = vrot.slane %v12722_v14, %v12364_v36 }
 0x448   :  { %8623 = vmatpush1.bf16.msra.mxu1 %v11835_v13  ;;  %v11907_v13 = vld [vmem:[#allocation8 + $0x348] ss:$16 sps:$4 sm:$0xff]  }
 0x449   :  { %8612 = vmatmul.mubr.bf16.vlgmr.msra.gmra.mxu0 %v12640_v56  ;;  %8624 = vmatprep.subr.bf16.mxu1 %v11843_v15  ;;  %v11861_v56 = vld [vmem:[#allocation8 + $0x24c] ss:$16 sps:$4 sm:$0xff]  }
 0x44a   :  { %8662 = vmatpush1.bf16.msra.mxu0 %v11838_v27  ;;  %8693 = vmatprep.mubr.bf16.mxu0 %v12679_v49  ;;  %v11859_v49 = vld [vmem:[#allocation8 + $0x248] ss:$16 sps:$4 sm:$0xff]   ;;  %v11915_v15 = vld [vmem:[#allocation8 + $0x32c] ss:$16 sps:$4 sm:$0xff]   ;;  %v6761_v27 = vrot.slane %v12722_v14, %v12368_v39 }
 0x44b   :  { %8663 = vmatprep.subr.bf16.mxu0 %v11846_v24  ;;  %v11910_v24 = vld [vmem:[#allocation8 + $0x568] ss:$16 sps:$4 sm:$0xff]   ;;  %v11924_v39 = vld [vmem:[#allocation8 + $0x52c] ss:$16 sps:$4 sm:$0xff]  }
 0x44c   :  { %8625 = vmatpush1.bf16.msra.mxu1 %v11841_v37  ;;  %v11918_v37 = vld [vmem:[#allocation8 + $0x54c] ss:$16 sps:$4 sm:$0xff]  }
 0x44d   :  { %8626 = vmatprep.subr.bf16.mxu1 %v11849_v38 }
 0x44e   :  { %8664 = vmatpush1.bf16.msra.mxu0 %v11844_v3  ;;  %v11913_v3 = vld [vmem:[#allocation8 + $0x328] ss:$16 sps:$4 sm:$0xff]  }
 0x44f   :  { %8665 = vmatprep.subr.bf16.mxu0 %v11852_v32 }
 0x450   :  { %8627 = vmatpush1.bf16.msra.mxu1 %v11847_v54  ;;  %v11921_v54 = vld [vmem:[#allocation8 + $0x30c] ss:$16 sps:$4 sm:$0xff]  }
 0x451   :  { %8628 = vmatprep.subr.bf16.mxu1 %v11855_v44 }
 0x452   :  { %8666 = vmatpush1.bf16.msra.mxu0 %v11850_v12  ;;  %v11916_v12 = vld [vmem:[#allocation8 + $0x548] ss:$16 sps:$4 sm:$0xff]  }
 0x453   :  { %8667 = vmatprep.subr.bf16.mxu0 %v11858_v21 }
 0x454   :  { %8629 = vmatpush1.bf16.msra.mxu1 %v11853_v41 }
 0x455   :  { %8630 = vmatprep.subr.bf16.mxu1 %v11861_v56  ;;  %v11919_v56 = vld [vmem:[#allocation8 + $0x308] ss:$16 sps:$4 sm:$0xff]  }
 0x456   :  { %8668 = vmatpush1.bf16.msra.mxu0 %v11856_v48 }
 0x457   :  { %v12718_v46 = vpop.f32.mrf.mxu1  ;;  %8669 = vmatprep.subr.bf16.mxu0 %v11864_v34  ;;  %v11930_v34 = vld [vmem:[#allocation8 + $0x6ec] ss:$16 sps:$4 sm:$0xff]  }
 0x458   :  { %8631 = vmatpush1.bf16.msra.mxu1 %v11859_v49  ;;  %v8409_v38 = vadd.f32 %v12718_v46, %v6757_v40  ;;  %v11922_v49 = vld [vmem:[#allocation8 + $0x528] ss:$16 sps:$4 sm:$0xff]   ;;  %v11987_v40 = vld [vmem:[#allocation8 + $0x7ac] ss:$16 sps:$4 sm:$0xff]  }
 0x459   :  { %v12720_v4 = vpop.f32.mrf.mxu1  ;;  %8632 = vmatprep.subr.bf16.mxu1 %v11867_v28  ;;  %v11928_v46 = vld [vmem:[#allocation8 + $0x6e8] ss:$16 sps:$4 sm:$0xff]  }
 0x45a   :  { %8670 = vmatpush1.bf16.msra.mxu0 %v11862_v43  ;;  %v8411_v36 = vadd.f32 %v12720_v4, %v6761_v27  ;;  %v11927_v43 = vld [vmem:[#allocation8 + $0x50c] ss:$16 sps:$4 sm:$0xff]   ;;  %v11985_v27 = vld [vmem:[#allocation8 + $0x7a8] ss:$16 sps:$4 sm:$0xff]  }
 0x45b   :  { %v8412_v62 = vpop.f32.mrf.mxu1  ;;  %8671 = vmatprep.subr.bf16.mxu0 %v11870_v47  ;;  %v11933_v47 = vld [vmem:[#allocation8 + $0x6cc] ss:$16 sps:$4 sm:$0xff]  }
 0x45c   :  { %8633 = vmatpush1.bf16.msra.mxu1 %v11865_v18  ;;  %v11925_v18 = vld [vmem:[#allocation8 + $0x508] ss:$16 sps:$4 sm:$0xff]   ;;  %v11936_v4 = vld [vmem:[#allocation8 + $0x8ec] ss:$16 sps:$4 sm:$0xff]  }
 0x45d   :  { %v8413_v9 = vpop.f32.mrf.mxu1  ;;  %8634 = vmatprep.subr.bf16.mxu1 %v11873_v10  ;;  %v11931_v10 = vld [vmem:[#allocation8 + $0x6c8] ss:$16 sps:$4 sm:$0xff]  }
 0x45e   :  { %8672 = vmatpush1.bf16.msra.mxu0 %v11868_v42  ;;  %v11939_v42 = vld [vmem:[#allocation8 + $0x6ac] ss:$16 sps:$4 sm:$0xff]   ;;  %v11934_v62 = vld [vmem:[#allocation8 + $0x8e8] ss:$16 sps:$4 sm:$0xff]  }
 0x45f   :  { %8673 = vmatprep.subr.bf16.mxu0 %v11876_v5  ;;  %v11942_v5 = vld [vmem:[#allocation8 + $0x8cc] ss:$16 sps:$4 sm:$0xff]  }
 0x460   :  { %8635 = vmatpush1.bf16.msra.mxu1 %v11871_v60  ;;  %v11937_v60 = vld [vmem:[#allocation8 + $0x6a8] ss:$16 sps:$4 sm:$0xff]   ;;  %v11945_v9 = vld [vmem:[#allocation8 + $0x68c] ss:$16 sps:$4 sm:$0xff]  }
 0x461   :  { %8636 = vmatprep.subr.bf16.mxu1 %v11879_v30  ;;  %v11948_v30 = vld [vmem:[#allocation8 + $0x8ac] ss:$16 sps:$4 sm:$0xff]  }
 0x462   :  { %8674 = vmatpush1.bf16.msra.mxu0 %v11874_v50  ;;  %v11951_v50 = vld [vmem:[#allocation8 + $0x66c] ss:$16 sps:$4 sm:$0xff]  }
 0x463   :  { %8675 = vmatprep.subr.bf16.mxu0 %v11882_v61  ;;  %v11946_v61 = vld [vmem:[#allocation8 + $0x8a8] ss:$16 sps:$4 sm:$0xff]  }
 0x464   :  { %8637 = vmatpush2.bf16.msra.mxu1 %v11877_v11  ;;  %v11954_v11 = vld [vmem:[#allocation8 + $0x88c] ss:$16 sps:$4 sm:$0xff]  }
 0x465   :  { %8638 = vmatprep.subr.bf16.mxu1 %v11885_v58  ;;  %v11949_v58 = vld [vmem:[#allocation8 + $0x668] ss:$16 sps:$4 sm:$0xff]  }
 0x466   :  { %8676 = vmatpush1.bf16.msra.mxu0 %v11880_v19  ;;  %v11952_v19 = vld [vmem:[#allocation8 + $0x888] ss:$16 sps:$4 sm:$0xff]  }
 0x467   :  { %8677 = vmatprep.subr.bf16.mxu0 %v11888_v35  ;;  %v11960_v35 = vld [vmem:[#allocation8 + $0x86c] ss:$16 sps:$4 sm:$0xff]  }
 0x468   :  { %8639 = vmatpush2.bf16.msra.mxu1 %v11883_v55  ;;  %v11963_v55 = vld [vmem:[#allocation8 + $0x62c] ss:$16 sps:$4 sm:$0xff]  }
 0x469   :  { %8640 = vmatprep.subr.bf16.mxu1 %v11891_v33  ;;  %v11958_v33 = vld [vmem:[#allocation8 + $0x868] ss:$16 sps:$4 sm:$0xff]  }
 0x46a   :  { %8678 = vmatpush2.bf16.msra.mxu0 %v11886_v59  ;;  %v11966_v59 = vld [vmem:[#allocation8 + $0x84c] ss:$16 sps:$4 sm:$0xff]  }
 0x46b   :  { %8679 = vmatprep.subr.bf16.mxu0 %v11894_v25  ;;  %v11961_v25 = vld [vmem:[#allocation8 + $0x628] ss:$16 sps:$4 sm:$0xff]  }
 0x46c   :  { %8641 = vmatpush2.bf16.msra.mxu1 %v11889_v52  ;;  %v11969_v52 = vld [vmem:[#allocation8 + $0x60c] ss:$16 sps:$4 sm:$0xff]  }
 0x46d   :  { %8642 = vmatprep.subr.bf16.mxu1 %v11897_v1  ;;  %v11964_v1 = vld [vmem:[#allocation8 + $0x848] ss:$16 sps:$4 sm:$0xff]  }
 0x46e   :  { %8680 = vmatpush2.bf16.msra.mxu0 %v11892_v2  ;;  %v11972_v2 = vld [vmem:[#allocation8 + $0x82c] ss:$16 sps:$4 sm:$0xff]  }
 0x46f   :  { %8681 = vmatprep.subr.bf16.mxu0 %v11900_v29  ;;  %v11967_v29 = vld [vmem:[#allocation8 + $0x608] ss:$16 sps:$4 sm:$0xff]  }
 0x470   :  { %8643 = vmatpush2.bf16.msra.mxu1 %v11895_v17  ;;  %v11975_v17 = vld [vmem:[#allocation8 + $0x7ec] ss:$16 sps:$4 sm:$0xff]  }
 0x471   :  { %8644 = vmatprep.subr.bf16.mxu1 %v11903_v51  ;;  %v11970_v51 = vld [vmem:[#allocation8 + $0x828] ss:$16 sps:$4 sm:$0xff]  }
 0x472   :  { %8682 = vmatpush2.bf16.msra.mxu0 %v11898_v23  ;;  %v11978_v23 = vld [vmem:[#allocation8 + $0x80c] ss:$16 sps:$4 sm:$0xff]  }
 0x473   :  { %8683 = vmatprep.subr.bf16.mxu0 %v11906_v57  ;;  %v11973_v57 = vld [vmem:[#allocation8 + $0x7e8] ss:$16 sps:$4 sm:$0xff]  }
 0x474   :  { %8645 = vmatpush2.bf16.msra.mxu1 %v11901_v8  ;;  %v11981_v8 = vld [vmem:[#allocation8 + $0x7cc] ss:$16 sps:$4 sm:$0xff]  }
 0x475   :  { %8646 = vmatprep.subr.bf16.mxu1 %v11909_v26  ;;  %v11976_v26 = vld [vmem:[#allocation8 + $0x808] ss:$16 sps:$4 sm:$0xff]  }
 0x476   :  { %8684 = vmatpush2.bf16.msra.mxu0 %v11904_v6  ;;  %v11984_v6 = vld [vmem:[#allocation8 + $0x9ec] ss:$16 sps:$4 sm:$0xff]  }
 0x477   :  { %8685 = vmatprep.subr.bf16.mxu0 %v11912_v0  ;;  %v11979_v0 = vld [vmem:[#allocation8 + $0x7c8] ss:$16 sps:$4 sm:$0xff]  }
 0x478   :  { %8647 = vmatpush2.bf16.msra.mxu1 %v11907_v13  ;;  %v11982_v13 = vld [vmem:[#allocation8 + $0x9e8] ss:$16 sps:$4 sm:$0xff]  }
 0x479   :  { %v8449_v32 = vpop.f32.mrf.mxu0  ;;  %8648 = vmatprep.subr.bf16.mxu1 %v11915_v15  ;;  %v11990_v15 = vld [vmem:[#allocation8 + $0x9cc] ss:$16 sps:$4 sm:$0xff]  }
 0x47a   :  { %8686 = vmatpush2.bf16.msra.mxu0 %v11910_v24  ;;  %v12730_v44 = vadd.f32 %v8449_v32, %v8409_v38  ;;  %v11993_v24 = vld [vmem:[#allocation8 + $0x78c] ss:$16 sps:$4 sm:$0xff]  }
 0x47b   :  { %8687 = vmatprep.subr.bf16.mxu0 %v11918_v37  ;;  %v8451_v21 = vpop.f32.mrf.mxu0  ;;  %v11988_v37 = vld [vmem:[#allocation8 + $0x9c8] ss:$16 sps:$4 sm:$0xff]  }
 0x47c   :  { %v12732_v41 = vadd.f32 %v8451_v21, %v8411_v36  ;;  %8649 = vmatpush2.bf16.msra.mxu1 %v11913_v3  ;;  %v11996_v3 = vld [vmem:[#allocation8 + $0x9ac] ss:$16 sps:$4 sm:$0xff]  }
 0x47d   :  { %v8453_v48 = vpop.f32.mrf.mxu0  ;;  %8650 = vmatprep.subr.bf16.mxu1 %v11921_v54  ;;  %v11991_v54 = vld [vmem:[#allocation8 + $0x788] ss:$16 sps:$4 sm:$0xff]  }
 0x47e   :  { %8688 = vmatpush2.bf16.msra.mxu0 %v11916_v12  ;;  %v11999_v12 = vld [vmem:[#allocation8 + $0x76c] ss:$16 sps:$4 sm:$0xff]  }
 0x47f   :  { %8689 = vmatprep.subr.bf16.mxu0 %v11924_v39  ;;  %v8454_v28 = vpop.f32.mrf.mxu0  ;;  %v11994_v39 = vld [vmem:[#allocation8 + $0x9a8] ss:$16 sps:$4 sm:$0xff]   ;;  %v12002_v48 = vld [vmem:[#allocation8 + $0x98c] ss:$16 sps:$4 sm:$0xff]  }
 0x480   :  { %8651 = vmatpush2.bf16.msra.mxu1 %v11919_v56  ;;  %v12005_v28 = vld [vmem:[#allocation8 + $0x74c] ss:$16 sps:$4 sm:$0xff]  }
 0x481   :  { %8702 = vmatprep.subr.bf16.mxu1 %v11930_v34  ;;  %v11997_v34 = vld [vmem:[#allocation8 + $0x768] ss:$16 sps:$4 sm:$0xff]  }
 0x482   :  { %8690 = vmatpush2.bf16.msra.mxu0 %v11922_v49 }
 0x483   :  { %8653 = vmatmul.mubr.bf16.vlgmr.msra.gmra.mxu1 %v12658_v63  ;;  %8691 = vmatprep.subr.bf16.mxu0 %v11927_v43  ;;  %v11940_v63 = vld [vmem:[#allocation8 + $0x8c8] ss:$16 sps:$4 sm:$0xff]   ;;  %v12008_v43 = vld [vmem:[#allocation8 + $0x96c] ss:$16 sps:$4 sm:$0xff]  }
 0x484   :  { %8703 = vmatpush1.bf16.msra.mxu1 %v11928_v46  ;;  %8734 = vmatprep.mubr.bf16.mxu1 %v12697_v45  ;;  %v11943_v45 = vld [vmem:[#allocation8 + $0x688] ss:$16 sps:$4 sm:$0xff]  }
 0x485   :  { %8704 = vmatprep.subr.bf16.mxu1 %v11933_v47  ;;  %v12003_v46 = vld [vmem:[#allocation8 + $0x748] ss:$16 sps:$4 sm:$0xff]   ;;  %v12011_v47 = vld [vmem:[#allocation8 + $0x72c] ss:$16 sps:$4 sm:$0xff]  }
 0x486   :  { %8692 = vmatpush2.bf16.msra.mxu0 %v11925_v18  ;;  %v12014_v18 = vld [vmem:[#allocation8 + $0x94c] ss:$16 sps:$4 sm:$0xff]  }
 0x487   :  { %8743 = vmatprep.subr.bf16.mxu0 %v11936_v4  ;;  %v12009_v4 = vld [vmem:[#allocation8 + $0x728] ss:$16 sps:$4 sm:$0xff]  }
 0x488   :  { %8705 = vmatpush1.bf16.msra.mxu1 %v11931_v10  ;;  %v12017_v10 = vld [vmem:[#allocation8 + $0x70c] ss:$16 sps:$4 sm:$0xff]  }
 0x489   :  { %8694 = vmatmul.mubr.bf16.vlgmr.msra.gmra.mxu0 %v12681_v31  ;;  %8706 = vmatprep.subr.bf16.mxu1 %v11939_v42  ;;  %v11957_v31 = vld [vmem:[#allocation8 + $0x64c] ss:$16 sps:$4 sm:$0xff]   ;;  %v12012_v42 = vld [vmem:[#allocation8 + $0x948] ss:$16 sps:$4 sm:$0xff]  }
 0x48a   :  { %8744 = vmatpush1.bf16.msra.mxu0 %v11934_v62  ;;  %8775 = vmatprep.mubr.bf16.mxu0 %v12711_v53  ;;  %v11955_v53 = vld [vmem:[#allocation8 + $0x648] ss:$16 sps:$4 sm:$0xff]   ;;  %v12020_v62 = vld [vmem:[#allocation8 + $0x92c] ss:$16 sps:$4 sm:$0xff]  }
 0x48b   :  { %8745 = vmatprep.subr.bf16.mxu0 %v11942_v5  ;;  %v12015_v5 = vld [vmem:[#allocation8 + $0x708] ss:$16 sps:$4 sm:$0xff]  }
 0x48c   :  { %8707 = vmatpush1.bf16.msra.mxu1 %v11937_v60  ;;  %v12024_v60 = vld [vmem:[#allocation11 + $0x78] sm:$0xff]  }
 0x48d   :  { %8708 = vmatprep.subr.bf16.mxu1 %v11945_v9  ;;  %v12018_v9 = vld [vmem:[#allocation8 + $0x928] ss:$16 sps:$4 sm:$0xff]  }
 0x48e   :  { %8746 = vmatpush1.bf16.msra.mxu0 %v11940_v63  ;;  %v12023_v63 = vld [vmem:[#allocation8 + $0x90c] ss:$16 sps:$4 sm:$0xff]  }
 0x48f   :  { %8747 = vmatprep.subr.bf16.mxu0 %v11948_v30  ;;  %v12025_v30 = vld [vmem:[#allocation11 + $0x38] sm:$0xff]  }
 0x490   :  { %8709 = vmatpush1.bf16.msra.mxu1 %v11943_v45  ;;  %v12026_v45 = vld [vmem:[#allocation11 + $0x70] sm:$0xff]  }
 0x491   :  { %8710 = vmatprep.subr.bf16.mxu1 %v11951_v50  ;;  %v12021_v50 = vld [vmem:[#allocation8 + $0x908] ss:$16 sps:$4 sm:$0xff]  }
 0x492   :  { %8748 = vmatpush1.bf16.msra.mxu0 %v11946_v61  ;;  %v12027_v61 = vld [vmem:[#allocation11 + $0x30] sm:$0xff]  }
 0x493   :  { %8749 = vmatprep.subr.bf16.mxu0 %v11954_v11  ;;  %v12028_v11 = vld [vmem:[#allocation11 + $0x68] sm:$0xff]  }
 0x494   :  { %8711 = vmatpush1.bf16.msra.mxu1 %v11949_v58  ;;  %v12029_v58 = vld [vmem:[#allocation11 + $0x28] sm:$0xff]  }
 0x495   :  { %8712 = vmatprep.subr.bf16.mxu1 %v11957_v31 }
 0x496   :  { %8750 = vmatpush1.bf16.msra.mxu0 %v11952_v19  ;;  %v12030_v19 = vld [vmem:[#allocation11 + $0x60] sm:$0xff]  }
 0x497   :  { %8751 = vmatprep.subr.bf16.mxu0 %v11960_v35 }
 0x498   :  { %8713 = vmatpush1.bf16.msra.mxu1 %v11955_v53  ;;  %v12031_v53 = vld [vmem:[#allocation11 + $0x20] sm:$0xff]  }
 0x499   :  { %8714 = vmatprep.subr.bf16.mxu1 %v11963_v55 }
 0x49a   :  { %8752 = vmatpush1.bf16.msra.mxu0 %v11958_v33  ;;  %v12032_v33 = vld [vmem:[#allocation11 + $0x58] sm:$0xff]  }
 0x49b   :  { %8753 = vmatprep.subr.bf16.mxu0 %v11966_v59  ;;  %v12033_v59 = vld [vmem:[#allocation11 + $0x18] sm:$0xff]  }
 0x49c   :  { %8715 = vmatpush1.bf16.msra.mxu1 %v11961_v25  ;;  %v12034_v25 = vld [vmem:[#allocation11 + $0x50] sm:$0xff]  }
 0x49d   :  { %8716 = vmatprep.subr.bf16.mxu1 %v11969_v52  ;;  %v12035_v52 = vld [vmem:[#allocation11 + $0x10] sm:$0xff]  }
 0x49e   :  { %8754 = vmatpush1.bf16.msra.mxu0 %v11964_v1  ;;  %v12036_v1 = vld [vmem:[#allocation11 + $0x48] sm:$0xff]  }
 0x49f   :  { %8755 = vmatprep.subr.bf16.mxu0 %v11972_v2  ;;  %v12038_v2 = vld [vmem:[#allocation11 + $0x40] sm:$0xff]  }
 0x4a0   :  { %8717 = vmatpush1.bf16.msra.mxu1 %v11967_v29  ;;  %v12039_v29 = vld [vmem:[#allocation11] sm:$0xff]  }
 0x4a1   :  { %8718 = vmatprep.subr.bf16.mxu1 %v11975_v17  ;;  %v12040_v17 = vld [vmem:[#allocation11 + $0xf8] sm:$0xff]  }
 0x4a2   :  { %8756 = vmatpush1.bf16.msra.mxu0 %v11970_v51 }
 0x4a3   :  { %8757 = vmatprep.subr.bf16.mxu0 %v11978_v23 }
 0x4a4   :  { %8719 = vmatpush2.bf16.msra.mxu1 %v11973_v57 }
 0x4a5   :  { %8720 = vmatprep.subr.bf16.mxu1 %v11981_v8 }
 0x4a6   :  { %8758 = vmatpush1.bf16.msra.mxu0 %v11976_v26 }
 0x4a7   :  { %8759 = vmatprep.subr.bf16.mxu0 %v11984_v6 }
 0x4a8   :  { %8721 = vmatpush2.bf16.msra.mxu1 %v11979_v0 }
 0x4a9   :  { %8722 = vmatprep.subr.bf16.mxu1 %v11987_v40 }
 0x4aa   :  { %8760 = vmatpush2.bf16.msra.mxu0 %v11982_v13 }
 0x4ab   :  { %8761 = vmatprep.subr.bf16.mxu0 %v11990_v15  ;;  %v8490_v38 = vpop.f32.mrf.mxu1 }
 0x4ac   :  { %v12739_v32 = vadd.f32 %v8490_v38, %v12730_v44  ;;  %8723 = vmatpush2.bf16.msra.mxu1 %v11985_v27  ;;  %v12000_v44 = vld [vmem:[#allocation8 + $0x988] ss:$16 sps:$4 sm:$0xff]  }
 0x4ad   :  { %v8492_v36 = vpop.f32.mrf.mxu1  ;;  %8724 = vmatprep.subr.bf16.mxu1 %v11993_v24 }
 0x4ae   :  { %8762 = vmatpush2.bf16.msra.mxu0 %v11988_v37  ;;  %v12742_v21 = vadd.f32 %v8492_v36, %v12732_v41  ;;  %v12006_v41 = vld [vmem:[#allocation8 + $0x968] ss:$16 sps:$4 sm:$0xff]   ;;  %v12041_v37 = vld [vmem:[#allocation11 + $0xb8] sm:$0xff]  }
 0x4af   :  { %8763 = vmatprep.subr.bf16.mxu0 %v11996_v3  ;;  %v8494_v56 = vpop.f32.mrf.mxu1 }
 0x4b0   :  { %8725 = vmatpush2.bf16.msra.mxu1 %v11991_v54  ;;  %v12042_v54 = vld [vmem:[#allocation11 + $0xf0] sm:$0xff]   ;;  %v12046_v56 = vld [vmem:[#allocation11 + $0xe0] sm:$0xff]  }
 0x4b1   :  { %v8495_v49 = vpop.f32.mrf.mxu1  ;;  %8726 = vmatprep.subr.bf16.mxu1 %v11999_v12 }
 0x4b2   :  { %8764 = vmatpush2.bf16.msra.mxu0 %v11994_v39  ;;  %v12045_v39 = vld [vmem:[#allocation11 + $0xa8] sm:$0xff]   ;;  %v12049_v49 = vld [vmem:[#allocation11 + $0x98] sm:$0xff]  }
 0x4b3   :  { %8765 = vmatprep.subr.bf16.mxu0 %v12002_v48  ;;  %v12047_v48 = vld [vmem:[#allocation11 + $0xa0] sm:$0xff]  }
 0x4b4   :  { %8727 = vmatpush2.bf16.msra.mxu1 %v11997_v34  ;;  %v12048_v34 = vld [vmem:[#allocation11 + $0xd8] sm:$0xff]  }
 0x4b5   :  { %8728 = vmatprep.subr.bf16.mxu1 %v12005_v28  ;;  %v12050_v28 = vld [vmem:[#allocation11 + $0xd0] sm:$0xff]  }
 0x4b6   :  { %8766 = vmatpush2.bf16.msra.mxu0 %v12000_v44  ;;  %v12051_v44 = vld [vmem:[#allocation11 + $0x90] sm:$0xff]  }
 0x4b7   :  { %8767 = vmatprep.subr.bf16.mxu0 %v12008_v43  ;;  %v12052_v43 = vld [vmem:[#allocation11 + $0xc8] sm:$0xff]  }
 0x4b8   :  { %8729 = vmatpush2.bf16.msra.mxu1 %v12003_v46  ;;  %v12053_v46 = vld [vmem:[#allocation11 + $0x88] sm:$0xff]  }
 0x4b9   :  { %8730 = vmatprep.subr.bf16.mxu1 %v12011_v47  ;;  %v12054_v47 = vld [vmem:[#allocation11 + $0xc0] sm:$0xff]  }
 0x4ba   :  { %8768 = vmatpush2.bf16.msra.mxu0 %v12006_v41  ;;  %v12055_v41 = vld [vmem:[#allocation11 + $0x80] sm:$0xff]  }
 0x4bb   :  { %8769 = vmatprep.subr.bf16.mxu0 %v12014_v18  ;;  %v6765_v18 = vrot.slane %v12722_v14, %v12387_v20 }
 0x4bc   :  { %8731 = vmatpush2.bf16.msra.mxu1 %v12009_v4  ;;  %v6769_v4 = vrot.slane %v12722_v14, %v12391_v22 }
 0x4bd   :  { %8732 = vmatprep.subr.bf16.mxu1 %v12017_v10 }
 0x4be   :  { %8770 = vmatpush2.bf16.msra.mxu0 %v12012_v42 }
 0x4bf   :  { %8771 = vmatprep.subr.bf16.mxu0 %v12020_v62 }
 0x4c0   :  { %8733 = vmatpush2.bf16.msra.mxu1 %v12015_v5 }
 0x4c1   :  { %10326 = vmatprep.subr.bf16.mxu1 %v12024_v60 }
 0x4c2   :  { %8772 = vmatpush2.bf16.msra.mxu0 %v12018_v9 }
 0x4c3   :  { %8735 = vmatmul.mubr.bf16.vlgmr.msra.gmra.mxu1 %v12699_v16  ;;  %8773 = vmatprep.subr.bf16.mxu0 %v12023_v63 }
 0x4c4   :  { %10327 = vmatpush3.bf16.msra.mxu1 %v12025_v30 }
 0x4c5   :  { %10328 = vmatprep.subr.bf16.mxu1 %v12026_v45 }
 0x4c6   :  { %8774 = vmatpush2.bf16.msra.mxu0 %v12021_v50 }
 0x4c8   :  { %10329 = vmatpush3.bf16.msra.mxu1 %v12027_v61 }
 0x4c9   :  { %8776 = vmatmul.mubr.bf16.vlgmr.msra.gmra.mxu0 %v12709_v7  ;;  %v8531_v31 = vpop.f32.mrf.mxu0  ;;  %10330 = vmatprep.subr.bf16.mxu1 %v12028_v11  ;;  %v12037_v7 = vld [vmem:[#allocation11 + $0x8] sm:$0xff]  }
 0x4ca   :  { %v8532_v51 = vadd.f32 %v8531_v31, %v12739_v32  ;;  %v12043_v32 = vld [vmem:[#allocation11 + $0xb0] sm:$0xff]  }
 0x4cb   :  { %v8533_v35 = vpop.f32.mrf.mxu0 }
 0x4cc   :  { %10331 = vmatpush3.bf16.msra.mxu1 %v12029_v58  ;;  %v8534_v57 = vadd.f32 %v8533_v35, %v12742_v21  ;;  %v12044_v21 = vld [vmem:[#allocation11 + $0xe8] sm:$0xff]  }
 0x4cd   :  { %v8535_v55 = vpop.f32.mrf.mxu0  ;;  %10332 = vmatprep.subr.bf16.mxu1 %v12030_v19 }
 0x4cf   :  { %v8536_v16 = vpop.f32.mrf.mxu0 }
 0x4d0   :  { %10333 = vmatpush3.bf16.msra.mxu1 %v12031_v53 }
 0x4d1   :  { %10334 = vmatprep.subr.bf16.mxu1 %v12032_v33 }
 0x4d4   :  { %10335 = vmatpush3.bf16.msra.mxu1 %v12033_v59 }
 0x4d5   :  { %10336 = vmatprep.subr.bf16.mxu1 %v12034_v25 }
 0x4d8   :  { %10337 = vmatpush3.bf16.msra.mxu1 %v12035_v52 }
 0x4d9   :  { %10338 = vmatprep.subr.bf16.mxu1 %v12036_v1 }
 0x4dc   :  { %10339 = vmatpush3.bf16.msra.mxu1 %v12037_v7 }
 0x4dd   :  { %10340 = vmatprep.subr.bf16.mxu1 %v12038_v2 }
 0x4e0   :  { %10341 = vmatpush3.bf16.msra.mxu1 %v12039_v29 }
 0x4e1   :  { %10348 = vmatprep.subr.bf16.mxu1 %v12040_v17 }
 0x503   :  { %v8572_v23 = vpop.f32.mrf.mxu1 }
 0x504   :  { %v8573_v8 = vadd.f32 %v8572_v23, %v8532_v51 }
 0x505   :  { %v8574_v26 = vpop.f32.mrf.mxu1 }
 0x506   :  { %v8575_v6 = vadd.f32 %v8574_v26, %v8534_v57  ;;  %v8784_v0 = vmax.f32 %v8573_v8, 0.0  ;;  %v10293_v26 = vld [vmem:[#allocation13] ss:$0 sm:$0xff] }
 0x507   :  { %v8576_v40 = vpop.f32.mrf.mxu1 }
 0x508   :  { %v8785_v13 = vmax.f32 %v8575_v6, 0.0  ;;  %v8788_v38 = vpack.c.bf16 %v8784_v0, %v8784_v0 }
 0x509   :  { %v8613_v15 = vpop.f32.mrf.mxu0  ;;  %v8577_v27 = vpop.f32.mrf.mxu1 }
 0x50a   :  { %v8789_v24 = vpack.c.bf16 %v8785_v13, %v8785_v13  ;;  %v8614_v10 = vadd.f32 %v8613_v15, %v6765_v18 }
 0x50b   :  { %v8615_v3 = vpop.f32.mrf.mxu0 }
 0x50c   :  { %9087 = vmatprep.mubr.bf16.mxu1 %v8789_v24  ;;  %v8616_v62 = vadd.f32 %v8615_v3, %v6769_v4 }
 0x50d   :  { %v8617_v36 = vpop.f32.mrf.mxu0  ;;  %9088 = vmatmul.mubr.bf16.vlgmr.msra.gmra.mxu1 %v8788_v38 }
 0x50e   :  { %10349 = vmatpush3.bf16.msra.mxu1 %v12041_v37 }
 0x50f   :  { %v8618_v12 = vpop.f32.mrf.mxu0  ;;  %10350 = vmatprep.subr.bf16.mxu1 %v12042_v54 }
 0x512   :  { %10351 = vmatpush3.bf16.msra.mxu1 %v12043_v32 }
 0x513   :  { %10352 = vmatprep.subr.bf16.mxu1 %v12044_v21 }
 0x516   :  { %10353 = vmatpush3.bf16.msra.mxu1 %v12045_v39 }
 0x517   :  { %10354 = vmatprep.subr.bf16.mxu1 %v12046_v56 }
 0x51a   :  { %10355 = vmatpush3.bf16.msra.mxu1 %v12047_v48 }
 0x51b   :  { %10356 = vmatprep.subr.bf16.mxu1 %v12048_v34 }
 0x51e   :  { %10357 = vmatpush3.bf16.msra.mxu1 %v12049_v49 }
 0x51f   :  { %10358 = vmatprep.subr.bf16.mxu1 %v12050_v28 }
 0x522   :  { %10359 = vmatpush3.bf16.msra.mxu1 %v12051_v44 }
 0x523   :  { %10360 = vmatprep.subr.bf16.mxu1 %v12052_v43 }
 0x526   :  { %10361 = vmatpush3.bf16.msra.mxu1 %v12053_v46 }
 0x527   :  { %10362 = vmatprep.subr.bf16.mxu1 %v12054_v47 }
 0x52a   :  { %10363 = vmatpush3.bf16.msra.mxu1 %v12055_v41 }
 0x543   :  { %v8654_v42 = vpop.f32.mrf.mxu1 }
 0x544   :  { %v8655_v5 = vadd.f32 %v8654_v42, %v8614_v10 }
 0x545   :  { %v8656_v60 = vpop.f32.mrf.mxu1 }
 0x546   :  { %v8657_v9 = vadd.f32 %v8656_v60, %v8616_v62 }
 0x547   :  { %v8658_v63 = vpop.f32.mrf.mxu1 }
 0x549   :  { %v8695_v30 = vpop.f32.mrf.mxu0  ;;  %v8659_v45 = vpop.f32.mrf.mxu1 }
 0x54a   :  { %v8696_v19 = vadd.f32 %v8695_v30, %v8655_v5 }
 0x54b   :  { %v8697_v50 = vpop.f32.mrf.mxu0 }
 0x54c   :  { %v8698_v20 = vadd.f32 %v8697_v50, %v8657_v9 }
 0x54d   :  { %v8699_v61 = vpop.f32.mrf.mxu0 }
 0x54f   :  { %v8700_v11 = vpop.f32.mrf.mxu0 }
 0x583   :  { %v8736_v58 = vpop.f32.mrf.mxu1 }
 0x584   :  { %v8737_v53 = vadd.f32 %v8736_v58, %v8696_v19 }
 0x585   :  { %v8738_v31 = vpop.f32.mrf.mxu1 }
 0x586   :  { %v8739_v14 = vadd.f32 %v8738_v31, %v8698_v20 }
 0x587   :  { %v8740_v35 = vpop.f32.mrf.mxu1 }
 0x589   :  { %v8777_v55 = vpop.f32.mrf.mxu0  ;;  %v8741_v22 = vpop.f32.mrf.mxu1 }
 0x58a   :  { %v8778_v33 = vadd.f32 %v8777_v55, %v8737_v53 }
 0x58b   :  { %v8779_v16 = vpop.f32.mrf.mxu0 }
 0x58c   :  { %v8780_v59 = vadd.f32 %v8779_v16, %v8739_v14  ;;  %v8786_v25 = vmax.f32 %v8778_v33, 0.0 }
 0x58d   :  { %v8781_v52 = vpop.f32.mrf.mxu0 }
 0x58e   :  { %v8787_v1 = vmax.f32 %v8780_v59, 0.0  ;;  %v8790_v29 = vpack.c.bf16 %v8786_v25, %v8786_v25 }
 0x58f   :  { %v8782_v7 = vpop.f32.mrf.mxu0 }
 0x590   :  { %v8791_v2 = vpack.c.bf16 %v8787_v1, %v8787_v1 }
 0x592   :  { %9127 = vmatprep.mubr.bf16.mxu1 %v8791_v2 }
 0x593   :  { %9128 = vmatmul.mubr.bf16.vlgmr.msra.gmra.mxu1 %v8790_v29 }
 0x5cd   :  { %v10342_v17 = vpop.f32.mrf.mxu1 }
 0x5cf   :  { %v10343_v51 = vpop.f32.mrf.mxu1 }
 0x5d0   :  { %v10344_v23 = vadd.f32 %v10343_v51, %v10342_v17 }
 0x5d1   :  { %v10345_v57 = vpop.f32.mrf.mxu1 }
 0x5d2   :  { %v9090_v40 = vadd.f32 %v10344_v23, %v10293_v26 }
 0x5d3   :  { %v10346_v8 = vpop.f32.mrf.mxu1 }
 0x653   :  { %v10364_v6 = vpop.f32.mrf.mxu1 }
 0x655   :  { %v10365_v0 = vpop.f32.mrf.mxu1 }
 0x656   :  { %v10366_v13 = vadd.f32 %v10365_v0, %v10364_v6 }
 0x657   :  { %v10367_v15 = vpop.f32.mrf.mxu1 }
 0x658   :  { %v9130_v27 = vadd.f32 %v10366_v13, %v9090_v40 }
 0x659   :  { %v10368_v24 = vpop.f32.mrf.mxu1 }
 0x65a   :  { %9135 = vst [vmem:[#allocation14] sm:$0xff] %v9130_v27 }
 0x65b   :  { %12214 = shalt.err (!%p12211_p11)
}
 0x65c   :  { %9145 = dma.vmem_to_hbm [thread:$0]  %s9143_s6, 128, %s12762_s7, [#allocation4]  }
 0x65d   :  { %12231 = dma.done.wait [#allocation4], 128  }
 0x65e   :  { %12232 = vsyncadd [#allocation4], 4294967168 }
 0x65f   :  { %9149 = vsyncpa [#allocation3], 1 }
 0x660   :  { %9150 = vsyncpa [#allocation6], 1 }
 0x661   :  { %9151 = vsyncpa [#allocation9], 1 }
 0x662   :  { %9152 = vsyncpa [#allocation12], 1 }
 0x663   :  { %9153 = vsyncpa [#allocation4], 1 }

</bundles_post_ra>
